<compile_context>
chip_gen: v6e
topology: v6e:2x2x1
jax: 0.10.0
libtpu: 0.0.40
codegen_flags: <defaults>
</compile_context>

<pallas_src>
import functools

import jax
import jax.numpy as jnp
from jax.experimental import pallas as pl
from jax.experimental.pallas import tpu as pltpu


_LANE = 128      # TPU lane width; hidden / gate / class dims padded to this.
_SUBLANE = 8     # TPU sublane count; batch / bias rows padded to this.


def _fused_lstm_head_kernel(x_ref, wl_ref, wh_ref, out_ref, *,
                            batch_pad, seq_len, hidden_pad, num_layers):
    """Whole model in one kernel invocation (no grid).

    x_ref:  (T*Bp, 128)  time-major input, batch padded to Bp, feat padded to 128.
    wl_ref: (L*(2*Hp+8), 4*Hp) packed [w_ih_t; w_hh_t; bias(8 rows)] per layer,
            i/f/o gate columns pre-scaled by 0.5.
    wh_ref: (2*128+16, 128) packed [fc1_w_t; b1(8); fc2_w_t; b2(8)].
    out_ref:(L*Bp, 128) padded logits; rows ordered (layer, padded batch).
    """
    Hp, Bp, T, L = hidden_pad, batch_pad, seq_len, num_layers
    RPL = 2 * Hp + _SUBLANE                      # rows per layer in wl_ref

    # ---- Read & cast weights once (hoisted out of the recurrence). ----------
    wih_bf, whh_bf, bias_f = [], [], []
    for l in range(L):
        off = l * RPL
        wih_bf.append(wl_ref[off:off + Hp, :].astype(jnp.bfloat16))
        whh_bf.append(wl_ref[off + Hp:off + 2 * Hp, :].astype(jnp.bfloat16))
        bias_f.append(wl_ref[off + 2 * Hp:off + 2 * Hp + 1, :])      # (1, 4Hp)

    # ---- Layer-0 input projection hoisted over the whole sequence. ----------
    xp = x_ref[...].astype(jnp.bfloat16)                              # (T*Bp,128)
    gx0 = jnp.dot(xp, wih_bf[0], preferred_element_type=jnp.float32) + bias_f[0]
    # gx0: (T*Bp, 4Hp), time-major; per-step slice below is 8-row aligned.

    # ---- Wavefront LSTM recurrence. -----------------------------------------
    # Layer l at time t only depends on (layer l, t-1) and (layer l-1, t), so
    # the per-layer chains can overlap; no whole-sequence barrier between layers.
    h = [jnp.zeros((Bp, Hp), jnp.float32) for _ in range(L)]
    c = [jnp.zeros((Bp, Hp), jnp.float32) for _ in range(L)]
    h_out = [[None] * T for _ in range(L)]

    for s in range(T + L - 1):                   # static, fully unrolled
        for l in range(L):
            t = s - l
            if not (0 <= t < T):
                continue
            if l == 0:
                gx_t = gx0[t * Bp:(t + 1) * Bp, :]                    # (Bp, 4Hp)
            else:
                h_prev = h_out[l - 1][t].astype(jnp.bfloat16)
                gx_t = (jnp.dot(h_prev, wih_bf[l],
                                preferred_element_type=jnp.float32) + bias_f[l])
            gates = gx_t + jnp.dot(h[l].astype(jnp.bfloat16), whh_bf[l],
                                   preferred_element_type=jnp.float32)
            # i/f/o gate columns were pre-scaled by 0.5, so ONE tanh over the
            # whole (Bp, 4Hp) block yields the three sigmoids (0.5*(t+1)) and
            # the cell gate's tanh (g columns not pre-scaled).
            tg = jnp.tanh(gates)
            i_g = 0.5 * (tg[:, 0 * Hp:1 * Hp] + 1.0)
            f_g = 0.5 * (tg[:, 1 * Hp:2 * Hp] + 1.0)
            g_g = tg[:, 2 * Hp:3 * Hp]
            o_g = 0.5 * (tg[:, 3 * Hp:4 * Hp] + 1.0)
            c_new = f_g * c[l] + i_g * g_g
            h_new = o_g * jnp.tanh(c_new)
            c[l] = c_new
            h[l] = h_new
            h_out[l][t] = h_new

    # hn.view(-1, H): rows ordered (layer, padded batch); padded lanes are 0.
    hn = jnp.concatenate(h, axis=0)                                   # (L*Bp, Hp)

    # ---- Head: ReLU -> Linear(H,128) -> ReLU -> Linear(128, C_pad). ---------
    w1 = wh_ref[0:Hp, :].astype(jnp.bfloat16)
    b1 = wh_ref[Hp:Hp + 1, :]
    w2 = wh_ref[Hp + _SUBLANE:Hp + _SUBLANE + _LANE, :].astype(jnp.bfloat16)
    b2 = wh_ref[Hp + _SUBLANE + _LANE:Hp + _SUBLANE + _LANE + 1, :]
    z = jnp.maximum(hn, 0.0).astype(jnp.bfloat16)
    z = jnp.dot(z, w1, preferred_element_type=jnp.float32) + b1
    z = jnp.maximum(z, 0.0).astype(jnp.bfloat16)
    out_ref[...] = jnp.dot(z, w2, preferred_element_type=jnp.float32) + b2


# ---------------------------------------------------------------------------
# Weight packing: gate columns padded to 128 lanes, i/f/o columns pre-scaled
# by 0.5 (sigmoid-via-tanh fusion), everything concatenated into 2 arrays.
# ---------------------------------------------------------------------------
def _pad_prescale_gates(w_t, H, rows_in, rows_out):
    """(rows_in, 4H) -> (rows_out, 4*128); i/f/o blocks scaled by 0.5."""
    Hp = _LANE
    w4 = w_t.reshape(rows_in, 4, H)
    scale = jnp.array([0.5, 0.5, 1.0, 0.5], jnp.float32).reshape(1, 4, 1)  # i,f,g,o
    w4 = w4 * scale
    w4 = jnp.pad(w4, ((0, rows_out - rows_in), (0, 0), (0, Hp - H)))
    return w4.reshape(rows_out, 4 * Hp)


def _prepare_packed_weights(params, *, input_size, hidden_size, num_layers,
                            num_classes):
    H, Hp = hidden_size, _LANE
    blocks = []
    for layer in range(num_layers):
        p = params["lstm"][layer]
        rows_in = input_size if layer == 0 else H
        blocks.append(_pad_prescale_gates(p["w_ih_t"], H, rows_in, Hp))
        blocks.append(_pad_prescale_gates(p["w_hh_t"], H, H, Hp))
        blocks.append(_pad_prescale_gates(p["bias"], H, 1, _SUBLANE))
    w_lstm = jnp.concatenate(blocks, axis=0)            # (L*(2Hp+8), 4Hp) f32

    w1 = jnp.pad(params["fc1"]["w_t"], ((0, Hp - H), (0, 0)))            # (Hp,128)
    b1 = jnp.pad(params["fc1"]["b"], ((0, _SUBLANE - 1), (0, 0)))        # (8,128)
    w2 = jnp.pad(params["fc2"]["w_t"],
                 ((0, 0), (0, _LANE - num_classes)))                     # (128,128)
    b2 = jnp.pad(params["fc2"]["b"],
                 ((0, _SUBLANE - 1), (0, _LANE - num_classes)))          # (8,128)
    w_head = jnp.concatenate([w1, b1, w2, b2], axis=0)                   # (272,128)
    return w_lstm, w_head


# ---------------------------------------------------------------------------
# Full model forward (single fused pallas_call)
# ---------------------------------------------------------------------------
def lstm_model_forward(x, params, *, input_size, hidden_size, num_layers,
                       num_classes):
    """x: (B, T, input_size). Returns (num_layers * B, num_classes)."""
    B, T, F = x.shape
    assert F <= _LANE and hidden_size <= _LANE and num_classes <= _LANE
    Bp = max(_SUBLANE, ((B + _SUBLANE - 1) // _SUBLANE) * _SUBLANE)
    Hp = _LANE

    w_lstm, w_head = _prepare_packed_weights(
        params, input_size=input_size, hidden_size=hidden_size,
        num_layers=num_layers, num_classes=num_classes)

    # Time-major input, batch padded to Bp sublanes, features padded to 128
    # lanes (tiny one-time transpose/pad in the wrapper).
    xt = jnp.transpose(x, (1, 0, 2))                              # (T, B, F)
    xt = jnp.pad(xt, ((0, 0), (0, Bp - B), (0, _LANE - F)))       # (T, Bp, 128)
    x2d = xt.reshape(T * Bp, _LANE)

    kernel = functools.partial(_fused_lstm_head_kernel, batch_pad=Bp,
                               seq_len=T, hidden_pad=Hp, num_layers=num_layers)
    out_padded = pl.pallas_call(
        kernel,
        out_shape=jax.ShapeDtypeStruct((num_layers * Bp, _LANE), jnp.float32),
        in_specs=[pl.BlockSpec(memory_space=pltpu.MemorySpace.VMEM)] * 3,
        out_specs=pl.BlockSpec(memory_space=pltpu.MemorySpace.VMEM),
        compiler_params=pltpu.CompilerParams(
            vmem_limit_bytes=32 * 1024 * 1024),
    )(x2d, w_lstm, w_head)

    out = out_padded.reshape(num_layers, Bp, _LANE)[:, :B, :num_classes]
    return out.reshape(num_layers * B, num_classes)


# ---------------------------------------------------------------------------
# Pure-JAX f32 reference (eval semantics of the PyTorch module)
# ---------------------------------------------------------------------------
def lstm_reference(x, params, *, hidden_size, num_layers, num_classes):
    B, T, _ = x.shape
    H = hidden_size
    h_in = x
    last_h = []
    for layer in range(num_layers):
        p = params["lstm"][layer]
        h = jnp.zeros((B, H), jnp.float32)
        c = jnp.zeros((B, H), jnp.float32)
        outs = []
        for t in range(T):
            gates = h_in[:, t, :] @ p["w_ih_t"] + h @ p["w_hh_t"] + p["bias"]
            i = jax.nn.sigmoid(gates[:, 0 * H:1 * H])
            f = jax.nn.sigmoid(gates[:, 1 * H:2 * H])
            g = jnp.tanh(gates[:, 2 * H:3 * H])
            o = jax.nn.sigmoid(gates[:, 3 * H:4 * H])
            c = f * c + i * g
            h = o * jnp.tanh(c)
            outs.append(h)
        h_in = jnp.stack(outs, axis=1)
        last_h.append(h)
    hn = jnp.concatenate(last_h, axis=0)
    z = jnp.maximum(hn, 0.0)
    z = jnp.maximum(z @ params["fc1"]["w_t"] + params["fc1"]["b"], 0.0)
    return z @ params["fc2"]["w_t"] + params["fc2"]["b"]


# ---------------------------------------------------------------------------
# Deterministic parameter init (PyTorch-style uniform(-1/sqrt(fan_in), ...))
# ---------------------------------------------------------------------------
def init_params(key, *, input_size, hidden_size, num_layers, num_classes):
    H = hidden_size
    bound = 1.0 / jnp.sqrt(jnp.float32(H))
    params = {"lstm": []}
    for layer in range(num_layers):
        f_in = input_size if layer == 0 else H
        key, k1, k2, k3, k4 = jax.random.split(key, 5)
        w_ih = jax.random.uniform(k1, (4 * H, f_in), jnp.float32, -bound, bound)
        w_hh = jax.random.uniform(k2, (4 * H, H), jnp.float32, -bound, bound)
        b_ih = jax.random.uniform(k3, (4 * H,), jnp.float32, -bound, bound)
        b_hh = jax.random.uniform(k4, (4 * H,), jnp.float32, -bound, bound)
        params["lstm"].append({
            "w_ih_t": w_ih.T,                         # (f_in, 4H), gates i,f,g,o
            "w_hh_t": w_hh.T,                         # (H, 4H)
            "bias": (b_ih + b_hh).reshape(1, 4 * H),  # (1, 4H)
        })
    key, k1, k2, k3, k4 = jax.random.split(key, 5)
    b1b = 1.0 / jnp.sqrt(jnp.float32(H))
    w1 = jax.random.uniform(k1, (128, H), jnp.float32, -b1b, b1b)
    bb1 = jax.random.uniform(k2, (128,), jnp.float32, -b1b, b1b)
    b2b = 1.0 / jnp.sqrt(jnp.float32(128))
    w2 = jax.random.uniform(k3, (num_classes, 128), jnp.float32, -b2b, b2b)
    bb2 = jax.random.uniform(k4, (num_classes,), jnp.float32, -b2b, b2b)
    params["fc1"] = {"w_t": w1.T, "b": bb1.reshape(1, 128)}
    params["fc2"] = {"w_t": w2.T, "b": bb2.reshape(1, num_classes)}
    return params


if __name__ == "__main__":
    num_classes = 5
    input_size = 10
    hidden_size = 32
    num_layers = 2
    B, T = 2, 8

    key = jax.random.PRNGKey(0)
    key, pkey, xkey = jax.random.split(key, 3)
    params = init_params(pkey, input_size=input_size, hidden_size=hidden_size,
                         num_layers=num_layers, num_classes=num_classes)
    x = jax.random.normal(xkey, (B, T, input_size), jnp.float32)

    fwd = jax.jit(functools.partial(
        lstm_model_forward, input_size=input_size, hidden_size=hidden_size,
        num_layers=num_layers, num_classes=num_classes))
    out = fwd(x, params)
    jax.block_until_ready(out)
    assert out.shape == (num_layers * B, num_classes), out.shape

    ref = jax.jit(functools.partial(
        lstm_reference, hidden_size=hidden_size, num_layers=num_layers,
        num_classes=num_classes))(x, params)
    # Kernel uses bf16 MXU operands (per perf review) vs. the f32 reference,
    # so the tolerance is relaxed from 5e-3 to 3e-2.
    max_err = float(jnp.max(jnp.abs(out - ref)))
    assert max_err < 3e-2, f"max abs err vs reference: {max_err}"
    print("KERNEL_OK")
</pallas_src>

<mosaic_0001>
module attributes {stable_mosaic.version = 11 : i64} {
  func.func @_fused_lstm_head_kernel(%arg0: memref<64x128xf32, #tpu.memory_space<vmem>>, %arg1: memref<528x512xf32, #tpu.memory_space<vmem>>, %arg2: memref<272x128xf32, #tpu.memory_space<vmem>>, %arg3: memref<16x128xf32, #tpu.memory_space<vmem>>) attributes {dimension_semantics = [], scalar_prefetch = 0 : i64, scratch_operands = 0 : i64, tpu.core_type = #tpu.core_type<tc>} {
    %c0 = arith.constant 0 : index
    %c0_0 = arith.constant 0 : index
    %0 = vector.load %arg1[%c0, %c0_0] : memref<528x512xf32, #tpu.memory_space<vmem>>, vector<128x512xf32>
    %1 = arith.truncf %0 : vector<128x512xf32> to vector<128x512xbf16>
    %c128 = arith.constant 128 : index
    %c0_1 = arith.constant 0 : index
    %2 = vector.load %arg1[%c128, %c0_1] : memref<528x512xf32, #tpu.memory_space<vmem>>, vector<128x512xf32>
    %3 = arith.truncf %2 : vector<128x512xf32> to vector<128x512xbf16>
    %c256 = arith.constant 256 : index
    %c0_2 = arith.constant 0 : index
    %4 = vector.load %arg1[%c256, %c0_2] : memref<528x512xf32, #tpu.memory_space<vmem>>, vector<1x512xf32>
    %c264 = arith.constant 264 : index
    %c0_3 = arith.constant 0 : index
    %5 = vector.load %arg1[%c264, %c0_3] : memref<528x512xf32, #tpu.memory_space<vmem>>, vector<128x512xf32>
    %6 = arith.truncf %5 : vector<128x512xf32> to vector<128x512xbf16>
    %c392 = arith.constant 392 : index
    %c0_4 = arith.constant 0 : index
    %7 = vector.load %arg1[%c392, %c0_4] : memref<528x512xf32, #tpu.memory_space<vmem>>, vector<128x512xf32>
    %8 = arith.truncf %7 : vector<128x512xf32> to vector<128x512xbf16>
    %c520 = arith.constant 520 : index
    %c0_5 = arith.constant 0 : index
    %9 = vector.load %arg1[%c520, %c0_5] : memref<528x512xf32, #tpu.memory_space<vmem>>, vector<1x512xf32>
    %c0_6 = arith.constant 0 : index
    %c0_7 = arith.constant 0 : index
    %10 = vector.load %arg0[%c0_6, %c0_7] : memref<64x128xf32, #tpu.memory_space<vmem>>, vector<64x128xf32>
    %11 = arith.truncf %10 : vector<64x128xf32> to vector<64x128xbf16>
    %cst = arith.constant dense<0.000000e+00> : vector<64x512xf32>
    %12 = tpu.matmul %11, %1, %cst {dimension_numbers = #tpu.dot_dimension_numbers<[1], [0], [0], [1], [0, 0, 1, 1], [], []>} : vector<64x128xbf16>, vector<128x512xbf16>, vector<64x512xf32> -> vector<64x512xf32>
    %13 = vector.broadcast %4 : vector<1x512xf32> to vector<64x512xf32>
    %14 = arith.addf %12, %13 : vector<64x512xf32>
    %cst_8 = arith.constant 0.000000e+00 : f32
    %15 = vector.broadcast %cst_8 : f32 to vector<8x128xf32>
    %cst_9 = arith.constant 0.000000e+00 : f32
    %16 = vector.broadcast %cst_9 : f32 to vector<8x128xf32>
    %cst_10 = arith.constant 0.000000e+00 : f32
    %17 = vector.broadcast %cst_10 : f32 to vector<8x128xf32>
    %cst_11 = arith.constant 0.000000e+00 : f32
    %18 = vector.broadcast %cst_11 : f32 to vector<8x128xf32>
    %19 = vector.extract_strided_slice %14 {offsets = [0, 0], sizes = [8, 512], strides = [1, 1]} : vector<64x512xf32> to vector<8x512xf32>
    %20 = arith.truncf %15 : vector<8x128xf32> to vector<8x128xbf16>
    %cst_12 = arith.constant dense<0.000000e+00> : vector<8x512xf32>
    %21 = tpu.matmul %20, %3, %cst_12 {dimension_numbers = #tpu.dot_dimension_numbers<[1], [0], [0], [1], [0, 0, 1, 1], [], []>} : vector<8x128xbf16>, vector<128x512xbf16>, vector<8x512xf32> -> vector<8x512xf32>
    %22 = arith.addf %19, %21 : vector<8x512xf32>
    %23 = math.tanh %22 : vector<8x512xf32>
    %24 = vector.extract_strided_slice %23 {offsets = [0, 0], sizes = [8, 128], strides = [1, 1]} : vector<8x512xf32> to vector<8x128xf32>
    %cst_13 = arith.constant 1.000000e+00 : f32
    %25 = vector.broadcast %cst_13 : f32 to vector<8x128xf32>
    %26 = arith.addf %24, %25 : vector<8x128xf32>
    %cst_14 = arith.constant 5.000000e-01 : f32
    %27 = vector.broadcast %cst_14 : f32 to vector<8x128xf32>
    %28 = arith.mulf %27, %26 : vector<8x128xf32>
    %29 = vector.extract_strided_slice %23 {offsets = [0, 128], sizes = [8, 128], strides = [1, 1]} : vector<8x512xf32> to vector<8x128xf32>
    %cst_15 = arith.constant 1.000000e+00 : f32
    %30 = vector.broadcast %cst_15 : f32 to vector<8x128xf32>
    %31 = arith.addf %29, %30 : vector<8x128xf32>
    %cst_16 = arith.constant 5.000000e-01 : f32
    %32 = vector.broadcast %cst_16 : f32 to vector<8x128xf32>
    %33 = arith.mulf %32, %31 : vector<8x128xf32>
    %34 = vector.extract_strided_slice %23 {offsets = [0, 256], sizes = [8, 128], strides = [1, 1]} : vector<8x512xf32> to vector<8x128xf32>
    %35 = vector.extract_strided_slice %23 {offsets = [0, 384], sizes = [8, 128], strides = [1, 1]} : vector<8x512xf32> to vector<8x128xf32>
    %cst_17 = arith.constant 1.000000e+00 : f32
    %36 = vector.broadcast %cst_17 : f32 to vector<8x128xf32>
    %37 = arith.addf %35, %36 : vector<8x128xf32>
    %cst_18 = arith.constant 5.000000e-01 : f32
    %38 = vector.broadcast %cst_18 : f32 to vector<8x128xf32>
    %39 = arith.mulf %38, %37 : vector<8x128xf32>
    %40 = arith.mulf %33, %17 : vector<8x128xf32>
    %41 = arith.mulf %28, %34 : vector<8x128xf32>
    %42 = arith.addf %40, %41 : vector<8x128xf32>
    %43 = math.tanh %42 : vector<8x128xf32>
    %44 = arith.mulf %39, %43 : vector<8x128xf32>
    %45 = vector.extract_strided_slice %14 {offsets = [8, 0], sizes = [8, 512], strides = [1, 1]} : vector<64x512xf32> to vector<8x512xf32>
    %46 = arith.truncf %44 : vector<8x128xf32> to vector<8x128xbf16>
    %cst_19 = arith.constant dense<0.000000e+00> : vector<8x512xf32>
    %47 = tpu.matmul %46, %3, %cst_19 {dimension_numbers = #tpu.dot_dimension_numbers<[1], [0], [0], [1], [0, 0, 1, 1], [], []>} : vector<8x128xbf16>, vector<128x512xbf16>, vector<8x512xf32> -> vector<8x512xf32>
    %48 = arith.addf %45, %47 : vector<8x512xf32>
    %49 = math.tanh %48 : vector<8x512xf32>
    %50 = vector.extract_strided_slice %49 {offsets = [0, 0], sizes = [8, 128], strides = [1, 1]} : vector<8x512xf32> to vector<8x128xf32>
    %cst_20 = arith.constant 1.000000e+00 : f32
    %51 = vector.broadcast %cst_20 : f32 to vector<8x128xf32>
    %52 = arith.addf %50, %51 : vector<8x128xf32>
    %cst_21 = arith.constant 5.000000e-01 : f32
    %53 = vector.broadcast %cst_21 : f32 to vector<8x128xf32>
    %54 = arith.mulf %53, %52 : vector<8x128xf32>
    %55 = vector.extract_strided_slice %49 {offsets = [0, 128], sizes = [8, 128], strides = [1, 1]} : vector<8x512xf32> to vector<8x128xf32>
    %cst_22 = arith.constant 1.000000e+00 : f32
    %56 = vector.broadcast %cst_22 : f32 to vector<8x128xf32>
    %57 = arith.addf %55, %56 : vector<8x128xf32>
    %cst_23 = arith.constant 5.000000e-01 : f32
    %58 = vector.broadcast %cst_23 : f32 to vector<8x128xf32>
    %59 = arith.mulf %58, %57 : vector<8x128xf32>
    %60 = vector.extract_strided_slice %49 {offsets = [0, 256], sizes = [8, 128], strides = [1, 1]} : vector<8x512xf32> to vector<8x128xf32>
    %61 = vector.extract_strided_slice %49 {offsets = [0, 384], sizes = [8, 128], strides = [1, 1]} : vector<8x512xf32> to vector<8x128xf32>
    %cst_24 = arith.constant 1.000000e+00 : f32
    %62 = vector.broadcast %cst_24 : f32 to vector<8x128xf32>
    %63 = arith.addf %61, %62 : vector<8x128xf32>
    %cst_25 = arith.constant 5.000000e-01 : f32
    %64 = vector.broadcast %cst_25 : f32 to vector<8x128xf32>
    %65 = arith.mulf %64, %63 : vector<8x128xf32>
    %66 = arith.mulf %59, %42 : vector<8x128xf32>
    %67 = arith.mulf %54, %60 : vector<8x128xf32>
    %68 = arith.addf %66, %67 : vector<8x128xf32>
    %69 = math.tanh %68 : vector<8x128xf32>
    %70 = arith.mulf %65, %69 : vector<8x128xf32>
    %71 = arith.truncf %44 : vector<8x128xf32> to vector<8x128xbf16>
    %cst_26 = arith.constant dense<0.000000e+00> : vector<8x512xf32>
    %72 = tpu.matmul %71, %6, %cst_26 {dimension_numbers = #tpu.dot_dimension_numbers<[1], [0], [0], [1], [0, 0, 1, 1], [], []>} : vector<8x128xbf16>, vector<128x512xbf16>, vector<8x512xf32> -> vector<8x512xf32>
    %73 = vector.broadcast %9 : vector<1x512xf32> to vector<8x512xf32>
    %74 = arith.addf %72, %73 : vector<8x512xf32>
    %75 = arith.truncf %16 : vector<8x128xf32> to vector<8x128xbf16>
    %cst_27 = arith.constant dense<0.000000e+00> : vector<8x512xf32>
    %76 = tpu.matmul %75, %8, %cst_27 {dimension_numbers = #tpu.dot_dimension_numbers<[1], [0], [0], [1], [0, 0, 1, 1], [], []>} : vector<8x128xbf16>, vector<128x512xbf16>, vector<8x512xf32> -> vector<8x512xf32>
    %77 = arith.addf %74, %76 : vector<8x512xf32>
    %78 = math.tanh %77 : vector<8x512xf32>
    %79 = vector.extract_strided_slice %78 {offsets = [0, 0], sizes = [8, 128], strides = [1, 1]} : vector<8x512xf32> to vector<8x128xf32>
    %cst_28 = arith.constant 1.000000e+00 : f32
    %80 = vector.broadcast %cst_28 : f32 to vector<8x128xf32>
    %81 = arith.addf %79, %80 : vector<8x128xf32>
    %cst_29 = arith.constant 5.000000e-01 : f32
    %82 = vector.broadcast %cst_29 : f32 to vector<8x128xf32>
    %83 = arith.mulf %82, %81 : vector<8x128xf32>
    %84 = vector.extract_strided_slice %78 {offsets = [0, 128], sizes = [8, 128], strides = [1, 1]} : vector<8x512xf32> to vector<8x128xf32>
    %cst_30 = arith.constant 1.000000e+00 : f32
    %85 = vector.broadcast %cst_30 : f32 to vector<8x128xf32>
    %86 = arith.addf %84, %85 : vector<8x128xf32>
    %cst_31 = arith.constant 5.000000e-01 : f32
    %87 = vector.broadcast %cst_31 : f32 to vector<8x128xf32>
    %88 = arith.mulf %87, %86 : vector<8x128xf32>
    %89 = vector.extract_strided_slice %78 {offsets = [0, 256], sizes = [8, 128], strides = [1, 1]} : vector<8x512xf32> to vector<8x128xf32>
    %90 = vector.extract_strided_slice %78 {offsets = [0, 384], sizes = [8, 128], strides = [1, 1]} : vector<8x512xf32> to vector<8x128xf32>
    %cst_32 = arith.constant 1.000000e+00 : f32
    %91 = vector.broadcast %cst_32 : f32 to vector<8x128xf32>
    %92 = arith.addf %90, %91 : vector<8x128xf32>
    %cst_33 = arith.constant 5.000000e-01 : f32
    %93 = vector.broadcast %cst_33 : f32 to vector<8x128xf32>
    %94 = arith.mulf %93, %92 : vector<8x128xf32>
    %95 = arith.mulf %88, %18 : vector<8x128xf32>
    %96 = arith.mulf %83, %89 : vector<8x128xf32>
    %97 = arith.addf %95, %96 : vector<8x128xf32>
    %98 = math.tanh %97 : vector<8x128xf32>
    %99 = arith.mulf %94, %98 : vector<8x128xf32>
    %100 = vector.extract_strided_slice %14 {offsets = [16, 0], sizes = [8, 512], strides = [1, 1]} : vector<64x512xf32> to vector<8x512xf32>
    %101 = arith.truncf %70 : vector<8x128xf32> to vector<8x128xbf16>
    %cst_34 = arith.constant dense<0.000000e+00> : vector<8x512xf32>
    %102 = tpu.matmul %101, %3, %cst_34 {dimension_numbers = #tpu.dot_dimension_numbers<[1], [0], [0], [1], [0, 0, 1, 1], [], []>} : vector<8x128xbf16>, vector<128x512xbf16>, vector<8x512xf32> -> vector<8x512xf32>
    %103 = arith.addf %100, %102 : vector<8x512xf32>
    %104 = math.tanh %103 : vector<8x512xf32>
    %105 = vector.extract_strided_slice %104 {offsets = [0, 0], sizes = [8, 128], strides = [1, 1]} : vector<8x512xf32> to vector<8x128xf32>
    %cst_35 = arith.constant 1.000000e+00 : f32
    %106 = vector.broadcast %cst_35 : f32 to vector<8x128xf32>
    %107 = arith.addf %105, %106 : vector<8x128xf32>
    %cst_36 = arith.constant 5.000000e-01 : f32
    %108 = vector.broadcast %cst_36 : f32 to vector<8x128xf32>
    %109 = arith.mulf %108, %107 : vector<8x128xf32>
    %110 = vector.extract_strided_slice %104 {offsets = [0, 128], sizes = [8, 128], strides = [1, 1]} : vector<8x512xf32> to vector<8x128xf32>
    %cst_37 = arith.constant 1.000000e+00 : f32
    %111 = vector.broadcast %cst_37 : f32 to vector<8x128xf32>
    %112 = arith.addf %110, %111 : vector<8x128xf32>
    %cst_38 = arith.constant 5.000000e-01 : f32
    %113 = vector.broadcast %cst_38 : f32 to vector<8x128xf32>
    %114 = arith.mulf %113, %112 : vector<8x128xf32>
    %115 = vector.extract_strided_slice %104 {offsets = [0, 256], sizes = [8, 128], strides = [1, 1]} : vector<8x512xf32> to vector<8x128xf32>
    %116 = vector.extract_strided_slice %104 {offsets = [0, 384], sizes = [8, 128], strides = [1, 1]} : vector<8x512xf32> to vector<8x128xf32>
    %cst_39 = arith.constant 1.000000e+00 : f32
    %117 = vector.broadcast %cst_39 : f32 to vector<8x128xf32>
    %118 = arith.addf %116, %117 : vector<8x128xf32>
    %cst_40 = arith.constant 5.000000e-01 : f32
    %119 = vector.broadcast %cst_40 : f32 to vector<8x128xf32>
    %120 = arith.mulf %119, %118 : vector<8x128xf32>
    %121 = arith.mulf %114, %68 : vector<8x128xf32>
    %122 = arith.mulf %109, %115 : vector<8x128xf32>
    %123 = arith.addf %121, %122 : vector<8x128xf32>
    %124 = math.tanh %123 : vector<8x128xf32>
    %125 = arith.mulf %120, %124 : vector<8x128xf32>
    %126 = arith.truncf %70 : vector<8x128xf32> to vector<8x128xbf16>
    %cst_41 = arith.constant dense<0.000000e+00> : vector<8x512xf32>
    %127 = tpu.matmul %126, %6, %cst_41 {dimension_numbers = #tpu.dot_dimension_numbers<[1], [0], [0], [1], [0, 0, 1, 1], [], []>} : vector<8x128xbf16>, vector<128x512xbf16>, vector<8x512xf32> -> vector<8x512xf32>
    %128 = vector.broadcast %9 : vector<1x512xf32> to vector<8x512xf32>
    %129 = arith.addf %127, %128 : vector<8x512xf32>
    %130 = arith.truncf %99 : vector<8x128xf32> to vector<8x128xbf16>
    %cst_42 = arith.constant dense<0.000000e+00> : vector<8x512xf32>
    %131 = tpu.matmul %130, %8, %cst_42 {dimension_numbers = #tpu.dot_dimension_numbers<[1], [0], [0], [1], [0, 0, 1, 1], [], []>} : vector<8x128xbf16>, vector<128x512xbf16>, vector<8x512xf32> -> vector<8x512xf32>
    %132 = arith.addf %129, %131 : vector<8x512xf32>
    %133 = math.tanh %132 : vector<8x512xf32>
    %134 = vector.extract_strided_slice %133 {offsets = [0, 0], sizes = [8, 128], strides = [1, 1]} : vector<8x512xf32> to vector<8x128xf32>
    %cst_43 = arith.constant 1.000000e+00 : f32
    %135 = vector.broadcast %cst_43 : f32 to vector<8x128xf32>
    %136 = arith.addf %134, %135 : vector<8x128xf32>
    %cst_44 = arith.constant 5.000000e-01 : f32
    %137 = vector.broadcast %cst_44 : f32 to vector<8x128xf32>
    %138 = arith.mulf %137, %136 : vector<8x128xf32>
    %139 = vector.extract_strided_slice %133 {offsets = [0, 128], sizes = [8, 128], strides = [1, 1]} : vector<8x512xf32> to vector<8x128xf32>
    %cst_45 = arith.constant 1.000000e+00 : f32
    %140 = vector.broadcast %cst_45 : f32 to vector<8x128xf32>
    %141 = arith.addf %139, %140 : vector<8x128xf32>
    %cst_46 = arith.constant 5.000000e-01 : f32
    %142 = vector.broadcast %cst_46 : f32 to vector<8x128xf32>
    %143 = arith.mulf %142, %141 : vector<8x128xf32>
    %144 = vector.extract_strided_slice %133 {offsets = [0, 256], sizes = [8, 128], strides = [1, 1]} : vector<8x512xf32> to vector<8x128xf32>
    %145 = vector.extract_strided_slice %133 {offsets = [0, 384], sizes = [8, 128], strides = [1, 1]} : vector<8x512xf32> to vector<8x128xf32>
    %cst_47 = arith.constant 1.000000e+00 : f32
    %146 = vector.broadcast %cst_47 : f32 to vector<8x128xf32>
    %147 = arith.addf %145, %146 : vector<8x128xf32>
    %cst_48 = arith.constant 5.000000e-01 : f32
    %148 = vector.broadcast %cst_48 : f32 to vector<8x128xf32>
    %149 = arith.mulf %148, %147 : vector<8x128xf32>
    %150 = arith.mulf %143, %97 : vector<8x128xf32>
    %151 = arith.mulf %138, %144 : vector<8x128xf32>
    %152 = arith.addf %150, %151 : vector<8x128xf32>
    %153 = math.tanh %152 : vector<8x128xf32>
    %154 = arith.mulf %149, %153 : vector<8x128xf32>
    %155 = vector.extract_strided_slice %14 {offsets = [24, 0], sizes = [8, 512], strides = [1, 1]} : vector<64x512xf32> to vector<8x512xf32>
    %156 = arith.truncf %125 : vector<8x128xf32> to vector<8x128xbf16>
    %cst_49 = arith.constant dense<0.000000e+00> : vector<8x512xf32>
    %157 = tpu.matmul %156, %3, %cst_49 {dimension_numbers = #tpu.dot_dimension_numbers<[1], [0], [0], [1], [0, 0, 1, 1], [], []>} : vector<8x128xbf16>, vector<128x512xbf16>, vector<8x512xf32> -> vector<8x512xf32>
    %158 = arith.addf %155, %157 : vector<8x512xf32>
    %159 = math.tanh %158 : vector<8x512xf32>
    %160 = vector.extract_strided_slice %159 {offsets = [0, 0], sizes = [8, 128], strides = [1, 1]} : vector<8x512xf32> to vector<8x128xf32>
    %cst_50 = arith.constant 1.000000e+00 : f32
    %161 = vector.broadcast %cst_50 : f32 to vector<8x128xf32>
    %162 = arith.addf %160, %161 : vector<8x128xf32>
    %cst_51 = arith.constant 5.000000e-01 : f32
    %163 = vector.broadcast %cst_51 : f32 to vector<8x128xf32>
    %164 = arith.mulf %163, %162 : vector<8x128xf32>
    %165 = vector.extract_strided_slice %159 {offsets = [0, 128], sizes = [8, 128], strides = [1, 1]} : vector<8x512xf32> to vector<8x128xf32>
    %cst_52 = arith.constant 1.000000e+00 : f32
    %166 = vector.broadcast %cst_52 : f32 to vector<8x128xf32>
    %167 = arith.addf %165, %166 : vector<8x128xf32>
    %cst_53 = arith.constant 5.000000e-01 : f32
    %168 = vector.broadcast %cst_53 : f32 to vector<8x128xf32>
    %169 = arith.mulf %168, %167 : vector<8x128xf32>
    %170 = vector.extract_strided_slice %159 {offsets = [0, 256], sizes = [8, 128], strides = [1, 1]} : vector<8x512xf32> to vector<8x128xf32>
    %171 = vector.extract_strided_slice %159 {offsets = [0, 384], sizes = [8, 128], strides = [1, 1]} : vector<8x512xf32> to vector<8x128xf32>
    %cst_54 = arith.constant 1.000000e+00 : f32
    %172 = vector.broadcast %cst_54 : f32 to vector<8x128xf32>
    %173 = arith.addf %171, %172 : vector<8x128xf32>
    %cst_55 = arith.constant 5.000000e-01 : f32
    %174 = vector.broadcast %cst_55 : f32 to vector<8x128xf32>
    %175 = arith.mulf %174, %173 : vector<8x128xf32>
    %176 = arith.mulf %169, %123 : vector<8x128xf32>
    %177 = arith.mulf %164, %170 : vector<8x128xf32>
    %178 = arith.addf %176, %177 : vector<8x128xf32>
    %179 = math.tanh %178 : vector<8x128xf32>
    %180 = arith.mulf %175, %179 : vector<8x128xf32>
    %181 = arith.truncf %125 : vector<8x128xf32> to vector<8x128xbf16>
    %cst_56 = arith.constant dense<0.000000e+00> : vector<8x512xf32>
    %182 = tpu.matmul %181, %6, %cst_56 {dimension_numbers = #tpu.dot_dimension_numbers<[1], [0], [0], [1], [0, 0, 1, 1], [], []>} : vector<8x128xbf16>, vector<128x512xbf16>, vector<8x512xf32> -> vector<8x512xf32>
    %183 = vector.broadcast %9 : vector<1x512xf32> to vector<8x512xf32>
    %184 = arith.addf %182, %183 : vector<8x512xf32>
    %185 = arith.truncf %154 : vector<8x128xf32> to vector<8x128xbf16>
    %cst_57 = arith.constant dense<0.000000e+00> : vector<8x512xf32>
    %186 = tpu.matmul %185, %8, %cst_57 {dimension_numbers = #tpu.dot_dimension_numbers<[1], [0], [0], [1], [0, 0, 1, 1], [], []>} : vector<8x128xbf16>, vector<128x512xbf16>, vector<8x512xf32> -> vector<8x512xf32>
    %187 = arith.addf %184, %186 : vector<8x512xf32>
    %188 = math.tanh %187 : vector<8x512xf32>
    %189 = vector.extract_strided_slice %188 {offsets = [0, 0], sizes = [8, 128], strides = [1, 1]} : vector<8x512xf32> to vector<8x128xf32>
    %cst_58 = arith.constant 1.000000e+00 : f32
    %190 = vector.broadcast %cst_58 : f32 to vector<8x128xf32>
    %191 = arith.addf %189, %190 : vector<8x128xf32>
    %cst_59 = arith.constant 5.000000e-01 : f32
    %192 = vector.broadcast %cst_59 : f32 to vector<8x128xf32>
    %193 = arith.mulf %192, %191 : vector<8x128xf32>
    %194 = vector.extract_strided_slice %188 {offsets = [0, 128], sizes = [8, 128], strides = [1, 1]} : vector<8x512xf32> to vector<8x128xf32>
    %cst_60 = arith.constant 1.000000e+00 : f32
    %195 = vector.broadcast %cst_60 : f32 to vector<8x128xf32>
    %196 = arith.addf %194, %195 : vector<8x128xf32>
    %cst_61 = arith.constant 5.000000e-01 : f32
    %197 = vector.broadcast %cst_61 : f32 to vector<8x128xf32>
    %198 = arith.mulf %197, %196 : vector<8x128xf32>
    %199 = vector.extract_strided_slice %188 {offsets = [0, 256], sizes = [8, 128], strides = [1, 1]} : vector<8x512xf32> to vector<8x128xf32>
    %200 = vector.extract_strided_slice %188 {offsets = [0, 384], sizes = [8, 128], strides = [1, 1]} : vector<8x512xf32> to vector<8x128xf32>
    %cst_62 = arith.constant 1.000000e+00 : f32
    %201 = vector.broadcast %cst_62 : f32 to vector<8x128xf32>
    %202 = arith.addf %200, %201 : vector<8x128xf32>
    %cst_63 = arith.constant 5.000000e-01 : f32
    %203 = vector.broadcast %cst_63 : f32 to vector<8x128xf32>
    %204 = arith.mulf %203, %202 : vector<8x128xf32>
    %205 = arith.mulf %198, %152 : vector<8x128xf32>
    %206 = arith.mulf %193, %199 : vector<8x128xf32>
    %207 = arith.addf %205, %206 : vector<8x128xf32>
    %208 = math.tanh %207 : vector<8x128xf32>
    %209 = arith.mulf %204, %208 : vector<8x128xf32>
    %210 = vector.extract_strided_slice %14 {offsets = [32, 0], sizes = [8, 512], strides = [1, 1]} : vector<64x512xf32> to vector<8x512xf32>
    %211 = arith.truncf %180 : vector<8x128xf32> to vector<8x128xbf16>
    %cst_64 = arith.constant dense<0.000000e+00> : vector<8x512xf32>
    %212 = tpu.matmul %211, %3, %cst_64 {dimension_numbers = #tpu.dot_dimension_numbers<[1], [0], [0], [1], [0, 0, 1, 1], [], []>} : vector<8x128xbf16>, vector<128x512xbf16>, vector<8x512xf32> -> vector<8x512xf32>
    %213 = arith.addf %210, %212 : vector<8x512xf32>
    %214 = math.tanh %213 : vector<8x512xf32>
    %215 = vector.extract_strided_slice %214 {offsets = [0, 0], sizes = [8, 128], strides = [1, 1]} : vector<8x512xf32> to vector<8x128xf32>
    %cst_65 = arith.constant 1.000000e+00 : f32
    %216 = vector.broadcast %cst_65 : f32 to vector<8x128xf32>
    %217 = arith.addf %215, %216 : vector<8x128xf32>
    %cst_66 = arith.constant 5.000000e-01 : f32
    %218 = vector.broadcast %cst_66 : f32 to vector<8x128xf32>
    %219 = arith.mulf %218, %217 : vector<8x128xf32>
    %220 = vector.extract_strided_slice %214 {offsets = [0, 128], sizes = [8, 128], strides = [1, 1]} : vector<8x512xf32> to vector<8x128xf32>
    %cst_67 = arith.constant 1.000000e+00 : f32
    %221 = vector.broadcast %cst_67 : f32 to vector<8x128xf32>
    %222 = arith.addf %220, %221 : vector<8x128xf32>
    %cst_68 = arith.constant 5.000000e-01 : f32
    %223 = vector.broadcast %cst_68 : f32 to vector<8x128xf32>
    %224 = arith.mulf %223, %222 : vector<8x128xf32>
    %225 = vector.extract_strided_slice %214 {offsets = [0, 256], sizes = [8, 128], strides = [1, 1]} : vector<8x512xf32> to vector<8x128xf32>
    %226 = vector.extract_strided_slice %214 {offsets = [0, 384], sizes = [8, 128], strides = [1, 1]} : vector<8x512xf32> to vector<8x128xf32>
    %cst_69 = arith.constant 1.000000e+00 : f32
    %227 = vector.broadcast %cst_69 : f32 to vector<8x128xf32>
    %228 = arith.addf %226, %227 : vector<8x128xf32>
    %cst_70 = arith.constant 5.000000e-01 : f32
    %229 = vector.broadcast %cst_70 : f32 to vector<8x128xf32>
    %230 = arith.mulf %229, %228 : vector<8x128xf32>
    %231 = arith.mulf %224, %178 : vector<8x128xf32>
    %232 = arith.mulf %219, %225 : vector<8x128xf32>
    %233 = arith.addf %231, %232 : vector<8x128xf32>
    %234 = math.tanh %233 : vector<8x128xf32>
    %235 = arith.mulf %230, %234 : vector<8x128xf32>
    %236 = arith.truncf %180 : vector<8x128xf32> to vector<8x128xbf16>
    %cst_71 = arith.constant dense<0.000000e+00> : vector<8x512xf32>
    %237 = tpu.matmul %236, %6, %cst_71 {dimension_numbers = #tpu.dot_dimension_numbers<[1], [0], [0], [1], [0, 0, 1, 1], [], []>} : vector<8x128xbf16>, vector<128x512xbf16>, vector<8x512xf32> -> vector<8x512xf32>
    %238 = vector.broadcast %9 : vector<1x512xf32> to vector<8x512xf32>
    %239 = arith.addf %237, %238 : vector<8x512xf32>
    %240 = arith.truncf %209 : vector<8x128xf32> to vector<8x128xbf16>
    %cst_72 = arith.constant dense<0.000000e+00> : vector<8x512xf32>
    %241 = tpu.matmul %240, %8, %cst_72 {dimension_numbers = #tpu.dot_dimension_numbers<[1], [0], [0], [1], [0, 0, 1, 1], [], []>} : vector<8x128xbf16>, vector<128x512xbf16>, vector<8x512xf32> -> vector<8x512xf32>
    %242 = arith.addf %239, %241 : vector<8x512xf32>
    %243 = math.tanh %242 : vector<8x512xf32>
    %244 = vector.extract_strided_slice %243 {offsets = [0, 0], sizes = [8, 128], strides = [1, 1]} : vector<8x512xf32> to vector<8x128xf32>
    %cst_73 = arith.constant 1.000000e+00 : f32
    %245 = vector.broadcast %cst_73 : f32 to vector<8x128xf32>
    %246 = arith.addf %244, %245 : vector<8x128xf32>
    %cst_74 = arith.constant 5.000000e-01 : f32
    %247 = vector.broadcast %cst_74 : f32 to vector<8x128xf32>
    %248 = arith.mulf %247, %246 : vector<8x128xf32>
    %249 = vector.extract_strided_slice %243 {offsets = [0, 128], sizes = [8, 128], strides = [1, 1]} : vector<8x512xf32> to vector<8x128xf32>
    %cst_75 = arith.constant 1.000000e+00 : f32
    %250 = vector.broadcast %cst_75 : f32 to vector<8x128xf32>
    %251 = arith.addf %249, %250 : vector<8x128xf32>
    %cst_76 = arith.constant 5.000000e-01 : f32
    %252 = vector.broadcast %cst_76 : f32 to vector<8x128xf32>
    %253 = arith.mulf %252, %251 : vector<8x128xf32>
    %254 = vector.extract_strided_slice %243 {offsets = [0, 256], sizes = [8, 128], strides = [1, 1]} : vector<8x512xf32> to vector<8x128xf32>
    %255 = vector.extract_strided_slice %243 {offsets = [0, 384], sizes = [8, 128], strides = [1, 1]} : vector<8x512xf32> to vector<8x128xf32>
    %cst_77 = arith.constant 1.000000e+00 : f32
    %256 = vector.broadcast %cst_77 : f32 to vector<8x128xf32>
    %257 = arith.addf %255, %256 : vector<8x128xf32>
    %cst_78 = arith.constant 5.000000e-01 : f32
    %258 = vector.broadcast %cst_78 : f32 to vector<8x128xf32>
    %259 = arith.mulf %258, %257 : vector<8x128xf32>
    %260 = arith.mulf %253, %207 : vector<8x128xf32>
    %261 = arith.mulf %248, %254 : vector<8x128xf32>
    %262 = arith.addf %260, %261 : vector<8x128xf32>
    %263 = math.tanh %262 : vector<8x128xf32>
    %264 = arith.mulf %259, %263 : vector<8x128xf32>
    %265 = vector.extract_strided_slice %14 {offsets = [40, 0], sizes = [8, 512], strides = [1, 1]} : vector<64x512xf32> to vector<8x512xf32>
    %266 = arith.truncf %235 : vector<8x128xf32> to vector<8x128xbf16>
    %cst_79 = arith.constant dense<0.000000e+00> : vector<8x512xf32>
    %267 = tpu.matmul %266, %3, %cst_79 {dimension_numbers = #tpu.dot_dimension_numbers<[1], [0], [0], [1], [0, 0, 1, 1], [], []>} : vector<8x128xbf16>, vector<128x512xbf16>, vector<8x512xf32> -> vector<8x512xf32>
    %268 = arith.addf %265, %267 : vector<8x512xf32>
    %269 = math.tanh %268 : vector<8x512xf32>
    %270 = vector.extract_strided_slice %269 {offsets = [0, 0], sizes = [8, 128], strides = [1, 1]} : vector<8x512xf32> to vector<8x128xf32>
    %cst_80 = arith.constant 1.000000e+00 : f32
    %271 = vector.broadcast %cst_80 : f32 to vector<8x128xf32>
    %272 = arith.addf %270, %271 : vector<8x128xf32>
    %cst_81 = arith.constant 5.000000e-01 : f32
    %273 = vector.broadcast %cst_81 : f32 to vector<8x128xf32>
    %274 = arith.mulf %273, %272 : vector<8x128xf32>
    %275 = vector.extract_strided_slice %269 {offsets = [0, 128], sizes = [8, 128], strides = [1, 1]} : vector<8x512xf32> to vector<8x128xf32>
    %cst_82 = arith.constant 1.000000e+00 : f32
    %276 = vector.broadcast %cst_82 : f32 to vector<8x128xf32>
    %277 = arith.addf %275, %276 : vector<8x128xf32>
    %cst_83 = arith.constant 5.000000e-01 : f32
    %278 = vector.broadcast %cst_83 : f32 to vector<8x128xf32>
    %279 = arith.mulf %278, %277 : vector<8x128xf32>
    %280 = vector.extract_strided_slice %269 {offsets = [0, 256], sizes = [8, 128], strides = [1, 1]} : vector<8x512xf32> to vector<8x128xf32>
    %281 = vector.extract_strided_slice %269 {offsets = [0, 384], sizes = [8, 128], strides = [1, 1]} : vector<8x512xf32> to vector<8x128xf32>
    %cst_84 = arith.constant 1.000000e+00 : f32
    %282 = vector.broadcast %cst_84 : f32 to vector<8x128xf32>
    %283 = arith.addf %281, %282 : vector<8x128xf32>
    %cst_85 = arith.constant 5.000000e-01 : f32
    %284 = vector.broadcast %cst_85 : f32 to vector<8x128xf32>
    %285 = arith.mulf %284, %283 : vector<8x128xf32>
    %286 = arith.mulf %279, %233 : vector<8x128xf32>
    %287 = arith.mulf %274, %280 : vector<8x128xf32>
    %288 = arith.addf %286, %287 : vector<8x128xf32>
    %289 = math.tanh %288 : vector<8x128xf32>
    %290 = arith.mulf %285, %289 : vector<8x128xf32>
    %291 = arith.truncf %235 : vector<8x128xf32> to vector<8x128xbf16>
    %cst_86 = arith.constant dense<0.000000e+00> : vector<8x512xf32>
    %292 = tpu.matmul %291, %6, %cst_86 {dimension_numbers = #tpu.dot_dimension_numbers<[1], [0], [0], [1], [0, 0, 1, 1], [], []>} : vector<8x128xbf16>, vector<128x512xbf16>, vector<8x512xf32> -> vector<8x512xf32>
    %293 = vector.broadcast %9 : vector<1x512xf32> to vector<8x512xf32>
    %294 = arith.addf %292, %293 : vector<8x512xf32>
    %295 = arith.truncf %264 : vector<8x128xf32> to vector<8x128xbf16>
    %cst_87 = arith.constant dense<0.000000e+00> : vector<8x512xf32>
    %296 = tpu.matmul %295, %8, %cst_87 {dimension_numbers = #tpu.dot_dimension_numbers<[1], [0], [0], [1], [0, 0, 1, 1], [], []>} : vector<8x128xbf16>, vector<128x512xbf16>, vector<8x512xf32> -> vector<8x512xf32>
    %297 = arith.addf %294, %296 : vector<8x512xf32>
    %298 = math.tanh %297 : vector<8x512xf32>
    %299 = vector.extract_strided_slice %298 {offsets = [0, 0], sizes = [8, 128], strides = [1, 1]} : vector<8x512xf32> to vector<8x128xf32>
    %cst_88 = arith.constant 1.000000e+00 : f32
    %300 = vector.broadcast %cst_88 : f32 to vector<8x128xf32>
    %301 = arith.addf %299, %300 : vector<8x128xf32>
    %cst_89 = arith.constant 5.000000e-01 : f32
    %302 = vector.broadcast %cst_89 : f32 to vector<8x128xf32>
    %303 = arith.mulf %302, %301 : vector<8x128xf32>
    %304 = vector.extract_strided_slice %298 {offsets = [0, 128], sizes = [8, 128], strides = [1, 1]} : vector<8x512xf32> to vector<8x128xf32>
    %cst_90 = arith.constant 1.000000e+00 : f32
    %305 = vector.broadcast %cst_90 : f32 to vector<8x128xf32>
    %306 = arith.addf %304, %305 : vector<8x128xf32>
    %cst_91 = arith.constant 5.000000e-01 : f32
    %307 = vector.broadcast %cst_91 : f32 to vector<8x128xf32>
    %308 = arith.mulf %307, %306 : vector<8x128xf32>
    %309 = vector.extract_strided_slice %298 {offsets = [0, 256], sizes = [8, 128], strides = [1, 1]} : vector<8x512xf32> to vector<8x128xf32>
    %310 = vector.extract_strided_slice %298 {offsets = [0, 384], sizes = [8, 128], strides = [1, 1]} : vector<8x512xf32> to vector<8x128xf32>
    %cst_92 = arith.constant 1.000000e+00 : f32
    %311 = vector.broadcast %cst_92 : f32 to vector<8x128xf32>
    %312 = arith.addf %310, %311 : vector<8x128xf32>
    %cst_93 = arith.constant 5.000000e-01 : f32
    %313 = vector.broadcast %cst_93 : f32 to vector<8x128xf32>
    %314 = arith.mulf %313, %312 : vector<8x128xf32>
    %315 = arith.mulf %308, %262 : vector<8x128xf32>
    %316 = arith.mulf %303, %309 : vector<8x128xf32>
    %317 = arith.addf %315, %316 : vector<8x128xf32>
    %318 = math.tanh %317 : vector<8x128xf32>
    %319 = arith.mulf %314, %318 : vector<8x128xf32>
    %320 = vector.extract_strided_slice %14 {offsets = [48, 0], sizes = [8, 512], strides = [1, 1]} : vector<64x512xf32> to vector<8x512xf32>
    %321 = arith.truncf %290 : vector<8x128xf32> to vector<8x128xbf16>
    %cst_94 = arith.constant dense<0.000000e+00> : vector<8x512xf32>
    %322 = tpu.matmul %321, %3, %cst_94 {dimension_numbers = #tpu.dot_dimension_numbers<[1], [0], [0], [1], [0, 0, 1, 1], [], []>} : vector<8x128xbf16>, vector<128x512xbf16>, vector<8x512xf32> -> vector<8x512xf32>
    %323 = arith.addf %320, %322 : vector<8x512xf32>
    %324 = math.tanh %323 : vector<8x512xf32>
    %325 = vector.extract_strided_slice %324 {offsets = [0, 0], sizes = [8, 128], strides = [1, 1]} : vector<8x512xf32> to vector<8x128xf32>
    %cst_95 = arith.constant 1.000000e+00 : f32
    %326 = vector.broadcast %cst_95 : f32 to vector<8x128xf32>
    %327 = arith.addf %325, %326 : vector<8x128xf32>
    %cst_96 = arith.constant 5.000000e-01 : f32
    %328 = vector.broadcast %cst_96 : f32 to vector<8x128xf32>
    %329 = arith.mulf %328, %327 : vector<8x128xf32>
    %330 = vector.extract_strided_slice %324 {offsets = [0, 128], sizes = [8, 128], strides = [1, 1]} : vector<8x512xf32> to vector<8x128xf32>
    %cst_97 = arith.constant 1.000000e+00 : f32
    %331 = vector.broadcast %cst_97 : f32 to vector<8x128xf32>
    %332 = arith.addf %330, %331 : vector<8x128xf32>
    %cst_98 = arith.constant 5.000000e-01 : f32
    %333 = vector.broadcast %cst_98 : f32 to vector<8x128xf32>
    %334 = arith.mulf %333, %332 : vector<8x128xf32>
    %335 = vector.extract_strided_slice %324 {offsets = [0, 256], sizes = [8, 128], strides = [1, 1]} : vector<8x512xf32> to vector<8x128xf32>
    %336 = vector.extract_strided_slice %324 {offsets = [0, 384], sizes = [8, 128], strides = [1, 1]} : vector<8x512xf32> to vector<8x128xf32>
    %cst_99 = arith.constant 1.000000e+00 : f32
    %337 = vector.broadcast %cst_99 : f32 to vector<8x128xf32>
    %338 = arith.addf %336, %337 : vector<8x128xf32>
    %cst_100 = arith.constant 5.000000e-01 : f32
    %339 = vector.broadcast %cst_100 : f32 to vector<8x128xf32>
    %340 = arith.mulf %339, %338 : vector<8x128xf32>
    %341 = arith.mulf %334, %288 : vector<8x128xf32>
    %342 = arith.mulf %329, %335 : vector<8x128xf32>
    %343 = arith.addf %341, %342 : vector<8x128xf32>
    %344 = math.tanh %343 : vector<8x128xf32>
    %345 = arith.mulf %340, %344 : vector<8x128xf32>
    %346 = arith.truncf %290 : vector<8x128xf32> to vector<8x128xbf16>
    %cst_101 = arith.constant dense<0.000000e+00> : vector<8x512xf32>
    %347 = tpu.matmul %346, %6, %cst_101 {dimension_numbers = #tpu.dot_dimension_numbers<[1], [0], [0], [1], [0, 0, 1, 1], [], []>} : vector<8x128xbf16>, vector<128x512xbf16>, vector<8x512xf32> -> vector<8x512xf32>
    %348 = vector.broadcast %9 : vector<1x512xf32> to vector<8x512xf32>
    %349 = arith.addf %347, %348 : vector<8x512xf32>
    %350 = arith.truncf %319 : vector<8x128xf32> to vector<8x128xbf16>
    %cst_102 = arith.constant dense<0.000000e+00> : vector<8x512xf32>
    %351 = tpu.matmul %350, %8, %cst_102 {dimension_numbers = #tpu.dot_dimension_numbers<[1], [0], [0], [1], [0, 0, 1, 1], [], []>} : vector<8x128xbf16>, vector<128x512xbf16>, vector<8x512xf32> -> vector<8x512xf32>
    %352 = arith.addf %349, %351 : vector<8x512xf32>
    %353 = math.tanh %352 : vector<8x512xf32>
    %354 = vector.extract_strided_slice %353 {offsets = [0, 0], sizes = [8, 128], strides = [1, 1]} : vector<8x512xf32> to vector<8x128xf32>
    %cst_103 = arith.constant 1.000000e+00 : f32
    %355 = vector.broadcast %cst_103 : f32 to vector<8x128xf32>
    %356 = arith.addf %354, %355 : vector<8x128xf32>
    %cst_104 = arith.constant 5.000000e-01 : f32
    %357 = vector.broadcast %cst_104 : f32 to vector<8x128xf32>
    %358 = arith.mulf %357, %356 : vector<8x128xf32>
    %359 = vector.extract_strided_slice %353 {offsets = [0, 128], sizes = [8, 128], strides = [1, 1]} : vector<8x512xf32> to vector<8x128xf32>
    %cst_105 = arith.constant 1.000000e+00 : f32
    %360 = vector.broadcast %cst_105 : f32 to vector<8x128xf32>
    %361 = arith.addf %359, %360 : vector<8x128xf32>
    %cst_106 = arith.constant 5.000000e-01 : f32
    %362 = vector.broadcast %cst_106 : f32 to vector<8x128xf32>
    %363 = arith.mulf %362, %361 : vector<8x128xf32>
    %364 = vector.extract_strided_slice %353 {offsets = [0, 256], sizes = [8, 128], strides = [1, 1]} : vector<8x512xf32> to vector<8x128xf32>
    %365 = vector.extract_strided_slice %353 {offsets = [0, 384], sizes = [8, 128], strides = [1, 1]} : vector<8x512xf32> to vector<8x128xf32>
    %cst_107 = arith.constant 1.000000e+00 : f32
    %366 = vector.broadcast %cst_107 : f32 to vector<8x128xf32>
    %367 = arith.addf %365, %366 : vector<8x128xf32>
    %cst_108 = arith.constant 5.000000e-01 : f32
    %368 = vector.broadcast %cst_108 : f32 to vector<8x128xf32>
    %369 = arith.mulf %368, %367 : vector<8x128xf32>
    %370 = arith.mulf %363, %317 : vector<8x128xf32>
    %371 = arith.mulf %358, %364 : vector<8x128xf32>
    %372 = arith.addf %370, %371 : vector<8x128xf32>
    %373 = math.tanh %372 : vector<8x128xf32>
    %374 = arith.mulf %369, %373 : vector<8x128xf32>
    %375 = vector.extract_strided_slice %14 {offsets = [56, 0], sizes = [8, 512], strides = [1, 1]} : vector<64x512xf32> to vector<8x512xf32>
    %376 = arith.truncf %345 : vector<8x128xf32> to vector<8x128xbf16>
    %cst_109 = arith.constant dense<0.000000e+00> : vector<8x512xf32>
    %377 = tpu.matmul %376, %3, %cst_109 {dimension_numbers = #tpu.dot_dimension_numbers<[1], [0], [0], [1], [0, 0, 1, 1], [], []>} : vector<8x128xbf16>, vector<128x512xbf16>, vector<8x512xf32> -> vector<8x512xf32>
    %378 = arith.addf %375, %377 : vector<8x512xf32>
    %379 = math.tanh %378 : vector<8x512xf32>
    %380 = vector.extract_strided_slice %379 {offsets = [0, 0], sizes = [8, 128], strides = [1, 1]} : vector<8x512xf32> to vector<8x128xf32>
    %cst_110 = arith.constant 1.000000e+00 : f32
    %381 = vector.broadcast %cst_110 : f32 to vector<8x128xf32>
    %382 = arith.addf %380, %381 : vector<8x128xf32>
    %cst_111 = arith.constant 5.000000e-01 : f32
    %383 = vector.broadcast %cst_111 : f32 to vector<8x128xf32>
    %384 = arith.mulf %383, %382 : vector<8x128xf32>
    %385 = vector.extract_strided_slice %379 {offsets = [0, 128], sizes = [8, 128], strides = [1, 1]} : vector<8x512xf32> to vector<8x128xf32>
    %cst_112 = arith.constant 1.000000e+00 : f32
    %386 = vector.broadcast %cst_112 : f32 to vector<8x128xf32>
    %387 = arith.addf %385, %386 : vector<8x128xf32>
    %cst_113 = arith.constant 5.000000e-01 : f32
    %388 = vector.broadcast %cst_113 : f32 to vector<8x128xf32>
    %389 = arith.mulf %388, %387 : vector<8x128xf32>
    %390 = vector.extract_strided_slice %379 {offsets = [0, 256], sizes = [8, 128], strides = [1, 1]} : vector<8x512xf32> to vector<8x128xf32>
    %391 = vector.extract_strided_slice %379 {offsets = [0, 384], sizes = [8, 128], strides = [1, 1]} : vector<8x512xf32> to vector<8x128xf32>
    %cst_114 = arith.constant 1.000000e+00 : f32
    %392 = vector.broadcast %cst_114 : f32 to vector<8x128xf32>
    %393 = arith.addf %391, %392 : vector<8x128xf32>
    %cst_115 = arith.constant 5.000000e-01 : f32
    %394 = vector.broadcast %cst_115 : f32 to vector<8x128xf32>
    %395 = arith.mulf %394, %393 : vector<8x128xf32>
    %396 = arith.mulf %389, %343 : vector<8x128xf32>
    %397 = arith.mulf %384, %390 : vector<8x128xf32>
    %398 = arith.addf %396, %397 : vector<8x128xf32>
    %399 = math.tanh %398 : vector<8x128xf32>
    %400 = arith.mulf %395, %399 : vector<8x128xf32>
    %401 = arith.truncf %345 : vector<8x128xf32> to vector<8x128xbf16>
    %cst_116 = arith.constant dense<0.000000e+00> : vector<8x512xf32>
    %402 = tpu.matmul %401, %6, %cst_116 {dimension_numbers = #tpu.dot_dimension_numbers<[1], [0], [0], [1], [0, 0, 1, 1], [], []>} : vector<8x128xbf16>, vector<128x512xbf16>, vector<8x512xf32> -> vector<8x512xf32>
    %403 = vector.broadcast %9 : vector<1x512xf32> to vector<8x512xf32>
    %404 = arith.addf %402, %403 : vector<8x512xf32>
    %405 = arith.truncf %374 : vector<8x128xf32> to vector<8x128xbf16>
    %cst_117 = arith.constant dense<0.000000e+00> : vector<8x512xf32>
    %406 = tpu.matmul %405, %8, %cst_117 {dimension_numbers = #tpu.dot_dimension_numbers<[1], [0], [0], [1], [0, 0, 1, 1], [], []>} : vector<8x128xbf16>, vector<128x512xbf16>, vector<8x512xf32> -> vector<8x512xf32>
    %407 = arith.addf %404, %406 : vector<8x512xf32>
    %408 = math.tanh %407 : vector<8x512xf32>
    %409 = vector.extract_strided_slice %408 {offsets = [0, 0], sizes = [8, 128], strides = [1, 1]} : vector<8x512xf32> to vector<8x128xf32>
    %cst_118 = arith.constant 1.000000e+00 : f32
    %410 = vector.broadcast %cst_118 : f32 to vector<8x128xf32>
    %411 = arith.addf %409, %410 : vector<8x128xf32>
    %cst_119 = arith.constant 5.000000e-01 : f32
    %412 = vector.broadcast %cst_119 : f32 to vector<8x128xf32>
    %413 = arith.mulf %412, %411 : vector<8x128xf32>
    %414 = vector.extract_strided_slice %408 {offsets = [0, 128], sizes = [8, 128], strides = [1, 1]} : vector<8x512xf32> to vector<8x128xf32>
    %cst_120 = arith.constant 1.000000e+00 : f32
    %415 = vector.broadcast %cst_120 : f32 to vector<8x128xf32>
    %416 = arith.addf %414, %415 : vector<8x128xf32>
    %cst_121 = arith.constant 5.000000e-01 : f32
    %417 = vector.broadcast %cst_121 : f32 to vector<8x128xf32>
    %418 = arith.mulf %417, %416 : vector<8x128xf32>
    %419 = vector.extract_strided_slice %408 {offsets = [0, 256], sizes = [8, 128], strides = [1, 1]} : vector<8x512xf32> to vector<8x128xf32>
    %420 = vector.extract_strided_slice %408 {offsets = [0, 384], sizes = [8, 128], strides = [1, 1]} : vector<8x512xf32> to vector<8x128xf32>
    %cst_122 = arith.constant 1.000000e+00 : f32
    %421 = vector.broadcast %cst_122 : f32 to vector<8x128xf32>
    %422 = arith.addf %420, %421 : vector<8x128xf32>
    %cst_123 = arith.constant 5.000000e-01 : f32
    %423 = vector.broadcast %cst_123 : f32 to vector<8x128xf32>
    %424 = arith.mulf %423, %422 : vector<8x128xf32>
    %425 = arith.mulf %418, %372 : vector<8x128xf32>
    %426 = arith.mulf %413, %419 : vector<8x128xf32>
    %427 = arith.addf %425, %426 : vector<8x128xf32>
    %428 = math.tanh %427 : vector<8x128xf32>
    %429 = arith.mulf %424, %428 : vector<8x128xf32>
    %430 = arith.truncf %400 : vector<8x128xf32> to vector<8x128xbf16>
    %cst_124 = arith.constant dense<0.000000e+00> : vector<8x512xf32>
    %431 = tpu.matmul %430, %6, %cst_124 {dimension_numbers = #tpu.dot_dimension_numbers<[1], [0], [0], [1], [0, 0, 1, 1], [], []>} : vector<8x128xbf16>, vector<128x512xbf16>, vector<8x512xf32> -> vector<8x512xf32>
    %432 = vector.broadcast %9 : vector<1x512xf32> to vector<8x512xf32>
    %433 = arith.addf %431, %432 : vector<8x512xf32>
    %434 = arith.truncf %429 : vector<8x128xf32> to vector<8x128xbf16>
    %cst_125 = arith.constant dense<0.000000e+00> : vector<8x512xf32>
    %435 = tpu.matmul %434, %8, %cst_125 {dimension_numbers = #tpu.dot_dimension_numbers<[1], [0], [0], [1], [0, 0, 1, 1], [], []>} : vector<8x128xbf16>, vector<128x512xbf16>, vector<8x512xf32> -> vector<8x512xf32>
    %436 = arith.addf %433, %435 : vector<8x512xf32>
    %437 = math.tanh %436 : vector<8x512xf32>
    %438 = vector.extract_strided_slice %437 {offsets = [0, 0], sizes = [8, 128], strides = [1, 1]} : vector<8x512xf32> to vector<8x128xf32>
    %cst_126 = arith.constant 1.000000e+00 : f32
    %439 = vector.broadcast %cst_126 : f32 to vector<8x128xf32>
    %440 = arith.addf %438, %439 : vector<8x128xf32>
    %cst_127 = arith.constant 5.000000e-01 : f32
    %441 = vector.broadcast %cst_127 : f32 to vector<8x128xf32>
    %442 = arith.mulf %441, %440 : vector<8x128xf32>
    %443 = vector.extract_strided_slice %437 {offsets = [0, 128], sizes = [8, 128], strides = [1, 1]} : vector<8x512xf32> to vector<8x128xf32>
    %cst_128 = arith.constant 1.000000e+00 : f32
    %444 = vector.broadcast %cst_128 : f32 to vector<8x128xf32>
    %445 = arith.addf %443, %444 : vector<8x128xf32>
    %cst_129 = arith.constant 5.000000e-01 : f32
    %446 = vector.broadcast %cst_129 : f32 to vector<8x128xf32>
    %447 = arith.mulf %446, %445 : vector<8x128xf32>
    %448 = vector.extract_strided_slice %437 {offsets = [0, 256], sizes = [8, 128], strides = [1, 1]} : vector<8x512xf32> to vector<8x128xf32>
    %449 = vector.extract_strided_slice %437 {offsets = [0, 384], sizes = [8, 128], strides = [1, 1]} : vector<8x512xf32> to vector<8x128xf32>
    %cst_130 = arith.constant 1.000000e+00 : f32
    %450 = vector.broadcast %cst_130 : f32 to vector<8x128xf32>
    %451 = arith.addf %449, %450 : vector<8x128xf32>
    %cst_131 = arith.constant 5.000000e-01 : f32
    %452 = vector.broadcast %cst_131 : f32 to vector<8x128xf32>
    %453 = arith.mulf %452, %451 : vector<8x128xf32>
    %454 = arith.mulf %447, %427 : vector<8x128xf32>
    %455 = arith.mulf %442, %448 : vector<8x128xf32>
    %456 = arith.addf %454, %455 : vector<8x128xf32>
    %457 = math.tanh %456 : vector<8x128xf32>
    %458 = arith.mulf %453, %457 : vector<8x128xf32>
    %459 = tpu.concatenate %400, %458 in 0 : vector<8x128xf32>, vector<8x128xf32> -> vector<16x128xf32>
    %c0_132 = arith.constant 0 : index
    %c0_133 = arith.constant 0 : index
    %460 = vector.load %arg2[%c0_132, %c0_133] : memref<272x128xf32, #tpu.memory_space<vmem>>, vector<128x128xf32>
    %461 = arith.truncf %460 : vector<128x128xf32> to vector<128x128xbf16>
    %c128_134 = arith.constant 128 : index
    %c0_135 = arith.constant 0 : index
    %462 = vector.load %arg2[%c128_134, %c0_135] : memref<272x128xf32, #tpu.memory_space<vmem>>, vector<1x128xf32>
    %c136 = arith.constant 136 : index
    %c0_136 = arith.constant 0 : index
    %463 = vector.load %arg2[%c136, %c0_136] : memref<272x128xf32, #tpu.memory_space<vmem>>, vector<128x128xf32>
    %464 = arith.truncf %463 : vector<128x128xf32> to vector<128x128xbf16>
    %c264_137 = arith.constant 264 : index
    %c0_138 = arith.constant 0 : index
    %465 = vector.load %arg2[%c264_137, %c0_138] : memref<272x128xf32, #tpu.memory_space<vmem>>, vector<1x128xf32>
    %cst_139 = arith.constant 0.000000e+00 : f32
    %466 = vector.broadcast %cst_139 : f32 to vector<16x128xf32>
    %467 = arith.maximumf %459, %466 : vector<16x128xf32>
    %468 = arith.truncf %467 : vector<16x128xf32> to vector<16x128xbf16>
    %cst_140 = arith.constant dense<0.000000e+00> : vector<16x128xf32>
    %469 = tpu.matmul %468, %461, %cst_140 {dimension_numbers = #tpu.dot_dimension_numbers<[1], [0], [0], [1], [0, 0, 1, 1], [], []>} : vector<16x128xbf16>, vector<128x128xbf16>, vector<16x128xf32> -> vector<16x128xf32>
    %470 = vector.broadcast %462 : vector<1x128xf32> to vector<16x128xf32>
    %471 = arith.addf %469, %470 : vector<16x128xf32>
    %cst_141 = arith.constant 0.000000e+00 : f32
    %472 = vector.broadcast %cst_141 : f32 to vector<16x128xf32>
    %473 = arith.maximumf %471, %472 : vector<16x128xf32>
    %474 = arith.truncf %473 : vector<16x128xf32> to vector<16x128xbf16>
    %cst_142 = arith.constant dense<0.000000e+00> : vector<16x128xf32>
    %475 = tpu.matmul %474, %464, %cst_142 {dimension_numbers = #tpu.dot_dimension_numbers<[1], [0], [0], [1], [0, 0, 1, 1], [], []>} : vector<16x128xbf16>, vector<128x128xbf16>, vector<16x128xf32> -> vector<16x128xf32>
    %476 = vector.broadcast %465 : vector<1x128xf32> to vector<16x128xf32>
    %477 = arith.addf %475, %476 : vector<16x128xf32>
    %c0_143 = arith.constant 0 : index
    %c0_144 = arith.constant 0 : index
    %478 = vector.load %arg3[%c0_143, %c0_144] : memref<16x128xf32, #tpu.memory_space<vmem>>, vector<16x128xf32>
    tpu.vector_store %arg3[%c0_143, %c0_144], %477 {strides = array<i32>} : memref<16x128xf32, #tpu.memory_space<vmem>>, vector<16x128xf32>,
    return
  }
}

</mosaic_0001>

<bundles_post_ra>
// kernel: lstm_model_forward.1
= control target key start
LH: loop header
LB: loop body
LE: loop exit
PB: predicated region body
PF: predicated region fallthrough
CT: control target
= control target key end

     0   :  { %v5512_v3 = vmov 0   ;;  %vm3269_vm0 = vmmov 0   ;;  %s5504_s1 = inlined_call_operand.vmem [shape: f32[528,512], index: 1, kind: input, shape index: {}]   ;;  %s5505_s0 = inlined_call_operand.vmem [shape: f32[64,128], index: 0, kind: input, shape index: {}]   ;;  %s5506_s2 = inlined_call_operand.vmem [shape: f32[272,128], index: 2, kind: input, shape index: {}]   ;;  %s5507_s3 = inlined_call_operand.vmem [shape: f32[16,128], index: 3, kind: output, shape index: {}]  }
   0x1   :  { %v72_v0 = vld [vmem:[%s5504_s1 + $0x1c8] sm:$0xff]  ;;  %v74_v2 = vld [vmem:[%s5504_s1 + $0x1d8] sm:$0xff]  ;;  %468 = vmatprep.mubr.bf16.mxu0 %v5512_v3  ;;  %541 = vmatprep.mubr.bf16.mxu1 %v5512_v3  ;;  %v71_v6 = vld [vmem:[%s5504_s1 + $0x1c0] sm:$0xff] }
   0x2   :  { %v76_v1 = vld [vmem:[%s5504_s1 + $0x1e8] sm:$0xff]  ;;  %v78_v5 = vld [vmem:[%s5504_s1 + $0x1f8] sm:$0xff]  ;;  %v75_v7 = vld [vmem:[%s5504_s1 + $0x1e0] sm:$0xff] }
   0x3   :  { %v108_v4 = vpack.c.bf16 %v76_v1, %v72_v0  ;;  %v110_v8 = vpack.c.bf16 %v78_v5, %v74_v2  ;;  %v107_v9 = vpack.c.bf16 %v75_v7, %v71_v6  ;;  %v73_v10 = vld [vmem:[%s5504_s1 + $0x1d0] sm:$0xff]  ;;  %v64_v12 = vld [vmem:[%s5504_s1 + $0x188] sm:$0xff]  ;;  %v66_v15 = vld [vmem:[%s5504_s1 + $0x198] sm:$0xff] }
   0x4   :  { %v77_v11 = vld [vmem:[%s5504_s1 + $0x1f0] sm:$0xff]  ;;  %v68_v14 = vld [vmem:[%s5504_s1 + $0x1a8] sm:$0xff]  ;;  %v70_v16 = vld [vmem:[%s5504_s1 + $0x1b8] sm:$0xff] }
   0x5   :  { %436 = vmatprep.subr.bf16.mxu0 %v108_v4  ;;  %v109_v13 = vpack.c.bf16 %v77_v11, %v73_v10  ;;  %509 = vmatprep.subr.bf16.mxu1 %v110_v8  ;;  %v104_v17 = vpack.c.bf16 %v68_v14, %v64_v12  ;;  %v106_v18 = vpack.c.bf16 %v70_v16, %v66_v15  ;;  %v63_v19 = vld [vmem:[%s5504_s1 + $0x180] sm:$0xff]  ;;  %v65_v21 = vld [vmem:[%s5504_s1 + $0x190] sm:$0xff]  ;;  %v56_v24 = vld [vmem:[%s5504_s1 + $0x148] sm:$0xff] }
   0x6   :  { %437 = vmatpush1.bf16.msra.mxu0 %v107_v9  ;;  %v67_v20 = vld [vmem:[%s5504_s1 + $0x1a0] sm:$0xff]  ;;  %v69_v23 = vld [vmem:[%s5504_s1 + $0x1b0] sm:$0xff]  ;;  %v60_v25 = vld [vmem:[%s5504_s1 + $0x168] sm:$0xff] }
   0x7   :  { %510 = vmatpush1.bf16.msra.mxu1 %v109_v13  ;;  %v103_v22 = vpack.c.bf16 %v67_v20, %v63_v19  ;;  %438 = vmatprep.subr.bf16.mxu0 %v104_v17  ;;  %v105_v26 = vpack.c.bf16 %v69_v23, %v65_v21  ;;  %v100_v27 = vpack.c.bf16 %v60_v25, %v56_v24  ;;  %v58_v28 = vld [vmem:[%s5504_s1 + $0x158] sm:$0xff]  ;;  %v55_v30 = vld [vmem:[%s5504_s1 + $0x140] sm:$0xff]  ;;  %v57_v33 = vld [vmem:[%s5504_s1 + $0x150] sm:$0xff] }
   0x8   :  { %511 = vmatprep.subr.bf16.mxu1 %v106_v18  ;;  %v62_v29 = vld [vmem:[%s5504_s1 + $0x178] sm:$0xff]  ;;  %v59_v32 = vld [vmem:[%s5504_s1 + $0x160] sm:$0xff]  ;;  %v61_v34 = vld [vmem:[%s5504_s1 + $0x170] sm:$0xff] }
   0x9   :  { %v102_v31 = vpack.c.bf16 %v62_v29, %v58_v28  ;;  %v99_v35 = vpack.c.bf16 %v59_v32, %v55_v30  ;;  %v48_v36 = vld [vmem:[%s5504_s1 + $0x108] sm:$0xff]  ;;  %v50_v38 = vld [vmem:[%s5504_s1 + $0x118] sm:$0xff]  ;;  %v101_v39 = vpack.c.bf16 %v61_v34, %v57_v33  ;;  %v47_v42 = vld [vmem:[%s5504_s1 + $0x100] sm:$0xff] }
   0xa   :  { %439 = vmatpush1.bf16.msra.mxu0 %v103_v22  ;;  %v52_v37 = vld [vmem:[%s5504_s1 + $0x128] sm:$0xff]  ;;  %v54_v41 = vld [vmem:[%s5504_s1 + $0x138] sm:$0xff]  ;;  %v51_v43 = vld [vmem:[%s5504_s1 + $0x120] sm:$0xff] }
   0xb   :  { %512 = vmatpush1.bf16.msra.mxu1 %v105_v26  ;;  %440 = vmatprep.subr.bf16.mxu0 %v100_v27  ;;  %v96_v40 = vpack.c.bf16 %v52_v37, %v48_v36  ;;  %v98_v44 = vpack.c.bf16 %v54_v41, %v50_v38  ;;  %v49_v45 = vld [vmem:[%s5504_s1 + $0x110] sm:$0xff]  ;;  %v40_v47 = vld [vmem:[%s5504_s1 + $0xc8] sm:$0xff]  ;;  %v42_v49 = vld [vmem:[%s5504_s1 + $0xd8] sm:$0xff]  ;;  %v95_v51 = vpack.c.bf16 %v51_v43, %v47_v42 }
   0xc   :  { %513 = vmatprep.subr.bf16.mxu1 %v102_v31  ;;  %v53_v46 = vld [vmem:[%s5504_s1 + $0x130] sm:$0xff]  ;;  %v44_v48 = vld [vmem:[%s5504_s1 + $0xe8] sm:$0xff]  ;;  %v46_v50 = vld [vmem:[%s5504_s1 + $0xf8] sm:$0xff] }
   0xd   :  { %v97_v52 = vpack.c.bf16 %v53_v46, %v49_v45  ;;  %v92_v53 = vpack.c.bf16 %v44_v48, %v40_v47  ;;  %v39_v54 = vld [vmem:[%s5504_s1 + $0xc0] sm:$0xff]  ;;  %v41_v56 = vld [vmem:[%s5504_s1 + $0xd0] sm:$0xff]  ;;  %v94_v57 = vpack.c.bf16 %v46_v50, %v42_v49  ;;  %v32_v59 = vld [vmem:[%s5504_s1 + $0x88] sm:$0xff] }
   0xe   :  { %441 = vmatpush1.bf16.msra.mxu0 %v99_v35  ;;  %v43_v55 = vld [vmem:[%s5504_s1 + $0xe0] sm:$0xff]  ;;  %v45_v58 = vld [vmem:[%s5504_s1 + $0xf0] sm:$0xff]  ;;  %v36_v60 = vld [vmem:[%s5504_s1 + $0xa8] sm:$0xff] }
   0xf   :  { %514 = vmatpush1.bf16.msra.mxu1 %v101_v39  ;;  %442 = vmatprep.subr.bf16.mxu0 %v96_v40  ;;  %v34_v61 = vld [vmem:[%s5504_s1 + $0x98] sm:$0xff]  ;;  %v91_v63 = vpack.c.bf16 %v43_v55, %v39_v54  ;;  %v93_v0 = vpack.c.bf16 %v45_v58, %v41_v56  ;;  %v88_v1 = vpack.c.bf16 %v36_v60, %v32_v59  ;;  %v31_v2 = vld [vmem:[%s5504_s1 + $0x80] sm:$0xff]  ;;  %v33_v5 = vld [vmem:[%s5504_s1 + $0x90] sm:$0xff] }
  0x10   :  { %515 = vmatprep.subr.bf16.mxu1 %v98_v44  ;;  %v38_v62 = vld [vmem:[%s5504_s1 + $0xb8] sm:$0xff]  ;;  %v35_v4 = vld [vmem:[%s5504_s1 + $0xa0] sm:$0xff]  ;;  %v37_v7 = vld [vmem:[%s5504_s1 + $0xb0] sm:$0xff] }
  0x11   :  { %v90_v6 = vpack.c.bf16 %v38_v62, %v34_v61  ;;  %v24_v8 = vld [vmem:[%s5504_s1 + $0x48] sm:$0xff]  ;;  %v26_v10 = vld [vmem:[%s5504_s1 + $0x58] sm:$0xff]  ;;  %v87_v12 = vpack.c.bf16 %v35_v4, %v31_v2  ;;  %v89_v13 = vpack.c.bf16 %v37_v7, %v33_v5  ;;  %v23_v15 = vld [vmem:[%s5504_s1 + $0x40] sm:$0xff] }
  0x12   :  { %443 = vmatpush1.bf16.msra.mxu0 %v95_v51  ;;  %v28_v9 = vld [vmem:[%s5504_s1 + $0x68] sm:$0xff]  ;;  %v30_v11 = vld [vmem:[%s5504_s1 + $0x78] sm:$0xff]  ;;  %v27_v16 = vld [vmem:[%s5504_s1 + $0x60] sm:$0xff] }
  0x13   :  { %516 = vmatpush1.bf16.msra.mxu1 %v97_v52  ;;  %444 = vmatprep.subr.bf16.mxu0 %v92_v53  ;;  %v84_v14 = vpack.c.bf16 %v28_v9, %v24_v8  ;;  %v25_v17 = vld [vmem:[%s5504_s1 + $0x50] sm:$0xff]  ;;  %v86_v18 = vpack.c.bf16 %v30_v11, %v26_v10  ;;  %v16_v20 = vld [vmem:[%s5504_s1 + $0x8] sm:$0xff]  ;;  %v18_v22 = vld [vmem:[%s5504_s1 + $0x18] sm:$0xff]  ;;  %v83_v24 = vpack.c.bf16 %v27_v16, %v23_v15 }
  0x14   :  { %517 = vmatprep.subr.bf16.mxu1 %v94_v57  ;;  %v29_v19 = vld [vmem:[%s5504_s1 + $0x70] sm:$0xff]  ;;  %v20_v21 = vld [vmem:[%s5504_s1 + $0x28] sm:$0xff]  ;;  %v22_v23 = vld [vmem:[%s5504_s1 + $0x38] sm:$0xff] }
  0x15   :  { %v85_v25 = vpack.c.bf16 %v29_v19, %v25_v17  ;;  %v80_v26 = vpack.c.bf16 %v20_v21, %v16_v20  ;;  %v15_v27 = vld [vmem:[%s5504_s1] sm:$0xff]  ;;  %v17_v29 = vld [vmem:[%s5504_s1 + $0x10] sm:$0xff]  ;;  %v82_v30 = vpack.c.bf16 %v22_v23, %v18_v22  ;;  %v168_v32 = vld [vmem:[%s5504_s1 + $0x3c8] sm:$0xff] }
  0x16   :  { %445 = vmatpush1.bf16.msra.mxu0 %v91_v63  ;;  %v19_v28 = vld [vmem:[%s5504_s1 + $0x20] sm:$0xff]  ;;  %v21_v31 = vld [vmem:[%s5504_s1 + $0x30] sm:$0xff]  ;;  %v172_v33 = vld [vmem:[%s5504_s1 + $0x3e8] sm:$0xff] }
  0x17   :  { %518 = vmatpush1.bf16.msra.mxu1 %v93_v0  ;;  %446 = vmatprep.subr.bf16.mxu0 %v88_v1  ;;  %v170_v34 = vld [vmem:[%s5504_s1 + $0x3d8] sm:$0xff]  ;;  %v79_v36 = vpack.c.bf16 %v19_v28, %v15_v27  ;;  %v403_v37 = vld [vmem:[%s5505_s0] sm:$0xff]  ;;  %v404_v38 = vld [vmem:[%s5505_s0 + $0x8] sm:$0xff]  ;;  %v81_v39 = vpack.c.bf16 %v21_v31, %v17_v29  ;;  %v3502_v40 = vpack.c.bf16 %v172_v33, %v168_v32 }
  0x18   :  { %519 = vmatprep.subr.bf16.mxu1 %v90_v6  ;;  %v174_v35 = vld [vmem:[%s5504_s1 + $0x3f8] sm:$0xff]  ;;  %v167_v41 = vld [vmem:[%s5504_s1 + $0x3c0] sm:$0xff]  ;;  %v169_v43 = vld [vmem:[%s5504_s1 + $0x3d0] sm:$0xff]  ;;  %v411_v48 = vpack.c.bf16 %v404_v38, %v403_v37 }
  0x19   :  { %5729 = vst [vmem:[#allocation2_spill] sm:$0xff] %v3502_v40  ;;  %v171_v42 = vld [vmem:[%s5504_s1 + $0x3e0] sm:$0xff]  ;;  %v3513_v44 = vpack.c.bf16 %v174_v35, %v170_v34  ;;  %v173_v45 = vld [vmem:[%s5504_s1 + $0x3f0] sm:$0xff]  ;;  %v160_v46 = vld [vmem:[%s5504_s1 + $0x388] sm:$0xff] }
  0x1a   :  { %447 = vmatpush1.bf16.msra.mxu0 %v87_v12  ;;  %v164_v47 = vld [vmem:[%s5504_s1 + $0x3a8] sm:$0xff]  ;;  %v162_v49 = vld [vmem:[%s5504_s1 + $0x398] sm:$0xff]  ;;  %v3530_v51 = vpack.c.bf16 %v171_v42, %v167_v41  ;;  %v3533_v52 = vpack.c.bf16 %v173_v45, %v169_v43  ;;  %v159_v54 = vld [vmem:[%s5504_s1 + $0x380] sm:$0xff] }
  0x1b   :  { %520 = vmatpush1.bf16.msra.mxu1 %v89_v13  ;;  %448 = vmatprep.subr.bf16.mxu0 %v84_v14  ;;  %5730 = vst [vmem:[#allocation3_spill] sm:$0xff] %v3513_v44  ;;  %v166_v50 = vld [vmem:[%s5504_s1 + $0x3b8] sm:$0xff]  ;;  %v3535_v53 = vpack.c.bf16 %v164_v47, %v160_v46  ;;  %v163_v55 = vld [vmem:[%s5504_s1 + $0x3a0] sm:$0xff]  ;;  %v161_v56 = vld [vmem:[%s5504_s1 + $0x390] sm:$0xff] }
  0x1c   :  { %521 = vmatprep.subr.bf16.mxu1 %v86_v18  ;;  %5731 = vst [vmem:[#allocation4_spill] sm:$0xff] %v3530_v51  ;;  %5732 = vst [vmem:[#allocation5_spill] sm:$0xff] %v3533_v52  ;;  %v3547_v57 = vpack.c.bf16 %v166_v50, %v162_v49  ;;  %v165_v58 = vld [vmem:[%s5504_s1 + $0x3b0] sm:$0xff]  ;;  %v152_v59 = vld [vmem:[%s5504_s1 + $0x348] sm:$0xff]  ;;  %v3565_v63 = vpack.c.bf16 %v163_v55, %v159_v54 }
  0x1d   :  { %5733 = vst [vmem:[#allocation6_spill] sm:$0xff] %v3535_v53  ;;  %v156_v60 = vld [vmem:[%s5504_s1 + $0x368] sm:$0xff]  ;;  %v154_v61 = vld [vmem:[%s5504_s1 + $0x358] sm:$0xff]  ;;  %v405_v0 = vld [vmem:[%s5505_s0 + $0x10] sm:$0xff]  ;;  %v3575_v2 = vpack.c.bf16 %v165_v58, %v161_v56 }
  0x1e   :  { %449 = vmatpush1.bf16.msra.mxu0 %v83_v24  ;;  %5734 = vst [vmem:[#allocation7_spill] sm:$0xff] %v3547_v57  ;;  %v158_v62 = vld [vmem:[%s5504_s1 + $0x378] sm:$0xff]  ;;  %5735 = vst [vmem:[#allocation8_spill] sm:$0xff] %v3565_v63  ;;  %v3577_v4 = vpack.c.bf16 %v156_v60, %v152_v59  ;;  %v151_v5 = vld [vmem:[%s5504_s1 + $0x340] sm:$0xff] }
  0x1f   :  { %522 = vmatpush1.bf16.msra.mxu1 %v85_v25  ;;  %450 = vmatprep.subr.bf16.mxu0 %v80_v26  ;;  %v406_v1 = vld [vmem:[%s5505_s0 + $0x18] sm:$0xff]  ;;  %5736 = vst [vmem:[#allocation9_spill] sm:$0xff] %v3575_v2  ;;  %v155_v6 = vld [vmem:[%s5504_s1 + $0x360] sm:$0xff]  ;;  %v153_v7 = vld [vmem:[%s5504_s1 + $0x350] sm:$0xff]  ;;  %v3590_v8 = vpack.c.bf16 %v158_v62, %v154_v61 }
  0x20   :  { %523 = vmatprep.subr.bf16.mxu1 %v82_v30  ;;  %5737 = vst [vmem:[#allocation10_spill] sm:$0xff] %v3577_v4  ;;  %v157_v9 = vld [vmem:[%s5504_s1 + $0x370] sm:$0xff]  ;;  %v144_v10 = vld [vmem:[%s5504_s1 + $0x308] sm:$0xff]  ;;  %v412_v12 = vpack.c.bf16 %v406_v1, %v405_v0  ;;  %v146_v13 = vld [vmem:[%s5504_s1 + $0x318] sm:$0xff]  ;;  %v3609_v15 = vpack.c.bf16 %v155_v6, %v151_v5 }
  0x21   :  { %5738 = vst [vmem:[#allocation11_spill] sm:$0xff] %v3590_v8  ;;  %v148_v11 = vld [vmem:[%s5504_s1 + $0x328] sm:$0xff]  ;;  %v150_v14 = vld [vmem:[%s5504_s1 + $0x338] sm:$0xff]  ;;  %v3613_v16 = vpack.c.bf16 %v157_v9, %v153_v7  ;;  %v143_v18 = vld [vmem:[%s5504_s1 + $0x300] sm:$0xff] }
  0x22   :  { %451 = vmatpush1.bf16.msra.mxu0 %v79_v36  ;;  %5739 = vst [vmem:[#allocation12_spill] sm:$0xff] %v3609_v15  ;;  %v3615_v17 = vpack.c.bf16 %v148_v11, %v144_v10  ;;  %v147_v19 = vld [vmem:[%s5504_s1 + $0x320] sm:$0xff]  ;;  %v145_v20 = vld [vmem:[%s5504_s1 + $0x310] sm:$0xff]  ;;  %v3627_v21 = vpack.c.bf16 %v150_v14, %v146_v13  ;;  %v136_v23 = vld [vmem:[%s5504_s1 + $0x2c8] sm:$0xff] }
  0x23   :  { %524 = vmatpush1.bf16.msra.mxu1 %v81_v39  ;;  %582 = vmatprep.subr.bf16.mxu0 %v3502_v40  ;;  %5740 = vst [vmem:[#allocation13_spill] sm:$0xff] %v3613_v16  ;;  %v149_v22 = vld [vmem:[%s5504_s1 + $0x330] sm:$0xff]  ;;  %v140_v24 = vld [vmem:[%s5504_s1 + $0x2e8] sm:$0xff]  ;;  %v138_v25 = vld [vmem:[%s5504_s1 + $0x2d8] sm:$0xff]  ;;  %v3645_v27 = vpack.c.bf16 %v147_v19, %v143_v18 }
  0x24   :  { %623 = vmatprep.subr.bf16.mxu1 %v3513_v44  ;;  %5741 = vst [vmem:[#allocation14_spill] sm:$0xff] %v3615_v17  ;;  %5742 = vst [vmem:[#allocation15_spill] sm:$0xff] %v3627_v21  ;;  %v142_v26 = vld [vmem:[%s5504_s1 + $0x2f8] sm:$0xff]  ;;  %v407_v28 = vld [vmem:[%s5505_s0 + $0x20] sm:$0xff]  ;;  %v3655_v30 = vpack.c.bf16 %v149_v22, %v145_v20  ;;  %v3657_v31 = vpack.c.bf16 %v140_v24, %v136_v23 }
  0x25   :  { %469 = vmatmul.mubr.bf16.vlgmr.msra.gmra.mxu0 %v411_v48  ;;  %5743 = vst [vmem:[#allocation16_spill] sm:$0xff] %v3645_v27  ;;  %v408_v29 = vld [vmem:[%s5505_s0 + $0x28] sm:$0xff]  ;;  %v135_v32 = vld [vmem:[%s5504_s1 + $0x2c0] sm:$0xff]  ;;  %v137_v34 = vld [vmem:[%s5504_s1 + $0x2d0] sm:$0xff]  ;;  %v3670_v35 = vpack.c.bf16 %v142_v26, %v138_v25 }
  0x26   :  { %542 = vmatmul.mubr.bf16.vlgmr.msra.gmra.mxu1 %v411_v48  ;;  %583 = vmatpush1.bf16.msra.mxu0 %v3530_v51  ;;  %5744 = vst [vmem:[#allocation17_spill] sm:$0xff] %v3655_v30  ;;  %5745 = vst [vmem:[#allocation18_spill] sm:$0xff] %v3657_v31  ;;  %v139_v33 = vld [vmem:[%s5504_s1 + $0x2e0] sm:$0xff]  ;;  %v141_v36 = vld [vmem:[%s5504_s1 + $0x2f0] sm:$0xff]  ;;  %v413_v39 = vpack.c.bf16 %v408_v29, %v407_v28 }
  0x27   :  { %624 = vmatpush1.bf16.msra.mxu1 %v3533_v52  ;;  %584 = vmatprep.subr.bf16.mxu0 %v3535_v53  ;;  %5746 = vst [vmem:[#allocation19_spill] sm:$0xff] %v3670_v35  ;;  %v128_v37 = vld [vmem:[%s5504_s1 + $0x288] sm:$0xff]  ;;  %v130_v41 = vld [vmem:[%s5504_s1 + $0x298] sm:$0xff]  ;;  %v3689_v43 = vpack.c.bf16 %v139_v33, %v135_v32  ;;  %v3693_v45 = vpack.c.bf16 %v141_v36, %v137_v34  ;;  %v127_v47 = vld [vmem:[%s5504_s1 + $0x280] sm:$0xff] }
  0x28   :  { %625 = vmatprep.subr.bf16.mxu1 %v3547_v57  ;;  %478 = vmatprep.mubr.bf16.mxu0 %v5512_v3  ;;  %v132_v38 = vld [vmem:[%s5504_s1 + $0x2a8] sm:$0xff]  ;;  %v134_v42 = vld [vmem:[%s5504_s1 + $0x2b8] sm:$0xff]  ;;  %v131_v48 = vld [vmem:[%s5504_s1 + $0x2a0] sm:$0xff] }
  0x29   :  { %551 = vmatprep.mubr.bf16.mxu1 %v5512_v3  ;;  %5747 = vst [vmem:[#allocation20_spill] sm:$0xff] %v3689_v43  ;;  %5748 = vst [vmem:[#allocation21_spill] sm:$0xff] %v3693_v45  ;;  %v3695_v46 = vpack.c.bf16 %v132_v38, %v128_v37  ;;  %v129_v49 = vld [vmem:[%s5504_s1 + $0x290] sm:$0xff]  ;;  %v3707_v50 = vpack.c.bf16 %v134_v42, %v130_v41  ;;  %v120_v55 = vld [vmem:[%s5504_s1 + $0x248] sm:$0xff]  ;;  %v3725_v60 = vpack.c.bf16 %v131_v48, %v127_v47  ;;  %v416_v41 = vlaneseq }
  0x2a   :  { %585 = vmatpush1.bf16.msra.mxu0 %v3565_v63  ;;  %v133_v54 = vld [vmem:[%s5504_s1 + $0x2b0] sm:$0xff]  ;;  %v124_v56 = vld [vmem:[%s5504_s1 + $0x268] sm:$0xff]  ;;  %v122_v58 = vld [vmem:[%s5504_s1 + $0x258] sm:$0xff] }
  0x2b   :  { %626 = vmatpush1.bf16.msra.mxu1 %v3575_v2  ;;  %586 = vmatprep.subr.bf16.mxu0 %v3577_v4  ;;  %5749 = vst [vmem:[#allocation22_spill] sm:$0xff] %v3695_v46  ;;  %5750 = vst [vmem:[#allocation23_spill] sm:$0xff] %v3707_v50  ;;  %v126_v59 = vld [vmem:[%s5504_s1 + $0x278] sm:$0xff]  ;;  %v409_v61 = vld [vmem:[%s5505_s0 + $0x30] sm:$0xff]  ;;  %v3735_v0 = vpack.c.bf16 %v133_v54, %v129_v49  ;;  %v3737_v1 = vpack.c.bf16 %v124_v56, %v120_v55  ;;  %v3858_v42 = vshrl.u32 %v416_v41, 7 }
  0x2c   :  { %627 = vmatprep.subr.bf16.mxu1 %v3590_v8  ;;  %5751 = vst [vmem:[#allocation24_spill] sm:$0xff] %v3725_v60  ;;  %v410_v62 = vld [vmem:[%s5505_s0 + $0x38] sm:$0xff]  ;;  %v119_v5 = vld [vmem:[%s5504_s1 + $0x240] sm:$0xff]  ;;  %v121_v7 = vld [vmem:[%s5504_s1 + $0x250] sm:$0xff]  ;;  %v3750_v9 = vpack.c.bf16 %v126_v59, %v122_v58 }
  0x2d   :  { %479 = vmatmul.mubr.bf16.gmra.mxu0 %v412_v12  ;;  %5752 = vst [vmem:[#allocation25_spill] sm:$0xff] %v3735_v0  ;;  %5753 = vst [vmem:[#allocation26_spill] sm:$0xff] %v3737_v1  ;;  %v123_v6 = vld [vmem:[%s5504_s1 + $0x260] sm:$0xff]  ;;  %v125_v10 = vld [vmem:[%s5504_s1 + $0x270] sm:$0xff]  ;;  %v414_v13 = vpack.c.bf16 %v410_v62, %v409_v61  ;;  %v5509_v47 = vsub.s32 2, %v3858_v42  ;;  %v5511_v48 = vsub.s32 0, %v3858_v42 }
  0x2e   :  { %552 = vmatmul.mubr.bf16.gmra.mxu1 %v412_v12  ;;  %587 = vmatpush1.bf16.msra.mxu0 %v3609_v15  ;;  %5754 = vst [vmem:[#allocation27_spill] sm:$0xff] %v3750_v9  ;;  %v112_v11 = vld [vmem:[%s5504_s1 + $0x208] sm:$0xff]  ;;  %v114_v14 = vld [vmem:[%s5504_s1 + $0x218] sm:$0xff]  ;;  %v3769_v19 = vpack.c.bf16 %v123_v6, %v119_v5  ;;  %v3773_v20 = vpack.c.bf16 %v125_v10, %v121_v7  ;;  %v111_v23 = vld [vmem:[%s5504_s1 + $0x200] sm:$0xff]  ;;  %v5510_v5 = vsub.s32 1, %v3858_v42  ;;  %v5508_v10 = vsub.s32 3, %v3858_v42 }
  0x2f   :  { %628 = vmatpush1.bf16.msra.mxu1 %v3613_v16  ;;  %588 = vmatprep.subr.bf16.mxu0 %v3615_v17  ;;  %v116_v12 = vld [vmem:[%s5504_s1 + $0x228] sm:$0xff]  ;;  %v118_v18 = vld [vmem:[%s5504_s1 + $0x238] sm:$0xff]  ;;  %v115_v24 = vld [vmem:[%s5504_s1 + $0x220] sm:$0xff]  ;;  %5763 = vst [vmem:[#allocation36_spill] sm:$0xff] %v3858_v42 }
  0x30   :  { %629 = vmatprep.subr.bf16.mxu1 %v3627_v21  ;;  %488 = vmatprep.mubr.bf16.mxu0 %v5512_v3  ;;  %5755 = vst [vmem:[#allocation28_spill] sm:$0xff] %v3769_v19  ;;  %5756 = vst [vmem:[#allocation29_spill] sm:$0xff] %v3773_v20  ;;  %v3775_v22 = vpack.c.bf16 %v116_v12, %v112_v11  ;;  %v3784_v25 = vpack.c.bf16 %v118_v18, %v114_v14  ;;  %v113_v26 = vld [vmem:[%s5504_s1 + $0x210] sm:$0xff]  ;;  %v266_v33 = vld [vmem:[%s5504_s1 + $0x5e8] sm:$0xff] }
  0x31   :  { %561 = vmatprep.mubr.bf16.mxu1 %v5512_v3  ;;  %v117_v28 = vld [vmem:[%s5504_s1 + $0x230] sm:$0xff]  ;;  %v3793_v29 = vpack.c.bf16 %v115_v24, %v111_v23  ;;  %v270_v34 = vld [vmem:[%s5504_s1 + $0x608] sm:$0xff]  ;;  %v268_v36 = vld [vmem:[%s5504_s1 + $0x5f8] sm:$0xff] }
  0x32   :  { %589 = vmatpush1.bf16.msra.mxu0 %v3645_v27  ;;  %5757 = vst [vmem:[#allocation30_spill] sm:$0xff] %v3775_v22  ;;  %5758 = vst [vmem:[#allocation31_spill] sm:$0xff] %v3784_v25  ;;  %v3797_v32 = vpack.c.bf16 %v117_v28, %v113_v26  ;;  %v3849_v37 = vpack.c.bf16 %v270_v34, %v266_v33  ;;  %v272_v38 = vld [vmem:[%s5504_s1 + $0x618] sm:$0xff] }
  0x33   :  { %630 = vmatpush1.bf16.msra.mxu1 %v3655_v30  ;;  %590 = vmatprep.subr.bf16.mxu0 %v3657_v31  ;;  %5759 = vst [vmem:[#allocation32_spill] sm:$0xff] %v3793_v29  ;;  %v3042_v49 = vld [vmem:[%s5504_s1 + $0x400] ss:$8 sm:$0xf] }
  0x34   :  { %631 = vmatprep.subr.bf16.mxu1 %v3670_v35  ;;  %5760 = vst [vmem:[#allocation33_spill] sm:$0xff] %v3797_v32  ;;  %5761 = vst [vmem:[#allocation34_spill] sm:$0xff] %v3849_v37  ;;  %v3869_v56 = vrot.slane %v3042_v49, %v5509_v47  ;;  %v419_v59 = vrot.slane %v3042_v49, %v5511_v48  ;;  %v3890_v18 = vrot.slane %v3042_v49, %v5510_v5 }
  0x35   :  { %489 = vmatmul.mubr.bf16.gmra.mxu0 %v413_v39  ;;  %v3896_v26 = vrot.slane %v3042_v49, %v5508_v10 }
  0x36   :  { %562 = vmatmul.mubr.bf16.gmra.mxu1 %v413_v39  ;;  %591 = vmatpush1.bf16.msra.mxu0 %v3689_v43  ;;  %v3854_v39 = vpack.c.bf16 %v272_v38, %v268_v36 }
  0x37   :  { %632 = vmatpush1.bf16.msra.mxu1 %v3693_v45  ;;  %592 = vmatprep.subr.bf16.mxu0 %v3695_v46 }
  0x38   :  { %633 = vmatprep.subr.bf16.mxu1 %v3707_v50  ;;  %498 = vmatprep.mubr.bf16.mxu0 %v5512_v3  ;;  %5762 = vst [vmem:[#allocation35_spill] sm:$0xff] %v3854_v39 }
  0x39   :  { %571 = vmatprep.mubr.bf16.mxu1 %v5512_v3 }
  0x3a   :  { %593 = vmatpush1.bf16.msra.mxu0 %v3725_v60 }
  0x3b   :  { %634 = vmatpush1.bf16.msra.mxu1 %v3735_v0  ;;  %594 = vmatprep.subr.bf16.mxu0 %v3737_v1 }
  0x3c   :  { %635 = vmatprep.subr.bf16.mxu1 %v3750_v9 }
  0x3d   :  { %499 = vmatmul.mubr.bf16.gmra.mxu0 %v414_v13 }
  0x3e   :  { %572 = vmatmul.mubr.bf16.gmra.mxu1 %v414_v13  ;;  %595 = vmatpush1.bf16.msra.mxu0 %v3769_v19 }
  0x3f   :  { %636 = vmatpush1.bf16.msra.mxu1 %v3773_v20  ;;  %596 = vmatprep.subr.bf16.mxu0 %v3775_v22 }
  0x40   :  { %637 = vmatprep.subr.bf16.mxu1 %v3784_v25  ;;  %614 = vmatprep.mubr.bf16.mxu0 %v5512_v3 }
  0x41   :  { %655 = vmatprep.mubr.bf16.mxu1 %v5512_v3 }
  0x42   :  { %597 = vmatpush1.bf16.msra.mxu0 %v3793_v29 }
  0x43   :  { %638 = vmatpush1.bf16.msra.mxu1 %v3797_v32  ;;  %684 = vmatprep.subr.bf16.mxu0 %v3502_v40 }
  0x44   :  { %725 = vmatprep.subr.bf16.mxu1 %v3513_v44 }
  0x45   :  { %615 = vmatmul.mubr.bf16.vlgmr.msra.gmra.mxu0 %v5512_v3 }
  0x46   :  { %656 = vmatmul.mubr.bf16.vlgmr.msra.gmra.mxu1 %v5512_v3  ;;  %685 = vmatpush1.bf16.msra.mxu0 %v3530_v51 }
  0x47   :  { %726 = vmatpush1.bf16.msra.mxu1 %v3533_v52  ;;  %686 = vmatprep.subr.bf16.mxu0 %v3535_v53 }
  0x48   :  { %727 = vmatprep.subr.bf16.mxu1 %v3547_v57  ;;  %716 = vmatprep.mubr.bf16.mxu0 %v5512_v3 }
  0x49   :  { %757 = vmatprep.mubr.bf16.mxu1 %v5512_v3 }
  0x4a   :  { %687 = vmatpush1.bf16.msra.mxu0 %v3565_v63 }
  0x4b   :  { %728 = vmatpush1.bf16.msra.mxu1 %v3575_v2  ;;  %688 = vmatprep.subr.bf16.mxu0 %v3577_v4 }
  0x4c   :  { %729 = vmatprep.subr.bf16.mxu1 %v3590_v8 }
  0x4e   :  { %689 = vmatpush1.bf16.msra.mxu0 %v3609_v15 }
  0x4f   :  { %730 = vmatpush1.bf16.msra.mxu1 %v3613_v16  ;;  %690 = vmatprep.subr.bf16.mxu0 %v3615_v17 }
  0x50   :  { %731 = vmatprep.subr.bf16.mxu1 %v3627_v21 }
  0x52   :  { %691 = vmatpush1.bf16.msra.mxu0 %v3645_v27 }
  0x53   :  { %732 = vmatpush1.bf16.msra.mxu1 %v3655_v30  ;;  %692 = vmatprep.subr.bf16.mxu0 %v3657_v31 }
  0x54   :  { %733 = vmatprep.subr.bf16.mxu1 %v3670_v35 }
  0x56   :  { %693 = vmatpush1.bf16.msra.mxu0 %v3689_v43 }
  0x57   :  { %734 = vmatpush1.bf16.msra.mxu1 %v3693_v45  ;;  %694 = vmatprep.subr.bf16.mxu0 %v3695_v46 }
  0x58   :  { %735 = vmatprep.subr.bf16.mxu1 %v3707_v50 }
  0x5a   :  { %695 = vmatpush1.bf16.msra.mxu0 %v3725_v60 }
  0x5b   :  { %736 = vmatpush1.bf16.msra.mxu1 %v3735_v0  ;;  %696 = vmatprep.subr.bf16.mxu0 %v3737_v1 }
  0x5c   :  { %737 = vmatprep.subr.bf16.mxu1 %v3750_v9 }
  0x5e   :  { %697 = vmatpush1.bf16.msra.mxu0 %v3769_v19 }
  0x5f   :  { %738 = vmatpush1.bf16.msra.mxu1 %v3773_v20  ;;  %698 = vmatprep.subr.bf16.mxu0 %v3775_v22 }
  0x60   :  { %739 = vmatprep.subr.bf16.mxu1 %v3784_v25 }
  0x62   :  { %699 = vmatpush1.bf16.msra.mxu0 %v3793_v29 }
  0x63   :  { %740 = vmatpush1.bf16.msra.mxu1 %v3797_v32  ;;  %806 = vmatprep.subr.bf16.mxu0 %v3849_v37 }
  0x64   :  { %847 = vmatprep.subr.bf16.mxu1 %v3854_v39 }
  0xe5   :  { %v470_v54 = vpop.f32.mrf.mxu0 }
  0xe6   :  { %v3865_v55 = vpop.f32.mrf.mxu1 }
  0xe7   :  { %v3871_v58 = vpop.f32.mrf.mxu0 }
  0xe8   :  { %v3875_v61 = vpop.f32.mrf.mxu1 }
  0xe9   :  { %v474_v62 = vpop.f32.mrf.mxu0 }
  0xea   :  { %v3878_v6 = vadd.f32 %v474_v62, %v419_v59  ;;  %v547_v7 = vpop.f32.mrf.mxu1 }
  0xeb   :  { %v3882_v11 = vadd.f32 %v547_v7, %v3869_v56  ;;  %v3884_v12 = vpop.f32.mrf.mxu0 }
  0xec   :  { %v3886_v13 = vpop.f32.mrf.mxu1 }
  0xed   :  { %v480_v14 = vpop.f32.mrf.mxu0 }
  0xee   :  { %v3892_v23 = vadd.f32 %v480_v14, %v419_v59  ;;  %v553_v24 = vpop.f32.mrf.mxu1 }
  0xef   :  { %v3899_v28 = vadd.f32 %v553_v24, %v3869_v56  ;;  %v482_v33 = vpop.f32.mrf.mxu0 }
  0xf0   :  { %5764 = vst [vmem:[#allocation37_spill] sm:$0xff] %v3892_v23  ;;  %v3902_v34 = vadd.f32 %v482_v33, %v3890_v18  ;;  %v555_v36 = vpop.f32.mrf.mxu1  ;;  %v245_v23 = vld [vmem:[%s5504_s1 + $0x540] sm:$0xff] }
  0xf1   :  { %5765 = vst [vmem:[#allocation38_spill] sm:$0xff] %v3899_v28  ;;  %v3905_v38 = vadd.f32 %v555_v36, %v3896_v26  ;;  %v484_v41 = vpop.f32.mrf.mxu0 }
  0xf2   :  { %5766 = vst [vmem:[#allocation39_spill] sm:$0xff] %v3902_v34  ;;  %v3907_v62 = vadd.f32 %v484_v41, %v419_v59  ;;  %v557_v7 = vpop.f32.mrf.mxu1 }
  0xf3   :  { %5767 = vst [vmem:[#allocation40_spill] sm:$0xff] %v3905_v38  ;;  %v3910_v14 = vadd.f32 %v557_v7, %v3869_v56  ;;  %v486_v49 = vpop.f32.mrf.mxu0 }
  0xf4   :  { %5768 = vst [vmem:[#allocation41_spill] sm:$0xff] %v3907_v62  ;;  %v3913_v10 = vadd.f32 %v486_v49, %v3890_v18  ;;  %v559_v24 = vpop.f32.mrf.mxu1 }
  0xf5   :  { %5769 = vst [vmem:[#allocation42_spill] sm:$0xff] %v3910_v14  ;;  %v3916_v47 = vadd.f32 %v559_v24, %v3896_v26  ;;  %v490_v33 = vpop.f32.mrf.mxu0 }
  0xf6   :  { %5770 = vst [vmem:[#allocation43_spill] sm:$0xff] %v3913_v10  ;;  %v3918_v5 = vadd.f32 %v490_v33, %v419_v59  ;;  %v563_v36 = vpop.f32.mrf.mxu1 }
  0xf7   :  { %5771 = vst [vmem:[#allocation44_spill] sm:$0xff] %v3916_v47  ;;  %v3921_v48 = vadd.f32 %v563_v36, %v3869_v56  ;;  %v492_v41 = vpop.f32.mrf.mxu0 }
  0xf8   :  { %5772 = vst [vmem:[#allocation45_spill] sm:$0xff] %v3918_v5  ;;  %v3924_v3 = vadd.f32 %v492_v41, %v3890_v18  ;;  %v565_v7 = vpop.f32.mrf.mxu1 }
  0xf9   :  { %5773 = vst [vmem:[#allocation46_spill] sm:$0xff] %v3921_v48  ;;  %v3927_v14 = vadd.f32 %v565_v7, %v3896_v26  ;;  %v494_v49 = vpop.f32.mrf.mxu0 }
  0xfa   :  { %5774 = vst [vmem:[#allocation47_spill] sm:$0xff] %v3924_v3  ;;  %v3929_v10 = vadd.f32 %v494_v49, %v419_v59  ;;  %v567_v24 = vpop.f32.mrf.mxu1 }
  0xfb   :  { %5775 = vst [vmem:[#allocation48_spill] sm:$0xff] %v3927_v14  ;;  %v3932_v47 = vadd.f32 %v567_v24, %v3869_v56  ;;  %v496_v33 = vpop.f32.mrf.mxu0 }
  0xfc   :  { %5776 = vst [vmem:[#allocation49_spill] sm:$0xff] %v3929_v10  ;;  %v3935_v5 = vadd.f32 %v496_v33, %v3890_v18  ;;  %v569_v36 = vpop.f32.mrf.mxu1 }
  0xfd   :  { %5777 = vst [vmem:[#allocation50_spill] sm:$0xff] %v3932_v47  ;;  %v3938_v48 = vadd.f32 %v569_v36, %v3896_v26  ;;  %v500_v41 = vpop.f32.mrf.mxu0 }
  0xfe   :  { %5778 = vst [vmem:[#allocation51_spill] sm:$0xff] %v3935_v5  ;;  %v3940_v3 = vadd.f32 %v500_v41, %v419_v59  ;;  %v573_v7 = vpop.f32.mrf.mxu1 }
  0xff   :  { %5779 = vst [vmem:[#allocation52_spill] sm:$0xff] %v3938_v48  ;;  %v3943_v14 = vadd.f32 %v573_v7, %v3869_v56  ;;  %v502_v49 = vpop.f32.mrf.mxu0 }
 0x100   :  { %5780 = vst [vmem:[#allocation53_spill] sm:$0xff] %v3940_v3  ;;  %v3946_v10 = vadd.f32 %v502_v49, %v3890_v18  ;;  %v575_v24 = vpop.f32.mrf.mxu1  ;;  %v471_v3 = vadd.f32 %v470_v54, %v419_v59 }
 0x101   :  { %5781 = vst [vmem:[#allocation54_spill] sm:$0xff] %v3943_v14  ;;  %v3949_v47 = vadd.f32 %v575_v24, %v3896_v26  ;;  %v504_v33 = vpop.f32.mrf.mxu0  ;;  %v473_v24 = vadd.f32 %v3871_v58, %v3890_v18 }
 0x102   :  { %5782 = vst [vmem:[#allocation55_spill] sm:$0xff] %v3946_v10  ;;  %v3951_v5 = vadd.f32 %v504_v33, %v419_v59  ;;  %v577_v36 = vpop.f32.mrf.mxu1 }
 0x103   :  { %5783 = vst [vmem:[#allocation56_spill] sm:$0xff] %v3949_v47  ;;  %v3954_v48 = vadd.f32 %v577_v36, %v3869_v56  ;;  %v506_v41 = vpop.f32.mrf.mxu0  ;;  %v544_v36 = vadd.f32 %v3865_v55, %v3869_v56 }
 0x104   :  { %5784 = vst [vmem:[#allocation57_spill] sm:$0xff] %v3951_v5  ;;  %v3957_v7 = vadd.f32 %v506_v41, %v3890_v18  ;;  %v579_v14 = vpop.f32.mrf.mxu1 }
 0x105   :  { %5785 = vst [vmem:[#allocation58_spill] sm:$0xff] %v3954_v48  ;;  %v3960_v49 = vadd.f32 %v579_v14, %v3896_v26  ;;  %v616_v10 = vpop.f32.mrf.mxu0 }
 0x106   :  { %5786 = vst [vmem:[#allocation59_spill] sm:$0xff] %v3957_v7  ;;  %v664_v47 = vadd.f32 %v616_v10, %v471_v3  ;;  %v657_v33 = vpop.f32.mrf.mxu1 }
 0x107   :  { %5787 = vst [vmem:[#allocation60_spill] sm:$0xff] %v3960_v49  ;;  %v618_v5 = vpop.f32.mrf.mxu0  ;;  %v666_v41 = vadd.f32 %v657_v33, %v544_v36  ;;  %v546_v49 = vadd.f32 %v3875_v61, %v3896_v26  ;;  %v265_v61 = vld [vmem:[%s5504_s1 + $0x5e0] sm:$0xff]  ;;  %v262_v36 = vld [vmem:[%s5504_s1 + $0x5c8] sm:$0xff] }
 0x108   :  { %3107 = vtanh.f32 %v664_v47  ;;  %v665_v48 = vadd.f32 %v618_v5, %v473_v24  ;;  %v659_v54 = vpop.f32.mrf.mxu1 }
 0x109   :  { %v620_v59 = vpop.f32.mrf.mxu0  ;;  %v667_v58 = vadd.f32 %v659_v54, %v546_v49  ;;  %v258_v49 = vld [vmem:[%s5504_s1 + $0x5a8] sm:$0xff]  ;;  %v260_v54 = vld [vmem:[%s5504_s1 + $0x5b8] sm:$0xff] }
 0x10a   :  { %3109 = vtanh.f32 %v665_v48  ;;  %v661_v7 = vpop.f32.mrf.mxu1  ;;  %v264_v59 = vld [vmem:[%s5504_s1 + $0x5d8] sm:$0xff] }
 0x10b   :  { %v621_v62 = vpop.f32.mrf.mxu0  ;;  %3111 = vtanh.f32 %v666_v41  ;;  %v269_v7 = vld [vmem:[%s5504_s1 + $0x600] sm:$0xff] }
 0x10c   :  { %v662_v14 = vpop.f32.mrf.mxu1  ;;  %3113 = vtanh.f32 %v667_v58 }
 0x10d   :  { %v3995_v14 = vpack.c.bf16 %v269_v7, %v265_v61  ;;  %v254_v61 = vld [vmem:[%s5504_s1 + $0x588] sm:$0xff]  ;;  %v252_v7 = vld [vmem:[%s5504_s1 + $0x578] sm:$0xff] }
 0x115   :  { %v3108_v3 = vpop.eup %3107 }
 0x116   :  { %v672_v10 = vadd.f32 1.0, %v3108_v3  ;;  %v257_v3 = vld [vmem:[%s5504_s1 + $0x5a0] sm:$0xff] }
 0x117   :  { %v3110_v38 = vpop.eup %3109 }
 0x118   :  { %v673_v34 = vmul.f32 0.5, %v672_v10  ;;  %v674_v28 = vadd.f32 1.0, %v3110_v38  ;;  %v3112_v55 = vpop.eup %3111  ;;  %v261_v10 = vld [vmem:[%s5504_s1 + $0x5c0] sm:$0xff] }
 0x119   :  { %v3114_v48 = vpop.eup %3113 }
 0x11a   :  { %v675_v47 = vmul.f32 0.5, %v674_v28  ;;  %v679_v5 = vmul.f32 %v3112_v55, %v673_v34  ;;  %v676_v62 = vadd.f32 1.0, %v3114_v48  ;;  %v267_v28 = vld [vmem:[%s5504_s1 + $0x5f0] sm:$0xff]  ;;  %v4007_v55 = vpack.c.bf16 %v262_v36, %v258_v49  ;;  %v249_v49 = vld [vmem:[%s5504_s1 + $0x560] sm:$0xff] }
 0x11b   :  { %v271_v34 = vld [vmem:[%s5504_s1 + $0x610] sm:$0xff] }
 0x11c   :  { %v678_v56 = vmul.f32 0.0, %v675_v47  ;;  %v677_v38 = vmul.f32 0.5, %v676_v62  ;;  %v3997_v58 = vpack.c.bf16 %v271_v34, %v267_v28  ;;  %5788 = vst [vmem:[#allocation61_spill] sm:$0xff] %v4007_v55  ;;  %v263_v48 = vld [vmem:[%s5504_s1 + $0x5d0] sm:$0xff]  ;;  %v250_v62 = vld [vmem:[%s5504_s1 + $0x568] sm:$0xff]  ;;  %v4033_v28 = vpack.c.bf16 %v261_v10, %v257_v3 }
 0x11d   :  { %v4045_v36 = vpack.c.bf16 %v254_v61, %v250_v62  ;;  %v242_v3 = vld [vmem:[%s5504_s1 + $0x528] sm:$0xff]  ;;  %v5794_v62 = vmov 0  }
 0x11e   :  { %v3968_v24 = vadd.f32 %v679_v5, %v678_v56  ;;  %v4009_v56 = vpack.c.bf16 %v264_v59, %v260_v54  ;;  %v259_v5 = vld [vmem:[%s5504_s1 + $0x5b0] sm:$0xff]  ;;  %5790 = vst [vmem:[#allocation63_spill] sm:$0xff] %v4033_v28  ;;  %v246_v10 = vld [vmem:[%s5504_s1 + $0x548] sm:$0xff] }
 0x11f   :  { %v4035_v34 = vpack.c.bf16 %v263_v48, %v259_v5  ;;  %5792 = vst [vmem:[#allocation65_spill] sm:$0xff] %v4045_v36  ;;  %v251_v59 = vld [vmem:[%s5504_s1 + $0x570] sm:$0xff]  ;;  %v244_v5 = vld [vmem:[%s5504_s1 + $0x538] sm:$0xff]  ;;  %v4083_v42 = vpack.c.bf16 %v246_v10, %v242_v3 }
 0x120   :  { %3115 = vtanh.f32 %v3968_v24  ;;  %5789 = vst [vmem:[#allocation62_spill] sm:$0xff] %v4009_v56  ;;  %v248_v48 = vld [vmem:[%s5504_s1 + $0x558] sm:$0xff] }
 0x121   :  { %5791 = vst [vmem:[#allocation64_spill] sm:$0xff] %v4035_v34  ;;  %5797 = vst [vmem:[#allocation69_spill] sm:$0xff] %v4083_v42  ;;  %v236_v3 = vld [vmem:[%s5504_s1 + $0x4f8] sm:$0xff] }
 0x122   :  { %v240_v10 = vld [vmem:[%s5504_s1 + $0x518] sm:$0xff] }
 0x12d   :  { %v3116_v33 = vpop.eup %3115 }
 0x12e   :  { %v682_v41 = vmul.f32 %v3116_v33, %v677_v38  ;;  %v256_v38 = vld [vmem:[%s5504_s1 + $0x598] sm:$0xff]  ;;  %v253_v33 = vld [vmem:[%s5504_s1 + $0x580] sm:$0xff] }
 0x12f   :  { %v4047_v54 = vpack.c.bf16 %v256_v38, %v252_v7  ;;  %v4071_v61 = vpack.c.bf16 %v253_v33, %v249_v49  ;;  %v241_v38 = vld [vmem:[%s5504_s1 + $0x520] sm:$0xff]  ;;  %v243_v49 = vld [vmem:[%s5504_s1 + $0x530] sm:$0xff] }
 0x130   :  { %v4005_v47 = vpack.c.bf16 %v682_v41, %v682_v41  ;;  %v255_v41 = vld [vmem:[%s5504_s1 + $0x590] sm:$0xff] }
 0x131   :  { %5793 = vst [vmem:[#allocation66_spill] sm:$0xff] %v4047_v54  ;;  %5795 = vst [vmem:[#allocation67_spill] sm:$0xff] %v4071_v61  ;;  %v4073_v7 = vpack.c.bf16 %v255_v41, %v251_v59  ;;  %v247_v33 = vld [vmem:[%s5504_s1 + $0x550] sm:$0xff]  ;;  %v234_v59 = vld [vmem:[%s5504_s1 + $0x4e8] sm:$0xff] }
 0x132   :  { %717 = vmatmul.mubr.bf16.vlgmr.msra.gmra.mxu0 %v4005_v47  ;;  %758 = vmatmul.mubr.bf16.vlgmr.msra.gmra.mxu1 %v4005_v47  ;;  %v238_v41 = vld [vmem:[%s5504_s1 + $0x508] sm:$0xff] }
 0x133   :  { %807 = vmatpush1.bf16.msra.mxu0 %v3995_v14  ;;  %848 = vmatpush1.bf16.msra.mxu1 %v3997_v58  ;;  %5796 = vst [vmem:[#allocation68_spill] sm:$0xff] %v4073_v7 }
 0x134   :  { %808 = vmatprep.subr.bf16.mxu0 %v4007_v55  ;;  %849 = vmatprep.subr.bf16.mxu1 %v4009_v56 }
 0x135   :  { %838 = vmatprep.mubr.bf16.mxu0 %v5794_v62  ;;  %879 = vmatprep.mubr.bf16.mxu1 %v5794_v62 }
 0x137   :  { %809 = vmatpush1.bf16.msra.mxu0 %v4033_v28  ;;  %850 = vmatpush1.bf16.msra.mxu1 %v4035_v34  ;;  %v4085_v28 = vpack.c.bf16 %v248_v48, %v244_v5  ;;  %v4107_v5 = vpack.c.bf16 %v245_v23, %v241_v38  ;;  %v4109_v48 = vpack.c.bf16 %v247_v33, %v243_v49  ;;  %v235_v23 = vld [vmem:[%s5504_s1 + $0x4f0] sm:$0xff]  ;;  %v226_v49 = vld [vmem:[%s5504_s1 + $0x4a8] sm:$0xff] }
 0x138   :  { %810 = vmatprep.subr.bf16.mxu0 %v4045_v36  ;;  %851 = vmatprep.subr.bf16.mxu1 %v4047_v54  ;;  %v233_v54 = vld [vmem:[%s5504_s1 + $0x4e0] sm:$0xff]  ;;  %v4119_v34 = vpack.c.bf16 %v238_v41, %v234_v59  ;;  %v239_v38 = vld [vmem:[%s5504_s1 + $0x510] sm:$0xff]  ;;  %v230_v33 = vld [vmem:[%s5504_s1 + $0x4c8] sm:$0xff] }
 0x139   :  { %5798 = vst [vmem:[#allocation70_spill] sm:$0xff] %v4085_v28  ;;  %5799 = vst [vmem:[#allocation71_spill] sm:$0xff] %v4107_v5  ;;  %v237_v36 = vld [vmem:[%s5504_s1 + $0x500] sm:$0xff]  ;;  %v228_v59 = vld [vmem:[%s5504_s1 + $0x4b8] sm:$0xff] }
 0x13a   :  { %5800 = vst [vmem:[#allocation72_spill] sm:$0xff] %v4109_v48  ;;  %5801 = vst [vmem:[#allocation73_spill] sm:$0xff] %v4119_v34  ;;  %v232_v41 = vld [vmem:[%s5504_s1 + $0x4d8] sm:$0xff] }
 0x13b   :  { %811 = vmatpush1.bf16.msra.mxu0 %v4071_v61  ;;  %852 = vmatpush1.bf16.msra.mxu1 %v4073_v7  ;;  %v4121_v61 = vpack.c.bf16 %v240_v10, %v236_v3  ;;  %v4143_v3 = vpack.c.bf16 %v237_v36, %v233_v54  ;;  %v4145_v10 = vpack.c.bf16 %v239_v38, %v235_v23  ;;  %v227_v36 = vld [vmem:[%s5504_s1 + $0x4b0] sm:$0xff]  ;;  %v218_v23 = vld [vmem:[%s5504_s1 + $0x468] sm:$0xff] }
 0x13c   :  { %812 = vmatprep.subr.bf16.mxu0 %v4083_v42  ;;  %853 = vmatprep.subr.bf16.mxu1 %v4085_v28  ;;  %v225_v28 = vld [vmem:[%s5504_s1 + $0x4a0] sm:$0xff]  ;;  %v4155_v7 = vpack.c.bf16 %v230_v33, %v226_v49  ;;  %v231_v54 = vld [vmem:[%s5504_s1 + $0x4d0] sm:$0xff]  ;;  %v222_v38 = vld [vmem:[%s5504_s1 + $0x488] sm:$0xff] }
 0x13d   :  { %5802 = vst [vmem:[#allocation74_spill] sm:$0xff] %v4121_v61  ;;  %5803 = vst [vmem:[#allocation75_spill] sm:$0xff] %v4143_v3  ;;  %v229_v42 = vld [vmem:[%s5504_s1 + $0x4c0] sm:$0xff]  ;;  %v220_v49 = vld [vmem:[%s5504_s1 + $0x478] sm:$0xff] }
 0x13e   :  { %5804 = vst [vmem:[#allocation76_spill] sm:$0xff] %v4145_v10  ;;  %5805 = vst [vmem:[#allocation77_spill] sm:$0xff] %v4155_v7  ;;  %v224_v33 = vld [vmem:[%s5504_s1 + $0x498] sm:$0xff] }
 0x13f   :  { %813 = vmatpush1.bf16.msra.mxu0 %v4107_v5  ;;  %854 = vmatpush1.bf16.msra.mxu1 %v4109_v48  ;;  %v4157_v5 = vpack.c.bf16 %v232_v41, %v228_v59  ;;  %v4179_v59 = vpack.c.bf16 %v229_v42, %v225_v28  ;;  %v4181_v41 = vpack.c.bf16 %v231_v54, %v227_v36  ;;  %v219_v42 = vld [vmem:[%s5504_s1 + $0x470] sm:$0xff]  ;;  %v210_v36 = vld [vmem:[%s5504_s1 + $0x428] sm:$0xff] }
 0x140   :  { %814 = vmatprep.subr.bf16.mxu0 %v4119_v34  ;;  %855 = vmatprep.subr.bf16.mxu1 %v4121_v61  ;;  %v217_v61 = vld [vmem:[%s5504_s1 + $0x460] sm:$0xff]  ;;  %v4191_v48 = vpack.c.bf16 %v222_v38, %v218_v23  ;;  %v223_v28 = vld [vmem:[%s5504_s1 + $0x490] sm:$0xff]  ;;  %v214_v54 = vld [vmem:[%s5504_s1 + $0x448] sm:$0xff] }
 0x141   :  { %5806 = vst [vmem:[#allocation78_spill] sm:$0xff] %v4157_v5  ;;  %5807 = vst [vmem:[#allocation79_spill] sm:$0xff] %v4179_v59  ;;  %v221_v34 = vld [vmem:[%s5504_s1 + $0x480] sm:$0xff]  ;;  %v212_v23 = vld [vmem:[%s5504_s1 + $0x438] sm:$0xff] }
 0x142   :  { %5808 = vst [vmem:[#allocation80_spill] sm:$0xff] %v4181_v41  ;;  %5809 = vst [vmem:[#allocation81_spill] sm:$0xff] %v4191_v48  ;;  %v216_v38 = vld [vmem:[%s5504_s1 + $0x458] sm:$0xff] }
 0x143   :  { %815 = vmatpush1.bf16.msra.mxu0 %v4143_v3  ;;  %856 = vmatpush1.bf16.msra.mxu1 %v4145_v10  ;;  %v4193_v3 = vpack.c.bf16 %v224_v33, %v220_v49  ;;  %v4215_v49 = vpack.c.bf16 %v221_v34, %v217_v61  ;;  %v4217_v33 = vpack.c.bf16 %v223_v28, %v219_v42  ;;  %v211_v34 = vld [vmem:[%s5504_s1 + $0x430] sm:$0xff]  ;;  %v362_v42 = vld [vmem:[%s5504_s1 + $0x7e8] sm:$0xff] }
 0x144   :  { %816 = vmatprep.subr.bf16.mxu0 %v4155_v7  ;;  %857 = vmatprep.subr.bf16.mxu1 %v4157_v5  ;;  %v209_v5 = vld [vmem:[%s5504_s1 + $0x420] sm:$0xff]  ;;  %v4227_v10 = vpack.c.bf16 %v214_v54, %v210_v36  ;;  %v215_v61 = vld [vmem:[%s5504_s1 + $0x450] sm:$0xff]  ;;  %v366_v28 = vld [vmem:[%s5504_s1 + $0x808] sm:$0xff] }
 0x145   :  { %5810 = vst [vmem:[#allocation82_spill] sm:$0xff] %v4193_v3  ;;  %5811 = vst [vmem:[#allocation83_spill] sm:$0xff] %v4215_v49  ;;  %v213_v7 = vld [vmem:[%s5504_s1 + $0x440] sm:$0xff]  ;;  %v364_v36 = vld [vmem:[%s5504_s1 + $0x7f8] sm:$0xff] }
 0x146   :  { %5812 = vst [vmem:[#allocation84_spill] sm:$0xff] %v4217_v33  ;;  %5813 = vst [vmem:[#allocation85_spill] sm:$0xff] %v4227_v10  ;;  %v368_v54 = vld [vmem:[%s5504_s1 + $0x818] sm:$0xff] }
 0x147   :  { %817 = vmatpush1.bf16.msra.mxu0 %v4179_v59  ;;  %858 = vmatpush1.bf16.msra.mxu1 %v4181_v41  ;;  %v4229_v59 = vpack.c.bf16 %v216_v38, %v212_v23  ;;  %v4251_v23 = vpack.c.bf16 %v213_v7, %v209_v5  ;;  %v4253_v38 = vpack.c.bf16 %v215_v61, %v211_v34  ;;  %v363_v7 = vld [vmem:[%s5504_s1 + $0x7f0] sm:$0xff]  ;;  %v354_v34 = vld [vmem:[%s5504_s1 + $0x7a8] sm:$0xff] }
 0x148   :  { %818 = vmatprep.subr.bf16.mxu0 %v4191_v48  ;;  %859 = vmatprep.subr.bf16.mxu1 %v4193_v3  ;;  %v361_v3 = vld [vmem:[%s5504_s1 + $0x7e0] sm:$0xff]  ;;  %v4263_v41 = vpack.c.bf16 %v366_v28, %v362_v42  ;;  %v367_v5 = vld [vmem:[%s5504_s1 + $0x810] sm:$0xff]  ;;  %v358_v61 = vld [vmem:[%s5504_s1 + $0x7c8] sm:$0xff] }
 0x149   :  { %5814 = vst [vmem:[#allocation86_spill] sm:$0xff] %v4229_v59  ;;  %5815 = vst [vmem:[#allocation87_spill] sm:$0xff] %v4251_v23  ;;  %v365_v48 = vld [vmem:[%s5504_s1 + $0x800] sm:$0xff]  ;;  %v356_v42 = vld [vmem:[%s5504_s1 + $0x7b8] sm:$0xff] }
 0x14a   :  { %5816 = vst [vmem:[#allocation88_spill] sm:$0xff] %v4263_v41  ;;  %v360_v28 = vld [vmem:[%s5504_s1 + $0x7d8] sm:$0xff] }
 0x14b   :  { %819 = vmatpush1.bf16.msra.mxu0 %v4215_v49  ;;  %860 = vmatpush1.bf16.msra.mxu1 %v4217_v33  ;;  %v4265_v49 = vpack.c.bf16 %v368_v54, %v364_v36  ;;  %v4287_v36 = vpack.c.bf16 %v365_v48, %v361_v3  ;;  %v4289_v54 = vpack.c.bf16 %v367_v5, %v363_v7  ;;  %v355_v48 = vld [vmem:[%s5504_s1 + $0x7b0] sm:$0xff]  ;;  %v346_v7 = vld [vmem:[%s5504_s1 + $0x768] sm:$0xff] }
 0x14c   :  { %820 = vmatprep.subr.bf16.mxu0 %v4227_v10  ;;  %861 = vmatprep.subr.bf16.mxu1 %v4229_v59  ;;  %v353_v59 = vld [vmem:[%s5504_s1 + $0x7a0] sm:$0xff]  ;;  %v4299_v33 = vpack.c.bf16 %v358_v61, %v354_v34  ;;  %v359_v3 = vld [vmem:[%s5504_s1 + $0x7d0] sm:$0xff]  ;;  %v350_v5 = vld [vmem:[%s5504_s1 + $0x788] sm:$0xff] }
 0x14d   :  { %5817 = vst [vmem:[#allocation89_spill] sm:$0xff] %v4265_v49  ;;  %5818 = vst [vmem:[#allocation90_spill] sm:$0xff] %v4287_v36  ;;  %v357_v10 = vld [vmem:[%s5504_s1 + $0x7c0] sm:$0xff]  ;;  %v348_v34 = vld [vmem:[%s5504_s1 + $0x778] sm:$0xff] }
 0x14e   :  { %5819 = vst [vmem:[#allocation91_spill] sm:$0xff] %v4289_v54  ;;  %5820 = vst [vmem:[#allocation92_spill] sm:$0xff] %v4299_v33  ;;  %v352_v61 = vld [vmem:[%s5504_s1 + $0x798] sm:$0xff] }
 0x14f   :  { %821 = vmatpush1.bf16.msra.mxu0 %v4251_v23  ;;  %862 = vmatpush1.bf16.msra.mxu1 %v4253_v38  ;;  %v4301_v23 = vpack.c.bf16 %v360_v28, %v356_v42  ;;  %v4325_v42 = vpack.c.bf16 %v357_v10, %v353_v59  ;;  %v4327_v28 = vpack.c.bf16 %v359_v3, %v355_v48  ;;  %v347_v10 = vld [vmem:[%s5504_s1 + $0x770] sm:$0xff]  ;;  %v338_v48 = vld [vmem:[%s5504_s1 + $0x728] sm:$0xff] }
 0x150   :  { %888 = vmatprep.subr.bf16.mxu0 %v4263_v41  ;;  %929 = vmatprep.subr.bf16.mxu1 %v4265_v49  ;;  %v345_v49 = vld [vmem:[%s5504_s1 + $0x760] sm:$0xff]  ;;  %v351_v59 = vld [vmem:[%s5504_s1 + $0x790] sm:$0xff]  ;;  %v342_v3 = vld [vmem:[%s5504_s1 + $0x748] sm:$0xff] }
 0x151   :  { %5821 = vst [vmem:[#allocation93_spill] sm:$0xff] %v4301_v23  ;;  %5822 = vst [vmem:[#allocation94_spill] sm:$0xff] %v4325_v42  ;;  %v349_v41 = vld [vmem:[%s5504_s1 + $0x780] sm:$0xff] }
 0x152   :  { %839 = vmatmul.mubr.bf16.vlgmr.msra.gmra.mxu0 %v4005_v47  ;;  %880 = vmatmul.mubr.bf16.vlgmr.msra.gmra.mxu1 %v4005_v47  ;;  %5823 = vst [vmem:[#allocation95_spill] sm:$0xff] %v4327_v28  ;;  %v4337_v47 = vpack.c.bf16 %v350_v5, %v346_v7  ;;  %v340_v7 = vld [vmem:[%s5504_s1 + $0x738] sm:$0xff] }
 0x153   :  { %889 = vmatpush1.bf16.msra.mxu0 %v4287_v36  ;;  %930 = vmatpush1.bf16.msra.mxu1 %v4289_v54  ;;  %v4339_v36 = vpack.c.bf16 %v352_v61, %v348_v34  ;;  %v344_v5 = vld [vmem:[%s5504_s1 + $0x758] sm:$0xff]  ;;  %v4363_v34 = vpack.c.bf16 %v349_v41, %v345_v49  ;;  %v4365_v61 = vpack.c.bf16 %v351_v59, %v347_v10  ;;  %v339_v41 = vld [vmem:[%s5504_s1 + $0x730] sm:$0xff]  ;;  %v330_v10 = vld [vmem:[%s5504_s1 + $0x6e8] sm:$0xff] }
 0x154   :  { %890 = vmatprep.subr.bf16.mxu0 %v4299_v33  ;;  %931 = vmatprep.subr.bf16.mxu1 %v4301_v23  ;;  %5824 = vst [vmem:[#allocation96_spill] sm:$0xff] %v4337_v47  ;;  %v337_v23 = vld [vmem:[%s5504_s1 + $0x720] sm:$0xff]  ;;  %v4375_v54 = vpack.c.bf16 %v342_v3, %v338_v48  ;;  %v343_v49 = vld [vmem:[%s5504_s1 + $0x750] sm:$0xff]  ;;  %v334_v59 = vld [vmem:[%s5504_s1 + $0x708] sm:$0xff] }
 0x155   :  { %5825 = vst [vmem:[#allocation97_spill] sm:$0xff] %v4339_v36  ;;  %920 = vmatprep.mubr.bf16.mxu0 %v5794_v62  ;;  %961 = vmatprep.mubr.bf16.mxu1 %v5794_v62  ;;  %5826 = vst [vmem:[#allocation98_spill] sm:$0xff] %v4363_v34  ;;  %v341_v33 = vld [vmem:[%s5504_s1 + $0x740] sm:$0xff]  ;;  %v332_v48 = vld [vmem:[%s5504_s1 + $0x6f8] sm:$0xff] }
 0x156   :  { %5827 = vst [vmem:[#allocation99_spill] sm:$0xff] %v4365_v61  ;;  %5828 = vst [vmem:[#allocation100_spill] sm:$0xff] %v4375_v54  ;;  %v336_v3 = vld [vmem:[%s5504_s1 + $0x718] sm:$0xff] }
 0x157   :  { %891 = vmatpush1.bf16.msra.mxu0 %v4325_v42  ;;  %932 = vmatpush1.bf16.msra.mxu1 %v4327_v28  ;;  %v4377_v42 = vpack.c.bf16 %v344_v5, %v340_v7  ;;  %v4399_v7 = vpack.c.bf16 %v341_v33, %v337_v23  ;;  %v4401_v5 = vpack.c.bf16 %v343_v49, %v339_v41  ;;  %v331_v33 = vld [vmem:[%s5504_s1 + $0x6f0] sm:$0xff]  ;;  %v322_v41 = vld [vmem:[%s5504_s1 + $0x6a8] sm:$0xff] }
 0x158   :  { %892 = vmatprep.subr.bf16.mxu0 %v4337_v47  ;;  %933 = vmatprep.subr.bf16.mxu1 %v4339_v36  ;;  %v329_v36 = vld [vmem:[%s5504_s1 + $0x6e0] sm:$0xff]  ;;  %v4411_v28 = vpack.c.bf16 %v334_v59, %v330_v10  ;;  %v335_v23 = vld [vmem:[%s5504_s1 + $0x710] sm:$0xff]  ;;  %v326_v49 = vld [vmem:[%s5504_s1 + $0x6c8] sm:$0xff] }
 0x159   :  { %5829 = vst [vmem:[#allocation101_spill] sm:$0xff] %v4377_v42  ;;  %5830 = vst [vmem:[#allocation102_spill] sm:$0xff] %v4399_v7  ;;  %v333_v47 = vld [vmem:[%s5504_s1 + $0x700] sm:$0xff]  ;;  %v324_v10 = vld [vmem:[%s5504_s1 + $0x6b8] sm:$0xff] }
 0x15a   :  { %5831 = vst [vmem:[#allocation103_spill] sm:$0xff] %v4401_v5  ;;  %5832 = vst [vmem:[#allocation104_spill] sm:$0xff] %v4411_v28  ;;  %v328_v59 = vld [vmem:[%s5504_s1 + $0x6d8] sm:$0xff] }
 0x15b   :  { %893 = vmatpush1.bf16.msra.mxu0 %v4363_v34  ;;  %934 = vmatpush1.bf16.msra.mxu1 %v4365_v61  ;;  %v4413_v34 = vpack.c.bf16 %v336_v3, %v332_v48  ;;  %v4435_v48 = vpack.c.bf16 %v333_v47, %v329_v36  ;;  %v4437_v3 = vpack.c.bf16 %v335_v23, %v331_v33  ;;  %v323_v36 = vld [vmem:[%s5504_s1 + $0x6b0] sm:$0xff]  ;;  %v314_v33 = vld [vmem:[%s5504_s1 + $0x668] sm:$0xff] }
 0x15c   :  { %894 = vmatprep.subr.bf16.mxu0 %v4375_v54  ;;  %935 = vmatprep.subr.bf16.mxu1 %v4377_v42  ;;  %v321_v42 = vld [vmem:[%s5504_s1 + $0x6a0] sm:$0xff]  ;;  %v4447_v61 = vpack.c.bf16 %v326_v49, %v322_v41  ;;  %v327_v47 = vld [vmem:[%s5504_s1 + $0x6d0] sm:$0xff]  ;;  %v318_v23 = vld [vmem:[%s5504_s1 + $0x688] sm:$0xff] }
 0x15d   :  { %5833 = vst [vmem:[#allocation105_spill] sm:$0xff] %v4413_v34  ;;  %5834 = vst [vmem:[#allocation106_spill] sm:$0xff] %v4435_v48  ;;  %v325_v54 = vld [vmem:[%s5504_s1 + $0x6c0] sm:$0xff]  ;;  %v316_v41 = vld [vmem:[%s5504_s1 + $0x678] sm:$0xff] }
 0x15e   :  { %5835 = vst [vmem:[#allocation107_spill] sm:$0xff] %v4437_v3  ;;  %5836 = vst [vmem:[#allocation108_spill] sm:$0xff] %v4447_v61  ;;  %v320_v49 = vld [vmem:[%s5504_s1 + $0x698] sm:$0xff] }
 0x15f   :  { %895 = vmatpush1.bf16.msra.mxu0 %v4399_v7  ;;  %936 = vmatpush1.bf16.msra.mxu1 %v4401_v5  ;;  %v4449_v7 = vpack.c.bf16 %v328_v59, %v324_v10  ;;  %v4471_v10 = vpack.c.bf16 %v325_v54, %v321_v42  ;;  %v4473_v59 = vpack.c.bf16 %v327_v47, %v323_v36  ;;  %v315_v54 = vld [vmem:[%s5504_s1 + $0x670] sm:$0xff]  ;;  %v306_v36 = vld [vmem:[%s5504_s1 + $0x628] sm:$0xff] }
 0x160   :  { %896 = vmatprep.subr.bf16.mxu0 %v4411_v28  ;;  %937 = vmatprep.subr.bf16.mxu1 %v4413_v34  ;;  %v313_v34 = vld [vmem:[%s5504_s1 + $0x660] sm:$0xff]  ;;  %v4483_v5 = vpack.c.bf16 %v318_v23, %v314_v33  ;;  %v319_v42 = vld [vmem:[%s5504_s1 + $0x690] sm:$0xff]  ;;  %v310_v47 = vld [vmem:[%s5504_s1 + $0x648] sm:$0xff] }
 0x161   :  { %5837 = vst [vmem:[#allocation109_spill] sm:$0xff] %v4449_v7  ;;  %5838 = vst [vmem:[#allocation110_spill] sm:$0xff] %v4471_v10  ;;  %v317_v28 = vld [vmem:[%s5504_s1 + $0x680] sm:$0xff]  ;;  %v308_v33 = vld [vmem:[%s5504_s1 + $0x638] sm:$0xff] }
 0x162   :  { %5839 = vst [vmem:[#allocation111_spill] sm:$0xff] %v4473_v59  ;;  %5840 = vst [vmem:[#allocation112_spill] sm:$0xff] %v4483_v5  ;;  %v312_v23 = vld [vmem:[%s5504_s1 + $0x658] sm:$0xff] }
 0x163   :  { %897 = vmatpush1.bf16.msra.mxu0 %v4435_v48  ;;  %938 = vmatpush1.bf16.msra.mxu1 %v4437_v3  ;;  %v4485_v48 = vpack.c.bf16 %v320_v49, %v316_v41  ;;  %v4507_v41 = vpack.c.bf16 %v317_v28, %v313_v34  ;;  %v4509_v49 = vpack.c.bf16 %v319_v42, %v315_v54  ;;  %v307_v28 = vld [vmem:[%s5504_s1 + $0x630] sm:$0xff] }
 0x164   :  { %898 = vmatprep.subr.bf16.mxu0 %v4447_v61  ;;  %939 = vmatprep.subr.bf16.mxu1 %v4449_v7  ;;  %v305_v7 = vld [vmem:[%s5504_s1 + $0x620] sm:$0xff]  ;;  %v4516_v61 = vpack.c.bf16 %v310_v47, %v306_v36  ;;  %v4518_v3 = vpack.c.bf16 %v312_v23, %v308_v33  ;;  %v311_v34 = vld [vmem:[%s5504_s1 + $0x650] sm:$0xff]  ;;  %v477_v36 = vadd.f32 %v3884_v12, %v3890_v18 }
 0x165   :  { %5841 = vst [vmem:[#allocation113_spill] sm:$0xff] %v4485_v48  ;;  %5842 = vst [vmem:[#allocation114_spill] sm:$0xff] %v4507_v41  ;;  %v4533_v42 = vpack.c.bf16 %v311_v34, %v307_v28 }
 0x166   :  { %5843 = vst [vmem:[#allocation115_spill] sm:$0xff] %v4509_v49  ;;  %5844 = vst [vmem:[#allocation116_spill] sm:$0xff] %v4516_v61 }
 0x167   :  { %899 = vmatpush1.bf16.msra.mxu0 %v4471_v10  ;;  %940 = vmatpush1.bf16.msra.mxu1 %v4473_v59  ;;  %5845 = vst [vmem:[#allocation117_spill] sm:$0xff] %v4518_v3  ;;  %v309_v59 = vld [vmem:[%s5504_s1 + $0x640] sm:$0xff]  ;;  %5847 = vst [vmem:[#allocation119_spill] sm:$0xff] %v4533_v42 }
 0x168   :  { %900 = vmatprep.subr.bf16.mxu0 %v4483_v5  ;;  %941 = vmatprep.subr.bf16.mxu1 %v4485_v48  ;;  %v4531_v54 = vpack.c.bf16 %v309_v59, %v305_v7 }
 0x16a   :  { %5846 = vst [vmem:[#allocation118_spill] sm:$0xff] %v4531_v54 }
 0x16b   :  { %901 = vmatpush1.bf16.msra.mxu0 %v4507_v41  ;;  %942 = vmatpush1.bf16.msra.mxu1 %v4509_v49 }
 0x16c   :  { %902 = vmatprep.subr.bf16.mxu0 %v4516_v61  ;;  %943 = vmatprep.subr.bf16.mxu1 %v4518_v3 }
 0x16f   :  { %903 = vmatpush1.bf16.msra.mxu0 %v4531_v54  ;;  %944 = vmatpush1.bf16.msra.mxu1 %v4533_v42 }
 0x170   :  { %990 = vmatprep.subr.bf16.mxu0 %v3502_v40  ;;  %1031 = vmatprep.subr.bf16.mxu1 %v3513_v44 }
 0x172   :  { %921 = vmatmul.mubr.bf16.vlgmr.msra.gmra.mxu0 %v5794_v62  ;;  %962 = vmatmul.mubr.bf16.vlgmr.msra.gmra.mxu1 %v5794_v62 }
 0x173   :  { %991 = vmatpush1.bf16.msra.mxu0 %v3530_v51  ;;  %1032 = vmatpush1.bf16.msra.mxu1 %v3533_v52 }
 0x174   :  { %992 = vmatprep.subr.bf16.mxu0 %v3535_v53  ;;  %1033 = vmatprep.subr.bf16.mxu1 %v3547_v57 }
 0x175   :  { %1022 = vmatprep.mubr.bf16.mxu0 %v5794_v62  ;;  %1063 = vmatprep.mubr.bf16.mxu1 %v5794_v62 }
 0x177   :  { %993 = vmatpush1.bf16.msra.mxu0 %v3565_v63  ;;  %1034 = vmatpush1.bf16.msra.mxu1 %v3575_v2 }
 0x178   :  { %994 = vmatprep.subr.bf16.mxu0 %v3577_v4  ;;  %1035 = vmatprep.subr.bf16.mxu1 %v3590_v8 }
 0x17b   :  { %995 = vmatpush1.bf16.msra.mxu0 %v3609_v15  ;;  %1036 = vmatpush1.bf16.msra.mxu1 %v3613_v16 }
 0x17c   :  { %996 = vmatprep.subr.bf16.mxu0 %v3615_v17  ;;  %1037 = vmatprep.subr.bf16.mxu1 %v3627_v21 }
 0x17f   :  { %997 = vmatpush1.bf16.msra.mxu0 %v3645_v27  ;;  %1038 = vmatpush1.bf16.msra.mxu1 %v3655_v30 }
 0x180   :  { %998 = vmatprep.subr.bf16.mxu0 %v3657_v31  ;;  %1039 = vmatprep.subr.bf16.mxu1 %v3670_v35 }
 0x183   :  { %999 = vmatpush1.bf16.msra.mxu0 %v3689_v43  ;;  %1040 = vmatpush1.bf16.msra.mxu1 %v3693_v45 }
 0x184   :  { %1000 = vmatprep.subr.bf16.mxu0 %v3695_v46  ;;  %1041 = vmatprep.subr.bf16.mxu1 %v3707_v50 }
 0x187   :  { %1001 = vmatpush1.bf16.msra.mxu0 %v3725_v60  ;;  %1042 = vmatpush1.bf16.msra.mxu1 %v3735_v0 }
 0x188   :  { %1002 = vmatprep.subr.bf16.mxu0 %v3737_v1  ;;  %1043 = vmatprep.subr.bf16.mxu1 %v3750_v9 }
 0x18b   :  { %1003 = vmatpush1.bf16.msra.mxu0 %v3769_v19  ;;  %1044 = vmatpush1.bf16.msra.mxu1 %v3773_v20 }
 0x18c   :  { %1004 = vmatprep.subr.bf16.mxu0 %v3775_v22  ;;  %1045 = vmatprep.subr.bf16.mxu1 %v3784_v25 }
 0x18f   :  { %1005 = vmatpush1.bf16.msra.mxu0 %v3793_v29  ;;  %1046 = vmatpush1.bf16.msra.mxu1 %v3797_v32 }
 0x190   :  { %1091 = vmatprep.subr.bf16.mxu0 %v3849_v37  ;;  %1132 = vmatprep.subr.bf16.mxu1 %v3854_v39  ;;  %v550_v39 = vadd.f32 %v3886_v13, %v3896_v26 }
 0x1f2   :  { %v718_v7 = vpop.f32.mrf.mxu0  ;;  %v759_v59 = vpop.f32.mrf.mxu1 }
 0x1f3   :  { %v766_v47 = vadd.f32 %v718_v7, %v3878_v6  ;;  %v768_v28 = vadd.f32 %v759_v59, %v3882_v11 }
 0x1f4   :  { %v720_v33 = vpop.f32.mrf.mxu0  ;;  %v761_v23 = vpop.f32.mrf.mxu1 }
 0x1f5   :  { %3117 = vtanh.f32 %v766_v47  ;;  %v767_v34 = vadd.f32 %v720_v33, %v477_v36  ;;  %v769_v22 = vadd.f32 %v761_v23, %v550_v39 }
 0x1f6   :  { %v722_v29 = vpop.f32.mrf.mxu0  ;;  %v763_v25 = vpop.f32.mrf.mxu1 }
 0x1f7   :  { %3119 = vtanh.f32 %v767_v34 }
 0x1f8   :  { %v723_v32 = vpop.f32.mrf.mxu0  ;;  %v764_v37 = vpop.f32.mrf.mxu1  ;;  %3121 = vtanh.f32 %v768_v28 }
 0x1f9   :  { %3123 = vtanh.f32 %v769_v22 }
 0x202   :  { %v3118_v20 = vpop.eup %3117 }
 0x203   :  { %v774_v12 = vadd.f32 1.0, %v3118_v20 }
 0x204   :  { %v3120_v18 = vpop.eup %3119 }
 0x205   :  { %v775_v6 = vmul.f32 0.5, %v774_v12  ;;  %v776_v7 = vadd.f32 1.0, %v3120_v18  ;;  %v3122_v47 = vpop.eup %3121  ;;  %v5850_v18 = vld [vmem:[#allocation65_spill] sm:$0xff] }
 0x206   :  { %v3124_v32 = vpop.eup %3123 }
 0x207   :  { %v777_v19 = vmul.f32 0.5, %v776_v7  ;;  %v781_v11 = vmul.f32 %v3122_v47, %v775_v6  ;;  %v778_v20 = vadd.f32 1.0, %v3124_v32  ;;  %v5851_v6 = vld [vmem:[#allocation66_spill] sm:$0xff]  ;;  %v5852_v7 = vld [vmem:[#allocation67_spill] sm:$0xff]  ;;  %v5853_v47 = vld [vmem:[#allocation68_spill] sm:$0xff] }
 0x208   :  { %v3043_v32 = vld [vmem:[%s5504_s1 + $0x820] ss:$8 sm:$0xf] }
 0x209   :  { %v780_v29 = vmul.f32 %v777_v19, %v3968_v24  ;;  %v779_v23 = vmul.f32 0.5, %v778_v20  ;;  %v5848_v19 = vld [vmem:[#allocation63_spill] sm:$0xff]  ;;  %v5849_v24 = vld [vmem:[#allocation64_spill] sm:$0xff] }
 0x20a   :  { %v5856_v20 = vld [vmem:[#allocation71_spill] sm:$0xff] }
 0x20b   :  { %v4584_v25 = vadd.f32 %v781_v11, %v780_v29  ;;  %v5854_v11 = vld [vmem:[#allocation69_spill] sm:$0xff]  ;;  %v5855_v29 = vld [vmem:[#allocation70_spill] sm:$0xff] }
 0x20d   :  { %3125 = vtanh.f32 %v4584_v25 }
 0x212   :  { %v840_v37 = vpop.f32.mrf.mxu0  ;;  %v881_v59 = vpop.f32.mrf.mxu1 }
 0x214   :  { %v842_v13 = vpop.f32.mrf.mxu0  ;;  %v4587_v39 = vpop.f32.mrf.mxu1 }
 0x216   :  { %v844_v26 = vpop.f32.mrf.mxu0  ;;  %v885_v36 = vpop.f32.mrf.mxu1 }
 0x217   :  { %v5857_v26 = vld [vmem:[#allocation72_spill] sm:$0xff] }
 0x218   :  { %v845_v33 = vpop.f32.mrf.mxu0  ;;  %v886_v22 = vpop.f32.mrf.mxu1  ;;  %v5858_v36 = vld [vmem:[#allocation36_spill] sm:$0xff] }
 0x219   :  { %v5859_v33 = vsub.s32 0, %v5858_v36 }
 0x21a   :  { %v3126_v28 = vpop.eup %3125 }
 0x21b   :  { %v784_v34 = vmul.f32 %v3126_v28, %v779_v23  ;;  %v4610_v22 = vrot.slane %v3043_v32, %v5859_v33  ;;  %v5861_v23 = vld [vmem:[#allocation73_spill] sm:$0xff]  ;;  %v5862_v28 = vld [vmem:[#allocation74_spill] sm:$0xff] }
 0x21c   :  { %v5869_v33 = vld [vmem:[#allocation77_spill] sm:$0xff] }
 0x21d   :  { %v989_v12 = vpack.c.bf16 %v784_v34, %v784_v34  ;;  %5860 = vst [vmem:[#allocation36_spill] sm:$0xff] %v4610_v22  ;;  %v5863_v34 = vsub.s32 1, %v5858_v36 }
 0x21f   :  { %1023 = vmatmul.mubr.bf16.vlgmr.msra.gmra.mxu0 %v989_v12  ;;  %1064 = vmatmul.mubr.bf16.vlgmr.msra.gmra.mxu1 %v989_v12 }
 0x220   :  { %1092 = vmatpush1.bf16.msra.mxu0 %v3995_v14  ;;  %1133 = vmatpush1.bf16.msra.mxu1 %v3997_v58 }
 0x221   :  { %1093 = vmatprep.subr.bf16.mxu0 %v4007_v55  ;;  %1134 = vmatprep.subr.bf16.mxu1 %v4009_v56 }
 0x222   :  { %1123 = vmatprep.mubr.bf16.mxu0 %v5794_v62  ;;  %1164 = vmatprep.mubr.bf16.mxu1 %v5794_v62 }
 0x224   :  { %1094 = vmatpush1.bf16.msra.mxu0 %v5848_v19  ;;  %1135 = vmatpush1.bf16.msra.mxu1 %v5849_v24 }
 0x225   :  { %1095 = vmatprep.subr.bf16.mxu0 %v5850_v18  ;;  %1136 = vmatprep.subr.bf16.mxu1 %v5851_v6  ;;  %v5870_v6 = vld [vmem:[#allocation78_spill] sm:$0xff] }
 0x228   :  { %1096 = vmatpush1.bf16.msra.mxu0 %v5852_v7  ;;  %1137 = vmatpush1.bf16.msra.mxu1 %v5853_v47  ;;  %v5866_v47 = vld [vmem:[#allocation76_spill] sm:$0xff] }
 0x229   :  { %1097 = vmatprep.subr.bf16.mxu0 %v5854_v11  ;;  %1138 = vmatprep.subr.bf16.mxu1 %v5855_v29  ;;  %v4616_v11 = vrot.slane %v3043_v32, %v5863_v34  ;;  %v5865_v29 = vld [vmem:[#allocation75_spill] sm:$0xff] }
 0x22b   :  { %5864 = vst [vmem:[#allocation120_spill] sm:$0xff] %v4616_v11  ;;  %v843_v18 = vadd.f32 %v842_v13, %v4616_v11  ;;  %v5877_v11 = vld [vmem:[#allocation85_spill] sm:$0xff] }
 0x22c   :  { %1098 = vmatpush1.bf16.msra.mxu0 %v5856_v20  ;;  %1139 = vmatpush1.bf16.msra.mxu1 %v5857_v26  ;;  %v841_v20 = vadd.f32 %v840_v37, %v4610_v22  ;;  %v5867_v26 = vsub.s32 2, %v5858_v36  ;;  %v5873_v22 = vld [vmem:[#allocation81_spill] sm:$0xff] }
 0x22d   :  { %1099 = vmatprep.subr.bf16.mxu0 %v5861_v23  ;;  %1140 = vmatprep.subr.bf16.mxu1 %v5862_v28 }
 0x22e   :  { %v4623_v7 = vrot.slane %v3043_v32, %v5867_v26 }
 0x230   :  { %1100 = vmatpush1.bf16.msra.mxu0 %v5865_v29  ;;  %1141 = vmatpush1.bf16.msra.mxu1 %v5866_v47  ;;  %5868 = vst [vmem:[#allocation121_spill] sm:$0xff] %v4623_v7  ;;  %v5871_v29 = vld [vmem:[#allocation79_spill] sm:$0xff]  ;;  %v5872_v47 = vld [vmem:[#allocation80_spill] sm:$0xff]  ;;  %v882_v37 = vadd.f32 %v881_v59, %v4623_v7  ;;  %v5879_v59 = vsub.s32 3, %v5858_v36 }
 0x231   :  { %1101 = vmatprep.subr.bf16.mxu0 %v5869_v33  ;;  %1142 = vmatprep.subr.bf16.mxu1 %v5870_v6  ;;  %v5874_v33 = vld [vmem:[#allocation82_spill] sm:$0xff]  ;;  %v5886_v36 = vld [vmem:[#allocation92_spill] sm:$0xff] }
 0x232   :  { %v922_v23 = vpop.f32.mrf.mxu0  ;;  %v963_v28 = vpop.f32.mrf.mxu1 }
 0x233   :  { %v970_v34 = vadd.f32 %v922_v23, %v841_v20  ;;  %v972_v55 = vadd.f32 %v963_v28, %v882_v37  ;;  %v5875_v20 = vld [vmem:[#allocation83_spill] sm:$0xff]  ;;  %v5876_v23 = vld [vmem:[#allocation84_spill] sm:$0xff]  ;;  %v5884_v28 = vld [vmem:[#allocation90_spill] sm:$0xff] }
 0x234   :  { %v924_v24 = vpop.f32.mrf.mxu0  ;;  %v965_v19 = vpop.f32.mrf.mxu1  ;;  %1102 = vmatpush1.bf16.msra.mxu0 %v5871_v29  ;;  %1143 = vmatpush1.bf16.msra.mxu1 %v5872_v47  ;;  %v5878_v47 = vld [vmem:[#allocation86_spill] sm:$0xff] }
 0x235   :  { %3127 = vtanh.f32 %v970_v34  ;;  %v971_v26 = vadd.f32 %v924_v24, %v843_v18  ;;  %1103 = vmatprep.subr.bf16.mxu0 %v5873_v22  ;;  %1144 = vmatprep.subr.bf16.mxu1 %v5874_v33  ;;  %v4639_v24 = vrot.slane %v3043_v32, %v5879_v59  ;;  %v5881_v18 = vld [vmem:[#allocation87_spill] sm:$0xff]  ;;  %v5888_v59 = vld [vmem:[#allocation94_spill] sm:$0xff] }
 0x236   :  { %v926_v6 = vpop.f32.mrf.mxu0  ;;  %v967_v56 = vpop.f32.mrf.mxu1  ;;  %v5885_v34 = vld [vmem:[#allocation91_spill] sm:$0xff] }
 0x237   :  { %3129 = vtanh.f32 %v971_v26  ;;  %5880 = vst [vmem:[#allocation81_spill] sm:$0xff] %v4639_v24  ;;  %v5882_v56 = vld [vmem:[#allocation88_spill] sm:$0xff]  ;;  %v5883_v6 = vld [vmem:[#allocation89_spill] sm:$0xff] }
 0x238   :  { %v927_v13 = vpop.f32.mrf.mxu0  ;;  %1104 = vmatpush1.bf16.msra.mxu0 %v5875_v20  ;;  %1145 = vmatpush1.bf16.msra.mxu1 %v5876_v23  ;;  %v968_v29 = vpop.f32.mrf.mxu1  ;;  %3131 = vtanh.f32 %v972_v55  ;;  %v5887_v55 = vld [vmem:[#allocation93_spill] sm:$0xff] }
 0x239   :  { %1105 = vmatprep.subr.bf16.mxu0 %v5877_v11  ;;  %1146 = vmatprep.subr.bf16.mxu1 %v5878_v47  ;;  %v884_v29 = vadd.f32 %v4587_v39, %v4639_v24  ;;  %v5889_v39 = vld [vmem:[#allocation95_spill] sm:$0xff] }
 0x23a   :  { %v5893_v24 = vld [vmem:[#allocation99_spill] sm:$0xff] }
 0x23b   :  { %v973_v32 = vadd.f32 %v965_v19, %v884_v29  ;;  %v5891_v19 = vld [vmem:[#allocation97_spill] sm:$0xff] }
 0x23c   :  { %1106 = vmatpush1.bf16.msra.mxu0 %v5881_v18  ;;  %1147 = vmatpush1.bf16.msra.mxu1 %v4253_v38 }
 0x23d   :  { %1174 = vmatprep.subr.bf16.mxu0 %v5882_v56  ;;  %1215 = vmatprep.subr.bf16.mxu1 %v5883_v6  ;;  %3133 = vtanh.f32 %v973_v32  ;;  %v5894_v56 = vld [vmem:[#allocation100_spill] sm:$0xff]  ;;  %v5897_v32 = vld [vmem:[#allocation103_spill] sm:$0xff] }
 0x23f   :  { %1124 = vmatmul.mubr.bf16.vlgmr.msra.gmra.mxu0 %v989_v12  ;;  %1165 = vmatmul.mubr.bf16.vlgmr.msra.gmra.mxu1 %v989_v12 }
 0x240   :  { %1175 = vmatpush1.bf16.msra.mxu0 %v5884_v28  ;;  %1216 = vmatpush1.bf16.msra.mxu1 %v5885_v34  ;;  %v5890_v34 = vld [vmem:[#allocation96_spill] sm:$0xff] }
 0x241   :  { %1176 = vmatprep.subr.bf16.mxu0 %v5886_v36  ;;  %1217 = vmatprep.subr.bf16.mxu1 %v5887_v55  ;;  %v5892_v36 = vld [vmem:[#allocation98_spill] sm:$0xff] }
 0x242   :  { %v3128_v37 = vpop.eup %3127  ;;  %1206 = vmatprep.mubr.bf16.mxu0 %v5794_v62  ;;  %1247 = vmatprep.mubr.bf16.mxu1 %v5794_v62 }
 0x243   :  { %v978_v26 = vadd.f32 1.0, %v3128_v37 }
 0x244   :  { %v3130_v13 = vpop.eup %3129  ;;  %1177 = vmatpush1.bf16.msra.mxu0 %v5888_v59  ;;  %1218 = vmatpush1.bf16.msra.mxu1 %v5889_v39  ;;  %v5895_v59 = vld [vmem:[#allocation101_spill] sm:$0xff] }
 0x245   :  { %v979_v12 = vmul.f32 0.5, %v978_v26  ;;  %v980_v28 = vadd.f32 1.0, %v3130_v13  ;;  %1178 = vmatprep.subr.bf16.mxu0 %v5890_v34  ;;  %1219 = vmatprep.subr.bf16.mxu1 %v5891_v19  ;;  %v3132_v55 = vpop.eup %3131  ;;  %v5896_v26 = vld [vmem:[#allocation102_spill] sm:$0xff]  ;;  %v5899_v13 = vld [vmem:[#allocation105_spill] sm:$0xff] }
 0x247   :  { %v981_v29 = vmul.f32 0.5, %v980_v28  ;;  %v985_v37 = vmul.f32 %v3132_v55, %v979_v12  ;;  %v5898_v28 = vld [vmem:[#allocation104_spill] sm:$0xff]  ;;  %v5903_v12 = vld [vmem:[#allocation109_spill] sm:$0xff] }
 0x248   :  { %1179 = vmatpush1.bf16.msra.mxu0 %v5892_v36  ;;  %1220 = vmatpush1.bf16.msra.mxu1 %v5893_v24  ;;  %v5900_v36 = vld [vmem:[#allocation106_spill] sm:$0xff]  ;;  %v5902_v55 = vld [vmem:[#allocation108_spill] sm:$0xff] }
 0x249   :  { %v984_v6 = vmul.f32 0.0, %v981_v29  ;;  %1180 = vmatprep.subr.bf16.mxu0 %v5894_v56  ;;  %1221 = vmatprep.subr.bf16.mxu1 %v5895_v59  ;;  %v5901_v29 = vld [vmem:[#allocation107_spill] sm:$0xff] }
 0x24b   :  { %v4661_v39 = vadd.f32 %v985_v37, %v984_v6  ;;  %v3134_v6 = vpop.eup %3133  ;;  %v5904_v37 = vld [vmem:[#allocation111_spill] sm:$0xff] }
 0x24c   :  { %1181 = vmatpush1.bf16.msra.mxu0 %v5896_v26  ;;  %1222 = vmatpush1.bf16.msra.mxu1 %v5897_v32  ;;  %v982_v32 = vadd.f32 1.0, %v3134_v6 }
 0x24d   :  { %3135 = vtanh.f32 %v4661_v39  ;;  %1182 = vmatprep.subr.bf16.mxu0 %v5898_v28  ;;  %1223 = vmatprep.subr.bf16.mxu1 %v5899_v13 }
 0x250   :  { %1183 = vmatpush1.bf16.msra.mxu0 %v5900_v36  ;;  %1224 = vmatpush1.bf16.msra.mxu1 %v5901_v29  ;;  %v983_v36 = vmul.f32 0.5, %v982_v32  ;;  %v5906_v32 = vld [vmem:[#allocation29_spill] sm:$0xff] }
 0x251   :  { %1184 = vmatprep.subr.bf16.mxu0 %v5902_v55  ;;  %1225 = vmatprep.subr.bf16.mxu1 %v5903_v12 }
 0x254   :  { %1185 = vmatpush1.bf16.msra.mxu0 %v4471_v10  ;;  %1226 = vmatpush1.bf16.msra.mxu1 %v5904_v37 }
 0x255   :  { %1186 = vmatprep.subr.bf16.mxu0 %v4483_v5  ;;  %1227 = vmatprep.subr.bf16.mxu1 %v4485_v48 }
 0x258   :  { %1187 = vmatpush1.bf16.msra.mxu0 %v4507_v41  ;;  %1228 = vmatpush1.bf16.msra.mxu1 %v4509_v49 }
 0x259   :  { %1188 = vmatprep.subr.bf16.mxu0 %v4516_v61  ;;  %1229 = vmatprep.subr.bf16.mxu1 %v4518_v3 }
 0x25a   :  { %v3136_v12 = vpop.eup %3135 }
 0x25b   :  { %v988_v55 = vmul.f32 %v3136_v12, %v983_v36  ;;  %v5905_v36 = vld [vmem:[#allocation28_spill] sm:$0xff]  ;;  %v5908_v12 = vld [vmem:[#allocation31_spill] sm:$0xff] }
 0x25c   :  { %1189 = vmatpush1.bf16.msra.mxu0 %v4531_v54  ;;  %1230 = vmatpush1.bf16.msra.mxu1 %v4533_v42 }
 0x25d   :  { %v1173_v6 = vpack.c.bf16 %v988_v55, %v988_v55  ;;  %1276 = vmatprep.subr.bf16.mxu0 %v3502_v40  ;;  %1317 = vmatprep.subr.bf16.mxu1 %v3513_v44  ;;  %v5907_v55 = vld [vmem:[#allocation30_spill] sm:$0xff] }
 0x25f   :  { %1207 = vmatmul.mubr.bf16.vlgmr.msra.gmra.mxu0 %v1173_v6  ;;  %1248 = vmatmul.mubr.bf16.vlgmr.msra.gmra.mxu1 %v1173_v6  ;;  %v5909_v6 = vld [vmem:[#allocation32_spill] sm:$0xff] }
 0x260   :  { %1277 = vmatpush1.bf16.msra.mxu0 %v3530_v51  ;;  %1318 = vmatpush1.bf16.msra.mxu1 %v3533_v52 }
 0x261   :  { %1278 = vmatprep.subr.bf16.mxu0 %v3535_v53  ;;  %1319 = vmatprep.subr.bf16.mxu1 %v3547_v57 }
 0x262   :  { %1308 = vmatprep.mubr.bf16.mxu0 %v5794_v62  ;;  %1349 = vmatprep.mubr.bf16.mxu1 %v5794_v62 }
 0x264   :  { %1279 = vmatpush1.bf16.msra.mxu0 %v3565_v63  ;;  %1320 = vmatpush1.bf16.msra.mxu1 %v3575_v2 }
 0x265   :  { %1280 = vmatprep.subr.bf16.mxu0 %v3577_v4  ;;  %1321 = vmatprep.subr.bf16.mxu1 %v3590_v8 }
 0x268   :  { %1281 = vmatpush1.bf16.msra.mxu0 %v3609_v15  ;;  %1322 = vmatpush1.bf16.msra.mxu1 %v3613_v16 }
 0x269   :  { %1282 = vmatprep.subr.bf16.mxu0 %v3615_v17  ;;  %1323 = vmatprep.subr.bf16.mxu1 %v3627_v21 }
 0x26c   :  { %1283 = vmatpush1.bf16.msra.mxu0 %v3645_v27  ;;  %1324 = vmatpush1.bf16.msra.mxu1 %v3655_v30 }
 0x26d   :  { %1284 = vmatprep.subr.bf16.mxu0 %v3657_v31  ;;  %1325 = vmatprep.subr.bf16.mxu1 %v3670_v35 }
 0x270   :  { %1285 = vmatpush1.bf16.msra.mxu0 %v3689_v43  ;;  %1326 = vmatpush1.bf16.msra.mxu1 %v3693_v45  ;;  %v5913_v45 = vld [vmem:[#allocation37_spill] sm:$0xff] }
 0x271   :  { %1286 = vmatprep.subr.bf16.mxu0 %v3695_v46  ;;  %1327 = vmatprep.subr.bf16.mxu1 %v3707_v50  ;;  %v5910_v46 = vld [vmem:[#allocation33_spill] sm:$0xff]  ;;  %v5911_v50 = vld [vmem:[#allocation34_spill] sm:$0xff] }
 0x274   :  { %1287 = vmatpush1.bf16.msra.mxu0 %v3725_v60  ;;  %1328 = vmatpush1.bf16.msra.mxu1 %v3735_v0  ;;  %v5912_v60 = vld [vmem:[#allocation35_spill] sm:$0xff] }
 0x275   :  { %1288 = vmatprep.subr.bf16.mxu0 %v3737_v1  ;;  %1329 = vmatprep.subr.bf16.mxu1 %v3750_v9 }
 0x278   :  { %1289 = vmatpush1.bf16.msra.mxu0 %v5905_v36  ;;  %1330 = vmatpush1.bf16.msra.mxu1 %v5906_v32  ;;  %v5914_v32 = vld [vmem:[#allocation38_spill] sm:$0xff] }
 0x279   :  { %1290 = vmatprep.subr.bf16.mxu0 %v5907_v55  ;;  %1331 = vmatprep.subr.bf16.mxu1 %v5908_v12  ;;  %v5915_v55 = vld [vmem:[#allocation39_spill] sm:$0xff] }
 0x27c   :  { %1291 = vmatpush1.bf16.msra.mxu0 %v5909_v6  ;;  %1332 = vmatpush1.bf16.msra.mxu1 %v5910_v46 }
 0x27d   :  { %1377 = vmatprep.subr.bf16.mxu0 %v5911_v50  ;;  %1418 = vmatprep.subr.bf16.mxu1 %v5912_v60  ;;  %v5916_v50 = vld [vmem:[#allocation40_spill] sm:$0xff] }
 0x2df   :  { %v1024_v0 = vpop.f32.mrf.mxu0  ;;  %v1065_v1 = vpop.f32.mrf.mxu1 }
 0x2e0   :  { %v1072_v9 = vadd.f32 %v1024_v0, %v5913_v45  ;;  %v1074_v35 = vadd.f32 %v1065_v1, %v5914_v32 }
 0x2e1   :  { %v1026_v43 = vpop.f32.mrf.mxu0  ;;  %v1067_v36 = vpop.f32.mrf.mxu1 }
 0x2e2   :  { %3137 = vtanh.f32 %v1072_v9  ;;  %v1073_v31 = vadd.f32 %v1026_v43, %v5915_v55  ;;  %v1075_v27 = vadd.f32 %v1067_v36, %v5916_v50 }
 0x2e3   :  { %v1028_v12 = vpop.f32.mrf.mxu0  ;;  %v1069_v30 = vpop.f32.mrf.mxu1 }
 0x2e4   :  { %3139 = vtanh.f32 %v1073_v31 }
 0x2e5   :  { %v1029_v6 = vpop.f32.mrf.mxu0  ;;  %v1070_v46 = vpop.f32.mrf.mxu1  ;;  %3141 = vtanh.f32 %v1074_v35 }
 0x2e6   :  { %3143 = vtanh.f32 %v1075_v27  ;;  %v5919_v6 = vld [vmem:[#allocation63_spill] sm:$0xff] }
 0x2ef   :  { %v3138_v60 = vpop.eup %3137 }
 0x2f0   :  { %v1080_v21 = vadd.f32 1.0, %v3138_v60 }
 0x2f1   :  { %v3140_v17 = vpop.eup %3139 }
 0x2f2   :  { %v1081_v16 = vmul.f32 0.5, %v1080_v21  ;;  %v1082_v45 = vadd.f32 1.0, %v3140_v17  ;;  %v3142_v0 = vpop.eup %3141 }
 0x2f3   :  { %v3144_v30 = vpop.eup %3143 }
 0x2f4   :  { %v1083_v9 = vmul.f32 0.5, %v1082_v45  ;;  %v1087_v15 = vmul.f32 %v3142_v0, %v1081_v16  ;;  %v1084_v60 = vadd.f32 1.0, %v3144_v30  ;;  %v5920_v45 = vld [vmem:[#allocation64_spill] sm:$0xff]  ;;  %v5921_v0 = vld [vmem:[#allocation65_spill] sm:$0xff] }
 0x2f5   :  { %v5924_v30 = vld [vmem:[#allocation68_spill] sm:$0xff] }
 0x2f6   :  { %v1086_v1 = vmul.f32 %v1083_v9, %v4584_v25  ;;  %v1085_v32 = vmul.f32 0.5, %v1084_v60  ;;  %v5918_v25 = vld [vmem:[#allocation62_spill] sm:$0xff]  ;;  %v5925_v60 = vld [vmem:[#allocation69_spill] sm:$0xff] }
 0x2f7   :  { %v5922_v9 = vld [vmem:[#allocation66_spill] sm:$0xff] }
 0x2f8   :  { %v4723_v43 = vadd.f32 %v1087_v15, %v1086_v1  ;;  %v5917_v15 = vld [vmem:[#allocation61_spill] sm:$0xff]  ;;  %v5923_v1 = vld [vmem:[#allocation67_spill] sm:$0xff] }
 0x2fa   :  { %3145 = vtanh.f32 %v4723_v43 }
 0x2ff   :  { %v1125_v31 = vpop.f32.mrf.mxu0  ;;  %v1166_v35 = vpop.f32.mrf.mxu1 }
 0x301   :  { %v1127_v46 = vpop.f32.mrf.mxu0  ;;  %v4726_v50 = vpop.f32.mrf.mxu1 }
 0x303   :  { %v1129_v36 = vpop.f32.mrf.mxu0  ;;  %v1170_v21 = vpop.f32.mrf.mxu1 }
 0x304   :  { %v5926_v36 = vld [vmem:[#allocation70_spill] sm:$0xff]  ;;  %v5927_v21 = vld [vmem:[#allocation71_spill] sm:$0xff] }
 0x305   :  { %v1130_v17 = vpop.f32.mrf.mxu0  ;;  %v1171_v27 = vpop.f32.mrf.mxu1 }
 0x306   :  { %v5928_v17 = vld [vmem:[#allocation72_spill] sm:$0xff]  ;;  %v5929_v27 = vld [vmem:[#allocation73_spill] sm:$0xff] }
 0x307   :  { %v3146_v55 = vpop.eup %3145 }
 0x308   :  { %v1090_v16 = vmul.f32 %v3146_v55, %v1085_v32  ;;  %v5930_v32 = vld [vmem:[#allocation74_spill] sm:$0xff]  ;;  %v5931_v55 = vld [vmem:[#allocation75_spill] sm:$0xff] }
 0x30a   :  { %v1275_v12 = vpack.c.bf16 %v1090_v16, %v1090_v16  ;;  %v5932_v16 = vld [vmem:[#allocation76_spill] sm:$0xff] }
 0x30c   :  { %1309 = vmatmul.mubr.bf16.vlgmr.msra.gmra.mxu0 %v1275_v12  ;;  %1350 = vmatmul.mubr.bf16.vlgmr.msra.gmra.mxu1 %v1275_v12 }
 0x30d   :  { %1378 = vmatpush1.bf16.msra.mxu0 %v3995_v14  ;;  %1419 = vmatpush1.bf16.msra.mxu1 %v3997_v58 }
 0x30e   :  { %1379 = vmatprep.subr.bf16.mxu0 %v5917_v15  ;;  %1420 = vmatprep.subr.bf16.mxu1 %v5918_v25 }
 0x30f   :  { %1409 = vmatprep.mubr.bf16.mxu0 %v5794_v62  ;;  %1450 = vmatprep.mubr.bf16.mxu1 %v5794_v62 }
 0x311   :  { %1380 = vmatpush1.bf16.msra.mxu0 %v5919_v6  ;;  %1421 = vmatpush1.bf16.msra.mxu1 %v5920_v45  ;;  %v5936_v45 = vld [vmem:[#allocation120_spill] sm:$0xff] }
 0x312   :  { %1381 = vmatprep.subr.bf16.mxu0 %v5921_v0  ;;  %1422 = vmatprep.subr.bf16.mxu1 %v5922_v9  ;;  %v5933_v9 = vld [vmem:[#allocation36_spill] sm:$0xff]  ;;  %v5934_v0 = vld [vmem:[#allocation77_spill] sm:$0xff] }
 0x315   :  { %1382 = vmatpush1.bf16.msra.mxu0 %v5923_v1  ;;  %1423 = vmatpush1.bf16.msra.mxu1 %v5924_v30  ;;  %v1126_v1 = vadd.f32 %v1125_v31, %v5933_v9  ;;  %v5935_v30 = vld [vmem:[#allocation78_spill] sm:$0xff] }
 0x316   :  { %1383 = vmatprep.subr.bf16.mxu0 %v5925_v60  ;;  %1424 = vmatprep.subr.bf16.mxu1 %v5926_v36 }
 0x319   :  { %1384 = vmatpush1.bf16.msra.mxu0 %v5927_v21  ;;  %1425 = vmatpush1.bf16.msra.mxu1 %v5928_v17  ;;  %v1128_v21 = vadd.f32 %v1127_v46, %v5936_v45 }
 0x31a   :  { %1385 = vmatprep.subr.bf16.mxu0 %v5929_v27  ;;  %1426 = vmatprep.subr.bf16.mxu1 %v5930_v32  ;;  %v5937_v27 = vld [vmem:[#allocation79_spill] sm:$0xff]  ;;  %v5938_v32 = vld [vmem:[#allocation80_spill] sm:$0xff] }
 0x31d   :  { %1386 = vmatpush1.bf16.msra.mxu0 %v5931_v55  ;;  %1427 = vmatpush1.bf16.msra.mxu1 %v5932_v16  ;;  %v1167_v55 = vadd.f32 %v1166_v35, %v4623_v7  ;;  %v5939_v35 = vld [vmem:[#allocation88_spill] sm:$0xff] }
 0x31e   :  { %1387 = vmatprep.subr.bf16.mxu0 %v5934_v0  ;;  %1428 = vmatprep.subr.bf16.mxu1 %v5935_v30 }
 0x31f   :  { %v1208_v60 = vpop.f32.mrf.mxu0  ;;  %v1249_v36 = vpop.f32.mrf.mxu1 }
 0x320   :  { %v1256_v6 = vadd.f32 %v1208_v60, %v1126_v1  ;;  %v1258_v0 = vadd.f32 %v1249_v36, %v1167_v55  ;;  %v5942_v36 = vld [vmem:[#allocation90_spill] sm:$0xff]  ;;  %v5944_v55 = vld [vmem:[#allocation92_spill] sm:$0xff] }
 0x321   :  { %v1210_v17 = vpop.f32.mrf.mxu0  ;;  %v1251_v25 = vpop.f32.mrf.mxu1  ;;  %1388 = vmatpush1.bf16.msra.mxu0 %v5937_v27  ;;  %1429 = vmatpush1.bf16.msra.mxu1 %v5938_v32 }
 0x322   :  { %3147 = vtanh.f32 %v1256_v6  ;;  %v1257_v16 = vadd.f32 %v1210_v17, %v1128_v21  ;;  %1389 = vmatprep.subr.bf16.mxu0 %v5873_v22  ;;  %1430 = vmatprep.subr.bf16.mxu1 %v5874_v33  ;;  %v5940_v6 = vld [vmem:[#allocation89_spill] sm:$0xff]  ;;  %v5943_v21 = vld [vmem:[#allocation91_spill] sm:$0xff] }
 0x323   :  { %v1212_v31 = vpop.f32.mrf.mxu0  ;;  %v1253_v30 = vpop.f32.mrf.mxu1 }
 0x324   :  { %3149 = vtanh.f32 %v1257_v16  ;;  %v5941_v30 = vld [vmem:[#allocation81_spill] sm:$0xff] }
 0x325   :  { %v1213_v46 = vpop.f32.mrf.mxu0  ;;  %v1254_v1 = vpop.f32.mrf.mxu1  ;;  %1390 = vmatpush1.bf16.msra.mxu0 %v5875_v20  ;;  %1431 = vmatpush1.bf16.msra.mxu1 %v5876_v23  ;;  %3151 = vtanh.f32 %v1258_v0  ;;  %v1169_v60 = vadd.f32 %v4726_v50, %v5941_v30  ;;  %v5945_v0 = vld [vmem:[#allocation93_spill] sm:$0xff]  ;;  %v5947_v50 = vld [vmem:[#allocation95_spill] sm:$0xff] }
 0x326   :  { %1391 = vmatprep.subr.bf16.mxu0 %v5877_v11  ;;  %1432 = vmatprep.subr.bf16.mxu1 %v5878_v47  ;;  %v5946_v1 = vld [vmem:[#allocation94_spill] sm:$0xff] }
 0x327   :  { %v1259_v17 = vadd.f32 %v1251_v25, %v1169_v60 }
 0x329   :  { %1392 = vmatpush1.bf16.msra.mxu0 %v5881_v18  ;;  %1433 = vmatpush1.bf16.msra.mxu1 %v4253_v38  ;;  %3153 = vtanh.f32 %v1259_v17  ;;  %v5949_v17 = vld [vmem:[#allocation103_spill] sm:$0xff] }
 0x32a   :  { %1460 = vmatprep.subr.bf16.mxu0 %v5939_v35  ;;  %1501 = vmatprep.subr.bf16.mxu1 %v5940_v6 }
 0x32c   :  { %1410 = vmatmul.mubr.bf16.vlgmr.msra.gmra.mxu0 %v1275_v12  ;;  %1451 = vmatmul.mubr.bf16.vlgmr.msra.gmra.mxu1 %v1275_v12 }
 0x32d   :  { %1461 = vmatpush1.bf16.msra.mxu0 %v5942_v36  ;;  %1502 = vmatpush1.bf16.msra.mxu1 %v5943_v21 }
 0x32e   :  { %1462 = vmatprep.subr.bf16.mxu0 %v5944_v55  ;;  %1503 = vmatprep.subr.bf16.mxu1 %v5945_v0  ;;  %v5948_v0 = vld [vmem:[#allocation98_spill] sm:$0xff] }
 0x32f   :  { %v3148_v16 = vpop.eup %3147  ;;  %1492 = vmatprep.mubr.bf16.mxu0 %v5794_v62  ;;  %1533 = vmatprep.mubr.bf16.mxu1 %v5794_v62 }
 0x330   :  { %v1264_v31 = vadd.f32 1.0, %v3148_v16 }
 0x331   :  { %v3150_v46 = vpop.eup %3149  ;;  %1463 = vmatpush1.bf16.msra.mxu0 %v5946_v1  ;;  %1504 = vmatpush1.bf16.msra.mxu1 %v5947_v50 }
 0x332   :  { %v1265_v12 = vmul.f32 0.5, %v1264_v31  ;;  %v1266_v36 = vadd.f32 1.0, %v3150_v46  ;;  %1464 = vmatprep.subr.bf16.mxu0 %v5890_v34  ;;  %1505 = vmatprep.subr.bf16.mxu1 %v5891_v19  ;;  %v3152_v60 = vpop.eup %3151  ;;  %v5952_v46 = vld [vmem:[#allocation109_spill] sm:$0xff] }
 0x334   :  { %v1267_v25 = vmul.f32 0.5, %v1266_v36  ;;  %v1271_v55 = vmul.f32 %v3152_v60, %v1265_v12  ;;  %v5950_v36 = vld [vmem:[#allocation106_spill] sm:$0xff] }
 0x335   :  { %1465 = vmatpush1.bf16.msra.mxu0 %v5948_v0  ;;  %1506 = vmatpush1.bf16.msra.mxu1 %v5893_v24 }
 0x336   :  { %v1270_v16 = vmul.f32 %v1267_v25, %v4661_v39  ;;  %1466 = vmatprep.subr.bf16.mxu0 %v5894_v56  ;;  %1507 = vmatprep.subr.bf16.mxu1 %v5895_v59  ;;  %v5951_v39 = vld [vmem:[#allocation108_spill] sm:$0xff] }
 0x338   :  { %v4782_v31 = vadd.f32 %v1271_v55, %v1270_v16  ;;  %v3154_v55 = vpop.eup %3153 }
 0x339   :  { %1467 = vmatpush1.bf16.msra.mxu0 %v5896_v26  ;;  %1508 = vmatpush1.bf16.msra.mxu1 %v5949_v17  ;;  %v1268_v12 = vadd.f32 1.0, %v3154_v55 }
 0x33a   :  { %3155 = vtanh.f32 %v4782_v31  ;;  %1468 = vmatprep.subr.bf16.mxu0 %v5898_v28  ;;  %1509 = vmatprep.subr.bf16.mxu1 %v5899_v13 }
 0x33b   :  { %v1269_v25 = vmul.f32 0.5, %v1268_v12  ;;  %v5953_v12 = vld [vmem:[#allocation12_spill] sm:$0xff] }
 0x33d   :  { %1469 = vmatpush1.bf16.msra.mxu0 %v5950_v36  ;;  %1510 = vmatpush1.bf16.msra.mxu1 %v5901_v29 }
 0x33e   :  { %1470 = vmatprep.subr.bf16.mxu0 %v5951_v39  ;;  %1511 = vmatprep.subr.bf16.mxu1 %v5952_v46 }
 0x341   :  { %1471 = vmatpush1.bf16.msra.mxu0 %v4471_v10  ;;  %1512 = vmatpush1.bf16.msra.mxu1 %v5904_v37 }
 0x342   :  { %1472 = vmatprep.subr.bf16.mxu0 %v4483_v5  ;;  %1513 = vmatprep.subr.bf16.mxu1 %v4485_v48 }
 0x345   :  { %1473 = vmatpush1.bf16.msra.mxu0 %v4507_v41  ;;  %1514 = vmatpush1.bf16.msra.mxu1 %v4509_v49 }
 0x346   :  { %1474 = vmatprep.subr.bf16.mxu0 %v4516_v61  ;;  %1515 = vmatprep.subr.bf16.mxu1 %v4518_v3 }
 0x347   :  { %v3156_v60 = vpop.eup %3155 }
 0x348   :  { %v1274_v16 = vmul.f32 %v3156_v60, %v1269_v25  ;;  %v5954_v25 = vld [vmem:[#allocation13_spill] sm:$0xff]  ;;  %v5955_v60 = vld [vmem:[#allocation14_spill] sm:$0xff] }
 0x349   :  { %1475 = vmatpush1.bf16.msra.mxu0 %v4531_v54  ;;  %1516 = vmatpush1.bf16.msra.mxu1 %v4533_v42 }
 0x34a   :  { %v1459_v55 = vpack.c.bf16 %v1274_v16, %v1274_v16  ;;  %1562 = vmatprep.subr.bf16.mxu0 %v3502_v40  ;;  %1603 = vmatprep.subr.bf16.mxu1 %v3513_v44  ;;  %v5956_v16 = vld [vmem:[#allocation15_spill] sm:$0xff] }
 0x34c   :  { %1493 = vmatmul.mubr.bf16.vlgmr.msra.gmra.mxu0 %v1459_v55  ;;  %1534 = vmatmul.mubr.bf16.vlgmr.msra.gmra.mxu1 %v1459_v55  ;;  %v5957_v55 = vld [vmem:[#allocation16_spill] sm:$0xff] }
 0x34d   :  { %1563 = vmatpush1.bf16.msra.mxu0 %v3530_v51  ;;  %1604 = vmatpush1.bf16.msra.mxu1 %v3533_v52  ;;  %v5977_v52 = vld [vmem:[#allocation41_spill] sm:$0xff] }
 0x34e   :  { %1564 = vmatprep.subr.bf16.mxu0 %v3535_v53  ;;  %1605 = vmatprep.subr.bf16.mxu1 %v3547_v57  ;;  %v5958_v57 = vld [vmem:[#allocation17_spill] sm:$0xff]  ;;  %v5959_v53 = vld [vmem:[#allocation18_spill] sm:$0xff] }
 0x34f   :  { %1594 = vmatprep.mubr.bf16.mxu0 %v5794_v62  ;;  %1635 = vmatprep.mubr.bf16.mxu1 %v5794_v62 }
 0x351   :  { %1565 = vmatpush1.bf16.msra.mxu0 %v3565_v63  ;;  %1606 = vmatpush1.bf16.msra.mxu1 %v3575_v2  ;;  %v5960_v63 = vld [vmem:[#allocation19_spill] sm:$0xff]  ;;  %v5961_v2 = vld [vmem:[#allocation20_spill] sm:$0xff] }
 0x352   :  { %1566 = vmatprep.subr.bf16.mxu0 %v3577_v4  ;;  %1607 = vmatprep.subr.bf16.mxu1 %v3590_v8  ;;  %v5962_v4 = vld [vmem:[#allocation21_spill] sm:$0xff]  ;;  %v5963_v8 = vld [vmem:[#allocation22_spill] sm:$0xff] }
 0x355   :  { %1567 = vmatpush1.bf16.msra.mxu0 %v5953_v12  ;;  %1608 = vmatpush1.bf16.msra.mxu1 %v5954_v25  ;;  %v5964_v12 = vld [vmem:[#allocation23_spill] sm:$0xff]  ;;  %v5965_v25 = vld [vmem:[#allocation24_spill] sm:$0xff] }
 0x356   :  { %1568 = vmatprep.subr.bf16.mxu0 %v5955_v60  ;;  %1609 = vmatprep.subr.bf16.mxu1 %v5956_v16  ;;  %v5966_v60 = vld [vmem:[#allocation25_spill] sm:$0xff]  ;;  %v5967_v16 = vld [vmem:[#allocation26_spill] sm:$0xff] }
 0x359   :  { %1569 = vmatpush1.bf16.msra.mxu0 %v5957_v55  ;;  %1610 = vmatpush1.bf16.msra.mxu1 %v5958_v57  ;;  %v5968_v55 = vld [vmem:[#allocation27_spill] sm:$0xff]  ;;  %v5969_v57 = vld [vmem:[#allocation28_spill] sm:$0xff] }
 0x35a   :  { %1570 = vmatprep.subr.bf16.mxu0 %v5959_v53  ;;  %1611 = vmatprep.subr.bf16.mxu1 %v5960_v63  ;;  %v5970_v53 = vld [vmem:[#allocation29_spill] sm:$0xff]  ;;  %v5971_v63 = vld [vmem:[#allocation30_spill] sm:$0xff] }
 0x35d   :  { %1571 = vmatpush1.bf16.msra.mxu0 %v5961_v2  ;;  %1612 = vmatpush1.bf16.msra.mxu1 %v5962_v4  ;;  %v5972_v2 = vld [vmem:[#allocation31_spill] sm:$0xff]  ;;  %v5973_v4 = vld [vmem:[#allocation32_spill] sm:$0xff] }
 0x35e   :  { %1572 = vmatprep.subr.bf16.mxu0 %v5963_v8  ;;  %1613 = vmatprep.subr.bf16.mxu1 %v5964_v12  ;;  %v5974_v8 = vld [vmem:[#allocation33_spill] sm:$0xff]  ;;  %v5975_v12 = vld [vmem:[#allocation34_spill] sm:$0xff] }
 0x361   :  { %1573 = vmatpush1.bf16.msra.mxu0 %v5965_v25  ;;  %1614 = vmatpush1.bf16.msra.mxu1 %v5966_v60  ;;  %v5976_v25 = vld [vmem:[#allocation35_spill] sm:$0xff] }
 0x362   :  { %1574 = vmatprep.subr.bf16.mxu0 %v5967_v16  ;;  %1615 = vmatprep.subr.bf16.mxu1 %v5968_v55 }
 0x365   :  { %1575 = vmatpush1.bf16.msra.mxu0 %v5969_v57  ;;  %1616 = vmatpush1.bf16.msra.mxu1 %v5970_v53  ;;  %v5978_v53 = vld [vmem:[#allocation42_spill] sm:$0xff] }
 0x366   :  { %1576 = vmatprep.subr.bf16.mxu0 %v5971_v63  ;;  %1617 = vmatprep.subr.bf16.mxu1 %v5972_v2  ;;  %v5979_v63 = vld [vmem:[#allocation43_spill] sm:$0xff] }
 0x369   :  { %1577 = vmatpush1.bf16.msra.mxu0 %v5973_v4  ;;  %1618 = vmatpush1.bf16.msra.mxu1 %v5974_v8 }
 0x36a   :  { %1663 = vmatprep.subr.bf16.mxu0 %v5975_v12  ;;  %1704 = vmatprep.subr.bf16.mxu1 %v5976_v25  ;;  %v5980_v12 = vld [vmem:[#allocation44_spill] sm:$0xff] }
 0x3cc   :  { %v1310_v60 = vpop.f32.mrf.mxu0  ;;  %v1351_v16 = vpop.f32.mrf.mxu1 }
 0x3cd   :  { %v1358_v55 = vadd.f32 %v1310_v60, %v5977_v52  ;;  %v1360_v44 = vadd.f32 %v1351_v16, %v5978_v53  ;;  %v5983_v16 = vld [vmem:[#allocation64_spill] sm:$0xff] }
 0x3ce   :  { %v1312_v51 = vpop.f32.mrf.mxu0  ;;  %v1353_v57 = vpop.f32.mrf.mxu1 }
 0x3cf   :  { %3157 = vtanh.f32 %v1358_v55  ;;  %v1359_v40 = vadd.f32 %v1312_v51, %v5979_v63  ;;  %v1361_v54 = vadd.f32 %v1353_v57, %v5980_v12 }
 0x3d0   :  { %v1314_v2 = vpop.f32.mrf.mxu0  ;;  %v1355_v42 = vpop.f32.mrf.mxu1 }
 0x3d1   :  { %3159 = vtanh.f32 %v1359_v40 }
 0x3d2   :  { %v1315_v4 = vpop.f32.mrf.mxu0  ;;  %v1356_v8 = vpop.f32.mrf.mxu1  ;;  %3161 = vtanh.f32 %v1360_v44 }
 0x3d3   :  { %3163 = vtanh.f32 %v1361_v54 }
 0x3dc   :  { %v3158_v25 = vpop.eup %3157 }
 0x3dd   :  { %v1366_v3 = vadd.f32 1.0, %v3158_v25 }
 0x3de   :  { %v3160_v61 = vpop.eup %3159 }
 0x3df   :  { %v1367_v49 = vmul.f32 0.5, %v1366_v3  ;;  %v1368_v52 = vadd.f32 1.0, %v3160_v61  ;;  %v3162_v60 = vpop.eup %3161 }
 0x3e0   :  { %v3164_v40 = vpop.eup %3163 }
 0x3e1   :  { %v1369_v55 = vmul.f32 0.5, %v1368_v52  ;;  %v1373_v41 = vmul.f32 %v3162_v60, %v1367_v49  ;;  %v1370_v4 = vadd.f32 1.0, %v3164_v40  ;;  %v5984_v52 = vld [vmem:[#allocation65_spill] sm:$0xff]  ;;  %v5985_v60 = vld [vmem:[#allocation66_spill] sm:$0xff] }
 0x3e2   :  { %v5988_v40 = vld [vmem:[#allocation69_spill] sm:$0xff] }
 0x3e3   :  { %v1372_v53 = vmul.f32 %v1369_v55, %v4723_v43  ;;  %v1371_v42 = vmul.f32 0.5, %v1370_v4  ;;  %v5982_v43 = vld [vmem:[#allocation63_spill] sm:$0xff]  ;;  %v5989_v4 = vld [vmem:[#allocation70_spill] sm:$0xff] }
 0x3e4   :  { %v5986_v55 = vld [vmem:[#allocation67_spill] sm:$0xff] }
 0x3e5   :  { %v4844_v51 = vadd.f32 %v1373_v41, %v1372_v53  ;;  %v5981_v41 = vld [vmem:[#allocation62_spill] sm:$0xff]  ;;  %v5987_v53 = vld [vmem:[#allocation68_spill] sm:$0xff] }
 0x3e7   :  { %3165 = vtanh.f32 %v4844_v51 }
 0x3ec   :  { %v1411_v63 = vpop.f32.mrf.mxu0  ;;  %v1452_v44 = vpop.f32.mrf.mxu1 }
 0x3ee   :  { %v1413_v2 = vpop.f32.mrf.mxu0  ;;  %v4847_v57 = vpop.f32.mrf.mxu1 }
 0x3f0   :  { %v1415_v8 = vpop.f32.mrf.mxu0  ;;  %v1456_v3 = vpop.f32.mrf.mxu1 }
 0x3f1   :  { %v5990_v8 = vld [vmem:[#allocation71_spill] sm:$0xff]  ;;  %v5991_v3 = vld [vmem:[#allocation72_spill] sm:$0xff] }
 0x3f2   :  { %v1416_v61 = vpop.f32.mrf.mxu0  ;;  %v1457_v54 = vpop.f32.mrf.mxu1 }
 0x3f3   :  { %v5992_v61 = vld [vmem:[#allocation73_spill] sm:$0xff]  ;;  %v5993_v54 = vld [vmem:[#allocation74_spill] sm:$0xff] }
 0x3f4   :  { %v3166_v12 = vpop.eup %3165 }
 0x3f5   :  { %v1376_v49 = vmul.f32 %v3166_v12, %v1371_v42  ;;  %v5994_v42 = vld [vmem:[#allocation75_spill] sm:$0xff]  ;;  %v5995_v12 = vld [vmem:[#allocation76_spill] sm:$0xff] }
 0x3f7   :  { %v1561_v25 = vpack.c.bf16 %v1376_v49, %v1376_v49  ;;  %v1412_v49 = vadd.f32 %v1411_v63, %v5933_v9 }
 0x3f9   :  { %1595 = vmatmul.mubr.bf16.vlgmr.msra.gmra.mxu0 %v1561_v25  ;;  %1636 = vmatmul.mubr.bf16.vlgmr.msra.gmra.mxu1 %v1561_v25 }
 0x3fa   :  { %1664 = vmatpush1.bf16.msra.mxu0 %v3995_v14  ;;  %1705 = vmatpush1.bf16.msra.mxu1 %v3997_v58 }
 0x3fb   :  { %1665 = vmatprep.subr.bf16.mxu0 %v5917_v15  ;;  %1706 = vmatprep.subr.bf16.mxu1 %v5981_v41 }
 0x3fc   :  { %1695 = vmatprep.mubr.bf16.mxu0 %v5794_v62  ;;  %1736 = vmatprep.mubr.bf16.mxu1 %v5794_v62 }
 0x3fe   :  { %1666 = vmatpush1.bf16.msra.mxu0 %v5982_v43  ;;  %1707 = vmatpush1.bf16.msra.mxu1 %v5983_v16 }
 0x3ff   :  { %1667 = vmatprep.subr.bf16.mxu0 %v5984_v52  ;;  %1708 = vmatprep.subr.bf16.mxu1 %v5985_v60 }
 0x402   :  { %1668 = vmatpush1.bf16.msra.mxu0 %v5986_v55  ;;  %1709 = vmatpush1.bf16.msra.mxu1 %v5987_v53  ;;  %v5996_v55 = vld [vmem:[#allocation77_spill] sm:$0xff]  ;;  %v5997_v53 = vld [vmem:[#allocation78_spill] sm:$0xff] }
 0x403   :  { %1669 = vmatprep.subr.bf16.mxu0 %v5988_v40  ;;  %1710 = vmatprep.subr.bf16.mxu1 %v5989_v4 }
 0x406   :  { %1670 = vmatpush1.bf16.msra.mxu0 %v5990_v8  ;;  %1711 = vmatpush1.bf16.msra.mxu1 %v5991_v3  ;;  %v1414_v8 = vadd.f32 %v1413_v2, %v5936_v45 }
 0x407   :  { %1671 = vmatprep.subr.bf16.mxu0 %v5992_v61  ;;  %1712 = vmatprep.subr.bf16.mxu1 %v5993_v54 }
 0x40a   :  { %1672 = vmatpush1.bf16.msra.mxu0 %v5994_v42  ;;  %1713 = vmatpush1.bf16.msra.mxu1 %v5995_v12  ;;  %v1453_v42 = vadd.f32 %v1452_v44, %v4623_v7  ;;  %v1455_v44 = vadd.f32 %v4847_v57, %v5941_v30 }
 0x40b   :  { %1673 = vmatprep.subr.bf16.mxu0 %v5996_v55  ;;  %1714 = vmatprep.subr.bf16.mxu1 %v5997_v53 }
 0x40c   :  { %v1494_v40 = vpop.f32.mrf.mxu0  ;;  %v1535_v4 = vpop.f32.mrf.mxu1 }
 0x40d   :  { %v1542_v60 = vadd.f32 %v1494_v40, %v1412_v49  ;;  %v1544_v55 = vadd.f32 %v1535_v4, %v1453_v42  ;;  %v5999_v4 = vld [vmem:[#allocation92_spill] sm:$0xff] }
 0x40e   :  { %v1496_v3 = vpop.f32.mrf.mxu0  ;;  %v1537_v52 = vpop.f32.mrf.mxu1  ;;  %1674 = vmatpush1.bf16.msra.mxu0 %v5937_v27  ;;  %1715 = vmatpush1.bf16.msra.mxu1 %v5938_v32 }
 0x40f   :  { %3167 = vtanh.f32 %v1542_v60  ;;  %v1543_v12 = vadd.f32 %v1496_v3, %v1414_v8  ;;  %1675 = vmatprep.subr.bf16.mxu0 %v5873_v22  ;;  %1716 = vmatprep.subr.bf16.mxu1 %v5874_v33  ;;  %v5998_v60 = vld [vmem:[#allocation90_spill] sm:$0xff] }
 0x410   :  { %v1498_v63 = vpop.f32.mrf.mxu0  ;;  %v1539_v53 = vpop.f32.mrf.mxu1 }
 0x411   :  { %3169 = vtanh.f32 %v1543_v12  ;;  %v1545_v53 = vadd.f32 %v1537_v52, %v1455_v44  ;;  %v6001_v44 = vld [vmem:[#allocation114_spill] sm:$0xff] }
 0x412   :  { %v1499_v2 = vpop.f32.mrf.mxu0  ;;  %v1540_v40 = vpop.f32.mrf.mxu1  ;;  %1676 = vmatpush1.bf16.msra.mxu0 %v5875_v20  ;;  %1717 = vmatpush1.bf16.msra.mxu1 %v5876_v23  ;;  %3171 = vtanh.f32 %v1544_v55  ;;  %v6000_v55 = vld [vmem:[#allocation93_spill] sm:$0xff] }
 0x413   :  { %1677 = vmatprep.subr.bf16.mxu0 %v5877_v11  ;;  %1718 = vmatprep.subr.bf16.mxu1 %v5878_v47  ;;  %3173 = vtanh.f32 %v1545_v53  ;;  %v6002_v53 = vld [vmem:[#allocation115_spill] sm:$0xff] }
 0x416   :  { %1678 = vmatpush1.bf16.msra.mxu0 %v5881_v18  ;;  %1719 = vmatpush1.bf16.msra.mxu1 %v4253_v38 }
 0x417   :  { %1746 = vmatprep.subr.bf16.mxu0 %v5939_v35  ;;  %1787 = vmatprep.subr.bf16.mxu1 %v5940_v6 }
 0x419   :  { %1696 = vmatmul.mubr.bf16.vlgmr.msra.gmra.mxu0 %v1561_v25  ;;  %1737 = vmatmul.mubr.bf16.vlgmr.msra.gmra.mxu1 %v1561_v25 }
 0x41a   :  { %1747 = vmatpush1.bf16.msra.mxu0 %v5998_v60  ;;  %1788 = vmatpush1.bf16.msra.mxu1 %v5943_v21 }
 0x41b   :  { %1748 = vmatprep.subr.bf16.mxu0 %v5999_v4  ;;  %1789 = vmatprep.subr.bf16.mxu1 %v6000_v55 }
 0x41c   :  { %v3168_v8 = vpop.eup %3167  ;;  %1778 = vmatprep.mubr.bf16.mxu0 %v5794_v62  ;;  %1819 = vmatprep.mubr.bf16.mxu1 %v5794_v62 }
 0x41d   :  { %v1550_v3 = vadd.f32 1.0, %v3168_v8 }
 0x41e   :  { %v3170_v42 = vpop.eup %3169  ;;  %1749 = vmatpush1.bf16.msra.mxu0 %v5946_v1  ;;  %1790 = vmatpush1.bf16.msra.mxu1 %v5947_v50 }
 0x41f   :  { %v1551_v57 = vmul.f32 0.5, %v1550_v3  ;;  %v1552_v25 = vadd.f32 1.0, %v3170_v42  ;;  %1750 = vmatprep.subr.bf16.mxu0 %v5890_v34  ;;  %1791 = vmatprep.subr.bf16.mxu1 %v5891_v19  ;;  %v3172_v12 = vpop.eup %3171  ;;  %v6003_v3 = vld [vmem:[#allocation116_spill] sm:$0xff]  ;;  %v6004_v42 = vld [vmem:[#allocation117_spill] sm:$0xff] }
 0x421   :  { %v1553_v52 = vmul.f32 0.5, %v1552_v25  ;;  %v1557_v63 = vmul.f32 %v3172_v12, %v1551_v57  ;;  %v6006_v12 = vld [vmem:[#allocation119_spill] sm:$0xff] }
 0x422   :  { %1751 = vmatpush1.bf16.msra.mxu0 %v5948_v0  ;;  %1792 = vmatpush1.bf16.msra.mxu1 %v5893_v24 }
 0x423   :  { %v1556_v49 = vmul.f32 %v1553_v52, %v4782_v31  ;;  %1752 = vmatprep.subr.bf16.mxu0 %v5894_v56  ;;  %1793 = vmatprep.subr.bf16.mxu1 %v5895_v59  ;;  %v3174_v31 = vpop.eup %3173  ;;  %v6005_v52 = vld [vmem:[#allocation118_spill] sm:$0xff] }
 0x424   :  { %v1554_v40 = vadd.f32 1.0, %v3174_v31  ;;  %v6008_v31 = vld [vmem:[#allocation3_spill] sm:$0xff] }
 0x425   :  { %v4903_v2 = vadd.f32 %v1557_v63, %v1556_v49  ;;  %v6007_v63 = vld [vmem:[#allocation2_spill] sm:$0xff] }
 0x426   :  { %1753 = vmatpush1.bf16.msra.mxu0 %v5896_v26  ;;  %1794 = vmatpush1.bf16.msra.mxu1 %v5949_v17  ;;  %v1555_v8 = vmul.f32 0.5, %v1554_v40  ;;  %v6010_v40 = vld [vmem:[#allocation5_spill] sm:$0xff] }
 0x427   :  { %3175 = vtanh.f32 %v4903_v2  ;;  %1754 = vmatprep.subr.bf16.mxu0 %v5898_v28  ;;  %1795 = vmatprep.subr.bf16.mxu1 %v5899_v13 }
 0x42a   :  { %1755 = vmatpush1.bf16.msra.mxu0 %v5950_v36  ;;  %1796 = vmatpush1.bf16.msra.mxu1 %v5901_v29 }
 0x42b   :  { %1756 = vmatprep.subr.bf16.mxu0 %v5951_v39  ;;  %1797 = vmatprep.subr.bf16.mxu1 %v5952_v46 }
 0x42e   :  { %1757 = vmatpush1.bf16.msra.mxu0 %v4471_v10  ;;  %1798 = vmatpush1.bf16.msra.mxu1 %v5904_v37 }
 0x42f   :  { %1758 = vmatprep.subr.bf16.mxu0 %v4483_v5  ;;  %1799 = vmatprep.subr.bf16.mxu1 %v4485_v48 }
 0x432   :  { %1759 = vmatpush1.bf16.msra.mxu0 %v6001_v44  ;;  %1800 = vmatpush1.bf16.msra.mxu1 %v6002_v53  ;;  %v6009_v44 = vld [vmem:[#allocation4_spill] sm:$0xff] }
 0x433   :  { %1760 = vmatprep.subr.bf16.mxu0 %v6003_v3  ;;  %1801 = vmatprep.subr.bf16.mxu1 %v6004_v42  ;;  %v6011_v3 = vld [vmem:[#allocation6_spill] sm:$0xff]  ;;  %v6012_v42 = vld [vmem:[#allocation7_spill] sm:$0xff] }
 0x434   :  { %v3176_v57 = vpop.eup %3175 }
 0x435   :  { %v1560_v25 = vmul.f32 %v3176_v57, %v1555_v8  ;;  %v6013_v8 = vld [vmem:[#allocation8_spill] sm:$0xff]  ;;  %v6014_v57 = vld [vmem:[#allocation9_spill] sm:$0xff] }
 0x436   :  { %1761 = vmatpush1.bf16.msra.mxu0 %v6005_v52  ;;  %1802 = vmatpush1.bf16.msra.mxu1 %v6006_v12  ;;  %v6023_v12 = vld [vmem:[#allocation18_spill] sm:$0xff]  ;;  %v6041_v52 = vld [vmem:[#allocation45_spill] sm:$0xff] }
 0x437   :  { %v1745_v49 = vpack.c.bf16 %v1560_v25, %v1560_v25  ;;  %1848 = vmatprep.subr.bf16.mxu0 %v6007_v63  ;;  %1889 = vmatprep.subr.bf16.mxu1 %v6008_v31  ;;  %v6015_v25 = vld [vmem:[#allocation10_spill] sm:$0xff]  ;;  %v6016_v31 = vld [vmem:[#allocation11_spill] sm:$0xff]  ;;  %v6022_v63 = vld [vmem:[#allocation17_spill] sm:$0xff] }
 0x439   :  { %1779 = vmatmul.mubr.bf16.vlgmr.msra.gmra.mxu0 %v1745_v49  ;;  %1820 = vmatmul.mubr.bf16.vlgmr.msra.gmra.mxu1 %v1745_v49  ;;  %v6017_v49 = vld [vmem:[#allocation12_spill] sm:$0xff] }
 0x43a   :  { %1849 = vmatpush1.bf16.msra.mxu0 %v6009_v44  ;;  %1890 = vmatpush1.bf16.msra.mxu1 %v6010_v40  ;;  %v6018_v44 = vld [vmem:[#allocation13_spill] sm:$0xff]  ;;  %v6019_v40 = vld [vmem:[#allocation14_spill] sm:$0xff] }
 0x43b   :  { %1850 = vmatprep.subr.bf16.mxu0 %v6011_v3  ;;  %1891 = vmatprep.subr.bf16.mxu1 %v6012_v42  ;;  %v6020_v3 = vld [vmem:[#allocation15_spill] sm:$0xff]  ;;  %v6021_v42 = vld [vmem:[#allocation16_spill] sm:$0xff] }
 0x43c   :  { %1880 = vmatprep.mubr.bf16.mxu0 %v5794_v62  ;;  %1921 = vmatprep.mubr.bf16.mxu1 %v5794_v62 }
 0x43e   :  { %1851 = vmatpush1.bf16.msra.mxu0 %v6013_v8  ;;  %1892 = vmatpush1.bf16.msra.mxu1 %v6014_v57  ;;  %v6024_v8 = vld [vmem:[#allocation19_spill] sm:$0xff]  ;;  %v6025_v57 = vld [vmem:[#allocation20_spill] sm:$0xff] }
 0x43f   :  { %1852 = vmatprep.subr.bf16.mxu0 %v6015_v25  ;;  %1893 = vmatprep.subr.bf16.mxu1 %v6016_v31  ;;  %v6026_v25 = vld [vmem:[#allocation21_spill] sm:$0xff]  ;;  %v6027_v31 = vld [vmem:[#allocation22_spill] sm:$0xff] }
 0x442   :  { %1853 = vmatpush1.bf16.msra.mxu0 %v6017_v49  ;;  %1894 = vmatpush1.bf16.msra.mxu1 %v6018_v44  ;;  %v6028_v49 = vld [vmem:[#allocation23_spill] sm:$0xff]  ;;  %v6029_v44 = vld [vmem:[#allocation24_spill] sm:$0xff] }
 0x443   :  { %1854 = vmatprep.subr.bf16.mxu0 %v6019_v40  ;;  %1895 = vmatprep.subr.bf16.mxu1 %v6020_v3  ;;  %v6030_v40 = vld [vmem:[#allocation25_spill] sm:$0xff]  ;;  %v6031_v3 = vld [vmem:[#allocation26_spill] sm:$0xff] }
 0x446   :  { %1855 = vmatpush1.bf16.msra.mxu0 %v6021_v42  ;;  %1896 = vmatpush1.bf16.msra.mxu1 %v6022_v63  ;;  %v6032_v42 = vld [vmem:[#allocation27_spill] sm:$0xff]  ;;  %v6033_v63 = vld [vmem:[#allocation28_spill] sm:$0xff] }
 0x447   :  { %1856 = vmatprep.subr.bf16.mxu0 %v6023_v12  ;;  %1897 = vmatprep.subr.bf16.mxu1 %v6024_v8  ;;  %v6034_v12 = vld [vmem:[#allocation29_spill] sm:$0xff]  ;;  %v6035_v8 = vld [vmem:[#allocation30_spill] sm:$0xff] }
 0x44a   :  { %1857 = vmatpush1.bf16.msra.mxu0 %v6025_v57  ;;  %1898 = vmatpush1.bf16.msra.mxu1 %v6026_v25  ;;  %v6036_v57 = vld [vmem:[#allocation31_spill] sm:$0xff]  ;;  %v6037_v25 = vld [vmem:[#allocation32_spill] sm:$0xff] }
 0x44b   :  { %1858 = vmatprep.subr.bf16.mxu0 %v6027_v31  ;;  %1899 = vmatprep.subr.bf16.mxu1 %v6028_v49  ;;  %v6038_v31 = vld [vmem:[#allocation33_spill] sm:$0xff]  ;;  %v6039_v49 = vld [vmem:[#allocation34_spill] sm:$0xff] }
 0x44e   :  { %1859 = vmatpush1.bf16.msra.mxu0 %v6029_v44  ;;  %1900 = vmatpush1.bf16.msra.mxu1 %v6030_v40  ;;  %v6040_v44 = vld [vmem:[#allocation35_spill] sm:$0xff] }
 0x44f   :  { %1860 = vmatprep.subr.bf16.mxu0 %v6031_v3  ;;  %1901 = vmatprep.subr.bf16.mxu1 %v6032_v42 }
 0x452   :  { %1861 = vmatpush1.bf16.msra.mxu0 %v6033_v63  ;;  %1902 = vmatpush1.bf16.msra.mxu1 %v6034_v12  ;;  %v6042_v12 = vld [vmem:[#allocation46_spill] sm:$0xff] }
 0x453   :  { %1862 = vmatprep.subr.bf16.mxu0 %v6035_v8  ;;  %1903 = vmatprep.subr.bf16.mxu1 %v6036_v57  ;;  %v6043_v8 = vld [vmem:[#allocation47_spill] sm:$0xff] }
 0x456   :  { %1863 = vmatpush1.bf16.msra.mxu0 %v6037_v25  ;;  %1904 = vmatpush1.bf16.msra.mxu1 %v6038_v31 }
 0x457   :  { %1949 = vmatprep.subr.bf16.mxu0 %v6039_v49  ;;  %1990 = vmatprep.subr.bf16.mxu1 %v6040_v44  ;;  %v6044_v49 = vld [vmem:[#allocation48_spill] sm:$0xff] }
 0x4b9   :  { %v1596_v40 = vpop.f32.mrf.mxu0  ;;  %v1637_v3 = vpop.f32.mrf.mxu1 }
 0x4ba   :  { %v1644_v42 = vadd.f32 %v1596_v40, %v6041_v52  ;;  %v1646_v48 = vadd.f32 %v1637_v3, %v6042_v12 }
 0x4bb   :  { %v1598_v53 = vpop.f32.mrf.mxu0  ;;  %v1639_v63 = vpop.f32.mrf.mxu1 }
 0x4bc   :  { %3177 = vtanh.f32 %v1644_v42  ;;  %v1645_v5 = vadd.f32 %v1598_v53, %v6043_v8  ;;  %v1647_v10 = vadd.f32 %v1639_v63, %v6044_v49  ;;  %v6047_v49 = vld [vmem:[#allocation67_spill] sm:$0xff] }
 0x4bd   :  { %v1600_v57 = vpop.f32.mrf.mxu0  ;;  %v1641_v37 = vpop.f32.mrf.mxu1 }
 0x4be   :  { %3179 = vtanh.f32 %v1645_v5 }
 0x4bf   :  { %v1601_v25 = vpop.f32.mrf.mxu0  ;;  %v1642_v31 = vpop.f32.mrf.mxu1  ;;  %3181 = vtanh.f32 %v1646_v48 }
 0x4c0   :  { %3183 = vtanh.f32 %v1647_v10 }
 0x4c9   :  { %v3178_v44 = vpop.eup %3177 }
 0x4ca   :  { %v1652_v46 = vadd.f32 1.0, %v3178_v44 }
 0x4cb   :  { %v3180_v39 = vpop.eup %3179 }
 0x4cc   :  { %v1653_v29 = vmul.f32 0.5, %v1652_v46  ;;  %v1654_v52 = vadd.f32 1.0, %v3180_v39  ;;  %v3182_v40 = vpop.eup %3181 }
 0x4cd   :  { %v3184_v5 = vpop.eup %3183 }
 0x4ce   :  { %v1655_v42 = vmul.f32 0.5, %v1654_v52  ;;  %v1659_v36 = vmul.f32 %v3182_v40, %v1653_v29  ;;  %v1656_v44 = vadd.f32 1.0, %v3184_v5  ;;  %v6048_v52 = vld [vmem:[#allocation68_spill] sm:$0xff]  ;;  %v6049_v40 = vld [vmem:[#allocation69_spill] sm:$0xff] }
 0x4cf   :  { %v6052_v5 = vld [vmem:[#allocation72_spill] sm:$0xff] }
 0x4d0   :  { %v1658_v3 = vmul.f32 %v1655_v42, %v4844_v51  ;;  %v1657_v8 = vmul.f32 0.5, %v1656_v44  ;;  %v6046_v51 = vld [vmem:[#allocation66_spill] sm:$0xff]  ;;  %v6053_v44 = vld [vmem:[#allocation75_spill] sm:$0xff] }
 0x4d1   :  { %v6050_v42 = vld [vmem:[#allocation70_spill] sm:$0xff] }
 0x4d2   :  { %v4965_v53 = vadd.f32 %v1659_v36, %v1658_v3  ;;  %v6045_v36 = vld [vmem:[#allocation65_spill] sm:$0xff]  ;;  %v6051_v3 = vld [vmem:[#allocation71_spill] sm:$0xff] }
 0x4d4   :  { %3185 = vtanh.f32 %v4965_v53 }
 0x4d9   :  { %v1697_v37 = vpop.f32.mrf.mxu0  ;;  %v1738_v48 = vpop.f32.mrf.mxu1 }
 0x4db   :  { %v1699_v12 = vpop.f32.mrf.mxu0  ;;  %v4968_v63 = vpop.f32.mrf.mxu1 }
 0x4dd   :  { %v1701_v31 = vpop.f32.mrf.mxu0  ;;  %v1742_v46 = vpop.f32.mrf.mxu1 }
 0x4de   :  { %v6054_v31 = vld [vmem:[#allocation76_spill] sm:$0xff]  ;;  %v1698_v46 = vadd.f32 %v1697_v37, %v5933_v9 }
 0x4df   :  { %v1702_v39 = vpop.f32.mrf.mxu0  ;;  %v1743_v10 = vpop.f32.mrf.mxu1 }
 0x4e0   :  { %v6055_v39 = vld [vmem:[#allocation77_spill] sm:$0xff]  ;;  %v6056_v10 = vld [vmem:[#allocation78_spill] sm:$0xff] }
 0x4e1   :  { %v3186_v57 = vpop.eup %3185 }
 0x4e2   :  { %v1662_v29 = vmul.f32 %v3186_v57, %v1657_v8 }
 0x4e4   :  { %v1847_v25 = vpack.c.bf16 %v1662_v29, %v1662_v29  ;;  %v1700_v29 = vadd.f32 %v1699_v12, %v5936_v45 }
 0x4e6   :  { %1881 = vmatmul.mubr.bf16.vlgmr.msra.gmra.mxu0 %v1847_v25  ;;  %1922 = vmatmul.mubr.bf16.vlgmr.msra.gmra.mxu1 %v1847_v25 }
 0x4e7   :  { %1950 = vmatpush1.bf16.msra.mxu0 %v3995_v14  ;;  %1991 = vmatpush1.bf16.msra.mxu1 %v3997_v58 }
 0x4e8   :  { %1951 = vmatprep.subr.bf16.mxu0 %v5917_v15  ;;  %1992 = vmatprep.subr.bf16.mxu1 %v5981_v41 }
 0x4e9   :  { %1981 = vmatprep.mubr.bf16.mxu0 %v5794_v62  ;;  %2022 = vmatprep.mubr.bf16.mxu1 %v5794_v62 }
 0x4eb   :  { %1952 = vmatpush1.bf16.msra.mxu0 %v5982_v43  ;;  %1993 = vmatpush1.bf16.msra.mxu1 %v5983_v16 }
 0x4ec   :  { %1953 = vmatprep.subr.bf16.mxu0 %v6045_v36  ;;  %1994 = vmatprep.subr.bf16.mxu1 %v6046_v51 }
 0x4ef   :  { %1954 = vmatpush1.bf16.msra.mxu0 %v6047_v49  ;;  %1995 = vmatpush1.bf16.msra.mxu1 %v6048_v52 }
 0x4f0   :  { %1955 = vmatprep.subr.bf16.mxu0 %v6049_v40  ;;  %1996 = vmatprep.subr.bf16.mxu1 %v6050_v42 }
 0x4f3   :  { %1956 = vmatpush1.bf16.msra.mxu0 %v6051_v3  ;;  %1997 = vmatpush1.bf16.msra.mxu1 %v6052_v5 }
 0x4f4   :  { %1957 = vmatprep.subr.bf16.mxu0 %v5992_v61  ;;  %1998 = vmatprep.subr.bf16.mxu1 %v5993_v54 }
 0x4f7   :  { %1958 = vmatpush1.bf16.msra.mxu0 %v6053_v44  ;;  %1999 = vmatpush1.bf16.msra.mxu1 %v6054_v31  ;;  %v1739_v44 = vadd.f32 %v1738_v48, %v4623_v7  ;;  %v1741_v48 = vadd.f32 %v4968_v63, %v5941_v30 }
 0x4f8   :  { %1959 = vmatprep.subr.bf16.mxu0 %v6055_v39  ;;  %2000 = vmatprep.subr.bf16.mxu1 %v6056_v10 }
 0x4f9   :  { %v1780_v8 = vpop.f32.mrf.mxu0  ;;  %v1821_v57 = vpop.f32.mrf.mxu1 }
 0x4fa   :  { %v1828_v3 = vadd.f32 %v1780_v8, %v1698_v46  ;;  %v1830_v39 = vadd.f32 %v1821_v57, %v1739_v44 }
 0x4fb   :  { %v1782_v5 = vpop.f32.mrf.mxu0  ;;  %v1823_v42 = vpop.f32.mrf.mxu1  ;;  %1960 = vmatpush1.bf16.msra.mxu0 %v5937_v27  ;;  %2001 = vmatpush1.bf16.msra.mxu1 %v5938_v32 }
 0x4fc   :  { %3187 = vtanh.f32 %v1828_v3  ;;  %v1829_v31 = vadd.f32 %v1782_v5, %v1700_v29  ;;  %1961 = vmatprep.subr.bf16.mxu0 %v5873_v22  ;;  %2002 = vmatprep.subr.bf16.mxu1 %v5874_v33  ;;  %v1831_v3 = vadd.f32 %v1823_v42, %v1741_v48  ;;  %v6057_v29 = vld [vmem:[#allocation106_spill] sm:$0xff] }
 0x4fd   :  { %v1784_v37 = vpop.f32.mrf.mxu0  ;;  %v1825_v10 = vpop.f32.mrf.mxu1  ;;  %v6061_v48 = vld [vmem:[#allocation110_spill] sm:$0xff] }
 0x4fe   :  { %3189 = vtanh.f32 %v1829_v31  ;;  %v6059_v37 = vld [vmem:[#allocation108_spill] sm:$0xff] }
 0x4ff   :  { %v1785_v12 = vpop.f32.mrf.mxu0  ;;  %v1826_v46 = vpop.f32.mrf.mxu1  ;;  %1962 = vmatpush1.bf16.msra.mxu0 %v5875_v20  ;;  %2003 = vmatpush1.bf16.msra.mxu1 %v5876_v23  ;;  %3191 = vtanh.f32 %v1830_v39 }
 0x500   :  { %1963 = vmatprep.subr.bf16.mxu0 %v5877_v11  ;;  %2004 = vmatprep.subr.bf16.mxu1 %v5878_v47  ;;  %3193 = vtanh.f32 %v1831_v3  ;;  %v6060_v12 = vld [vmem:[#allocation109_spill] sm:$0xff]  ;;  %v6062_v3 = vld [vmem:[#allocation111_spill] sm:$0xff] }
 0x503   :  { %1964 = vmatpush1.bf16.msra.mxu0 %v5881_v18  ;;  %2005 = vmatpush1.bf16.msra.mxu1 %v4253_v38 }
 0x504   :  { %2032 = vmatprep.subr.bf16.mxu0 %v5939_v35  ;;  %2073 = vmatprep.subr.bf16.mxu1 %v5940_v6 }
 0x506   :  { %1982 = vmatmul.mubr.bf16.vlgmr.msra.gmra.mxu0 %v1847_v25  ;;  %2023 = vmatmul.mubr.bf16.vlgmr.msra.gmra.mxu1 %v1847_v25 }
 0x507   :  { %2033 = vmatpush1.bf16.msra.mxu0 %v5998_v60  ;;  %2074 = vmatpush1.bf16.msra.mxu1 %v5943_v21 }
 0x508   :  { %2034 = vmatprep.subr.bf16.mxu0 %v5999_v4  ;;  %2075 = vmatprep.subr.bf16.mxu1 %v6000_v55 }
 0x509   :  { %v3188_v5 = vpop.eup %3187  ;;  %2064 = vmatprep.mubr.bf16.mxu0 %v5794_v62  ;;  %2105 = vmatprep.mubr.bf16.mxu1 %v5794_v62 }
 0x50a   :  { %v1836_v44 = vadd.f32 1.0, %v3188_v5 }
 0x50b   :  { %v3190_v31 = vpop.eup %3189  ;;  %2035 = vmatpush1.bf16.msra.mxu0 %v5946_v1  ;;  %2076 = vmatpush1.bf16.msra.mxu1 %v5947_v50 }
 0x50c   :  { %v1837_v63 = vmul.f32 0.5, %v1836_v44  ;;  %v1838_v25 = vadd.f32 1.0, %v3190_v31  ;;  %2036 = vmatprep.subr.bf16.mxu0 %v5890_v34  ;;  %2077 = vmatprep.subr.bf16.mxu1 %v5891_v19  ;;  %v3192_v39 = vpop.eup %3191  ;;  %v6063_v44 = vld [vmem:[#allocation112_spill] sm:$0xff]  ;;  %v6064_v31 = vld [vmem:[#allocation113_spill] sm:$0xff] }
 0x50d   :  { %v3194_v46 = vpop.eup %3193 }
 0x50e   :  { %v1839_v42 = vmul.f32 0.5, %v1838_v25  ;;  %v1843_v8 = vmul.f32 %v3192_v39, %v1837_v63  ;;  %v1840_v5 = vadd.f32 1.0, %v3194_v46  ;;  %v6065_v63 = vld [vmem:[#allocation114_spill] sm:$0xff]  ;;  %v6066_v25 = vld [vmem:[#allocation115_spill] sm:$0xff]  ;;  %v6067_v39 = vld [vmem:[#allocation116_spill] sm:$0xff] }
 0x50f   :  { %2037 = vmatpush1.bf16.msra.mxu0 %v5948_v0  ;;  %2078 = vmatpush1.bf16.msra.mxu1 %v5893_v24 }
 0x510   :  { %v1842_v10 = vmul.f32 %v1839_v42, %v4903_v2  ;;  %2038 = vmatprep.subr.bf16.mxu0 %v5894_v56  ;;  %2079 = vmatprep.subr.bf16.mxu1 %v5895_v59  ;;  %v6058_v2 = vld [vmem:[#allocation107_spill] sm:$0xff]  ;;  %v1841_v42 = vmul.f32 0.5, %v1840_v5  ;;  %v6074_v5 = vld [vmem:[#allocation5_spill] sm:$0xff] }
 0x512   :  { %v5024_v57 = vadd.f32 %v1843_v8, %v1842_v10  ;;  %v6068_v10 = vld [vmem:[#allocation117_spill] sm:$0xff] }
 0x513   :  { %2039 = vmatpush1.bf16.msra.mxu0 %v5896_v26  ;;  %2080 = vmatpush1.bf16.msra.mxu1 %v5949_v17 }
 0x514   :  { %3195 = vtanh.f32 %v5024_v57  ;;  %2040 = vmatprep.subr.bf16.mxu0 %v5898_v28  ;;  %2081 = vmatprep.subr.bf16.mxu1 %v5899_v13 }
 0x517   :  { %2041 = vmatpush1.bf16.msra.mxu0 %v6057_v29  ;;  %2082 = vmatpush1.bf16.msra.mxu1 %v6058_v2 }
 0x518   :  { %2042 = vmatprep.subr.bf16.mxu0 %v6059_v37  ;;  %2083 = vmatprep.subr.bf16.mxu1 %v6060_v12  ;;  %v6069_v37 = vld [vmem:[#allocation118_spill] sm:$0xff] }
 0x51b   :  { %2043 = vmatpush1.bf16.msra.mxu0 %v6061_v48  ;;  %2084 = vmatpush1.bf16.msra.mxu1 %v6062_v3  ;;  %v6070_v48 = vld [vmem:[#allocation119_spill] sm:$0xff]  ;;  %v6071_v3 = vld [vmem:[#allocation2_spill] sm:$0xff] }
 0x51c   :  { %2044 = vmatprep.subr.bf16.mxu0 %v6063_v44  ;;  %2085 = vmatprep.subr.bf16.mxu1 %v6064_v31  ;;  %v6072_v44 = vld [vmem:[#allocation3_spill] sm:$0xff] }
 0x51f   :  { %2045 = vmatpush1.bf16.msra.mxu0 %v6065_v63  ;;  %2086 = vmatpush1.bf16.msra.mxu1 %v6066_v25  ;;  %v6073_v63 = vld [vmem:[#allocation4_spill] sm:$0xff] }
 0x520   :  { %2046 = vmatprep.subr.bf16.mxu0 %v6067_v39  ;;  %2087 = vmatprep.subr.bf16.mxu1 %v6068_v10  ;;  %v6075_v39 = vld [vmem:[#allocation6_spill] sm:$0xff]  ;;  %v6076_v10 = vld [vmem:[#allocation7_spill] sm:$0xff] }
 0x521   :  { %v3196_v8 = vpop.eup %3195 }
 0x522   :  { %v1846_v12 = vmul.f32 %v3196_v8, %v1841_v42  ;;  %v6077_v42 = vld [vmem:[#allocation8_spill] sm:$0xff]  ;;  %v6079_v8 = vld [vmem:[#allocation10_spill] sm:$0xff] }
 0x523   :  { %2047 = vmatpush1.bf16.msra.mxu0 %v6069_v37  ;;  %2088 = vmatpush1.bf16.msra.mxu1 %v6070_v48  ;;  %v6087_v48 = vld [vmem:[#allocation18_spill] sm:$0xff]  ;;  %v6105_v37 = vld [vmem:[#allocation49_spill] sm:$0xff] }
 0x524   :  { %v2031_v46 = vpack.c.bf16 %v1846_v12, %v1846_v12  ;;  %2134 = vmatprep.subr.bf16.mxu0 %v6071_v3  ;;  %2175 = vmatprep.subr.bf16.mxu1 %v6072_v44  ;;  %v6078_v12 = vld [vmem:[#allocation9_spill] sm:$0xff]  ;;  %v6080_v44 = vld [vmem:[#allocation11_spill] sm:$0xff] }
 0x525   :  { %v6086_v3 = vld [vmem:[#allocation17_spill] sm:$0xff] }
 0x526   :  { %2065 = vmatmul.mubr.bf16.vlgmr.msra.gmra.mxu0 %v2031_v46  ;;  %2106 = vmatmul.mubr.bf16.vlgmr.msra.gmra.mxu1 %v2031_v46  ;;  %v6081_v46 = vld [vmem:[#allocation12_spill] sm:$0xff] }
 0x527   :  { %2135 = vmatpush1.bf16.msra.mxu0 %v6073_v63  ;;  %2176 = vmatpush1.bf16.msra.mxu1 %v6074_v5  ;;  %v6082_v63 = vld [vmem:[#allocation13_spill] sm:$0xff]  ;;  %v6083_v5 = vld [vmem:[#allocation14_spill] sm:$0xff] }
 0x528   :  { %2136 = vmatprep.subr.bf16.mxu0 %v6075_v39  ;;  %2177 = vmatprep.subr.bf16.mxu1 %v6076_v10  ;;  %v6084_v39 = vld [vmem:[#allocation15_spill] sm:$0xff]  ;;  %v6085_v10 = vld [vmem:[#allocation16_spill] sm:$0xff] }
 0x529   :  { %2166 = vmatprep.mubr.bf16.mxu0 %v5794_v62  ;;  %2207 = vmatprep.mubr.bf16.mxu1 %v5794_v62 }
 0x52b   :  { %2137 = vmatpush1.bf16.msra.mxu0 %v6077_v42  ;;  %2178 = vmatpush1.bf16.msra.mxu1 %v6078_v12  ;;  %v6088_v42 = vld [vmem:[#allocation19_spill] sm:$0xff]  ;;  %v6089_v12 = vld [vmem:[#allocation20_spill] sm:$0xff] }
 0x52c   :  { %2138 = vmatprep.subr.bf16.mxu0 %v6079_v8  ;;  %2179 = vmatprep.subr.bf16.mxu1 %v6080_v44  ;;  %v6090_v8 = vld [vmem:[#allocation21_spill] sm:$0xff]  ;;  %v6091_v44 = vld [vmem:[#allocation22_spill] sm:$0xff] }
 0x52f   :  { %2139 = vmatpush1.bf16.msra.mxu0 %v6081_v46  ;;  %2180 = vmatpush1.bf16.msra.mxu1 %v6082_v63  ;;  %v6092_v46 = vld [vmem:[#allocation23_spill] sm:$0xff]  ;;  %v6093_v63 = vld [vmem:[#allocation24_spill] sm:$0xff] }
 0x530   :  { %2140 = vmatprep.subr.bf16.mxu0 %v6083_v5  ;;  %2181 = vmatprep.subr.bf16.mxu1 %v6084_v39  ;;  %v6094_v5 = vld [vmem:[#allocation25_spill] sm:$0xff]  ;;  %v6095_v39 = vld [vmem:[#allocation26_spill] sm:$0xff] }
 0x533   :  { %2141 = vmatpush1.bf16.msra.mxu0 %v6085_v10  ;;  %2182 = vmatpush1.bf16.msra.mxu1 %v6086_v3  ;;  %v6096_v10 = vld [vmem:[#allocation27_spill] sm:$0xff]  ;;  %v6097_v3 = vld [vmem:[#allocation28_spill] sm:$0xff] }
 0x534   :  { %2142 = vmatprep.subr.bf16.mxu0 %v6087_v48  ;;  %2183 = vmatprep.subr.bf16.mxu1 %v6088_v42  ;;  %v6098_v48 = vld [vmem:[#allocation29_spill] sm:$0xff]  ;;  %v6099_v42 = vld [vmem:[#allocation30_spill] sm:$0xff] }
 0x537   :  { %2143 = vmatpush1.bf16.msra.mxu0 %v6089_v12  ;;  %2184 = vmatpush1.bf16.msra.mxu1 %v6090_v8  ;;  %v6100_v12 = vld [vmem:[#allocation31_spill] sm:$0xff]  ;;  %v6101_v8 = vld [vmem:[#allocation32_spill] sm:$0xff] }
 0x538   :  { %2144 = vmatprep.subr.bf16.mxu0 %v6091_v44  ;;  %2185 = vmatprep.subr.bf16.mxu1 %v6092_v46  ;;  %v6102_v44 = vld [vmem:[#allocation33_spill] sm:$0xff]  ;;  %v6103_v46 = vld [vmem:[#allocation34_spill] sm:$0xff] }
 0x53b   :  { %2145 = vmatpush1.bf16.msra.mxu0 %v6093_v63  ;;  %2186 = vmatpush1.bf16.msra.mxu1 %v6094_v5  ;;  %v6104_v63 = vld [vmem:[#allocation35_spill] sm:$0xff] }
 0x53c   :  { %2146 = vmatprep.subr.bf16.mxu0 %v6095_v39  ;;  %2187 = vmatprep.subr.bf16.mxu1 %v6096_v10 }
 0x53f   :  { %2147 = vmatpush1.bf16.msra.mxu0 %v6097_v3  ;;  %2188 = vmatpush1.bf16.msra.mxu1 %v6098_v48  ;;  %v6106_v48 = vld [vmem:[#allocation50_spill] sm:$0xff] }
 0x540   :  { %2148 = vmatprep.subr.bf16.mxu0 %v6099_v42  ;;  %2189 = vmatprep.subr.bf16.mxu1 %v6100_v12  ;;  %v6107_v42 = vld [vmem:[#allocation51_spill] sm:$0xff] }
 0x543   :  { %2149 = vmatpush1.bf16.msra.mxu0 %v6101_v8  ;;  %2190 = vmatpush1.bf16.msra.mxu1 %v6102_v44 }
 0x544   :  { %2235 = vmatprep.subr.bf16.mxu0 %v6103_v46  ;;  %2276 = vmatprep.subr.bf16.mxu1 %v6104_v63  ;;  %v6108_v46 = vld [vmem:[#allocation52_spill] sm:$0xff] }
 0x5a6   :  { %v1882_v5 = vpop.f32.mrf.mxu0  ;;  %v1923_v39 = vpop.f32.mrf.mxu1 }
 0x5a7   :  { %v1930_v10 = vadd.f32 %v1882_v5, %v6105_v37  ;;  %v1932_v31 = vadd.f32 %v1923_v39, %v6106_v48 }
 0x5a8   :  { %v1884_v25 = vpop.f32.mrf.mxu0  ;;  %v1925_v3 = vpop.f32.mrf.mxu1 }
 0x5a9   :  { %3197 = vtanh.f32 %v1930_v10  ;;  %v1931_v2 = vadd.f32 %v1884_v25, %v6107_v42  ;;  %v1933_v13 = vadd.f32 %v1925_v3, %v6108_v46  ;;  %v6111_v46 = vld [vmem:[#allocation72_spill] sm:$0xff] }
 0x5aa   :  { %v1886_v12 = vpop.f32.mrf.mxu0  ;;  %v1927_v29 = vpop.f32.mrf.mxu1 }
 0x5ab   :  { %3199 = vtanh.f32 %v1931_v2 }
 0x5ac   :  { %v1887_v8 = vpop.f32.mrf.mxu0  ;;  %v1928_v44 = vpop.f32.mrf.mxu1  ;;  %3201 = vtanh.f32 %v1932_v31 }
 0x5ad   :  { %3203 = vtanh.f32 %v1933_v13 }
 0x5b6   :  { %v3198_v63 = vpop.eup %3197 }
 0x5b7   :  { %v1938_v28 = vadd.f32 1.0, %v3198_v63 }
 0x5b8   :  { %v3200_v17 = vpop.eup %3199 }
 0x5b9   :  { %v1939_v26 = vmul.f32 0.5, %v1938_v28  ;;  %v1940_v37 = vadd.f32 1.0, %v3200_v17  ;;  %v3202_v5 = vpop.eup %3201 }
 0x5ba   :  { %v3204_v29 = vpop.eup %3203 }
 0x5bb   :  { %v1941_v10 = vmul.f32 0.5, %v1940_v37  ;;  %v1945_v59 = vmul.f32 %v3202_v5, %v1939_v26  ;;  %v1942_v63 = vadd.f32 1.0, %v3204_v29  ;;  %v6112_v37 = vld [vmem:[#allocation75_spill] sm:$0xff]  ;;  %v6113_v5 = vld [vmem:[#allocation76_spill] sm:$0xff]  ;;  %v6115_v29 = vld [vmem:[#allocation78_spill] sm:$0xff] }
 0x5bd   :  { %v1944_v48 = vmul.f32 %v1941_v10, %v4965_v53  ;;  %v1943_v42 = vmul.f32 0.5, %v1942_v63  ;;  %v6110_v53 = vld [vmem:[#allocation71_spill] sm:$0xff] }
 0x5bf   :  { %v5086_v25 = vadd.f32 %v1945_v59, %v1944_v48  ;;  %v6109_v59 = vld [vmem:[#allocation70_spill] sm:$0xff]  ;;  %v6114_v48 = vld [vmem:[#allocation77_spill] sm:$0xff] }
 0x5c1   :  { %3205 = vtanh.f32 %v5086_v25 }
 0x5c6   :  { %v1983_v2 = vpop.f32.mrf.mxu0  ;;  %v2024_v44 = vpop.f32.mrf.mxu1 }
 0x5c7   :  { %v1984_v10 = vadd.f32 %v1983_v2, %v5933_v9 }
 0x5c8   :  { %v1985_v31 = vpop.f32.mrf.mxu0  ;;  %v5089_v3 = vpop.f32.mrf.mxu1 }
 0x5ca   :  { %v1987_v39 = vpop.f32.mrf.mxu0  ;;  %v2028_v28 = vpop.f32.mrf.mxu1 }
 0x5cb   :  { %v1986_v28 = vadd.f32 %v1985_v31, %v5936_v45 }
 0x5cc   :  { %v1988_v17 = vpop.f32.mrf.mxu0  ;;  %v2029_v13 = vpop.f32.mrf.mxu1 }
 0x5ce   :  { %v3206_v12 = vpop.eup %3205 }
 0x5cf   :  { %v1948_v26 = vmul.f32 %v3206_v12, %v1943_v42  ;;  %v2025_v12 = vadd.f32 %v2024_v44, %v4623_v7  ;;  %v2027_v44 = vadd.f32 %v5089_v3, %v5941_v30 }
 0x5d1   :  { %v2133_v8 = vpack.c.bf16 %v1948_v26, %v1948_v26 }
 0x5d3   :  { %2167 = vmatmul.mubr.bf16.vlgmr.msra.gmra.mxu0 %v2133_v8  ;;  %2208 = vmatmul.mubr.bf16.vlgmr.msra.gmra.mxu1 %v2133_v8 }
 0x5d4   :  { %2236 = vmatpush1.bf16.msra.mxu0 %v3995_v14  ;;  %2277 = vmatpush1.bf16.msra.mxu1 %v3997_v58 }
 0x5d5   :  { %2237 = vmatprep.subr.bf16.mxu0 %v5917_v15  ;;  %2278 = vmatprep.subr.bf16.mxu1 %v5981_v41 }
 0x5d6   :  { %2267 = vmatprep.mubr.bf16.mxu0 %v5794_v62  ;;  %2308 = vmatprep.mubr.bf16.mxu1 %v5794_v62 }
 0x5d8   :  { %2238 = vmatpush1.bf16.msra.mxu0 %v5982_v43  ;;  %2279 = vmatpush1.bf16.msra.mxu1 %v5983_v16 }
 0x5d9   :  { %2239 = vmatprep.subr.bf16.mxu0 %v6045_v36  ;;  %2280 = vmatprep.subr.bf16.mxu1 %v6046_v51 }
 0x5dc   :  { %2240 = vmatpush1.bf16.msra.mxu0 %v6047_v49  ;;  %2281 = vmatpush1.bf16.msra.mxu1 %v6048_v52 }
 0x5dd   :  { %2241 = vmatprep.subr.bf16.mxu0 %v6049_v40  ;;  %2282 = vmatprep.subr.bf16.mxu1 %v6109_v59 }
 0x5e0   :  { %2242 = vmatpush1.bf16.msra.mxu0 %v6110_v53  ;;  %2283 = vmatpush1.bf16.msra.mxu1 %v6111_v46 }
 0x5e1   :  { %2243 = vmatprep.subr.bf16.mxu0 %v5992_v61  ;;  %2284 = vmatprep.subr.bf16.mxu1 %v5993_v54 }
 0x5e4   :  { %2244 = vmatpush1.bf16.msra.mxu0 %v6112_v37  ;;  %2285 = vmatpush1.bf16.msra.mxu1 %v6113_v5 }
 0x5e5   :  { %2245 = vmatprep.subr.bf16.mxu0 %v6114_v48  ;;  %2286 = vmatprep.subr.bf16.mxu1 %v6115_v29 }
 0x5e6   :  { %v2066_v63 = vpop.f32.mrf.mxu0  ;;  %v2107_v39 = vpop.f32.mrf.mxu1 }
 0x5e7   :  { %v2114_v17 = vadd.f32 %v2066_v63, %v1984_v10  ;;  %v2116_v48 = vadd.f32 %v2107_v39, %v2025_v12  ;;  %v6116_v12 = vld [vmem:[#allocation101_spill] sm:$0xff] }
 0x5e8   :  { %v2068_v13 = vpop.f32.mrf.mxu0  ;;  %v2109_v42 = vpop.f32.mrf.mxu1  ;;  %2246 = vmatpush1.bf16.msra.mxu0 %v5937_v27  ;;  %2287 = vmatpush1.bf16.msra.mxu1 %v5938_v32 }
 0x5e9   :  { %3207 = vtanh.f32 %v2114_v17  ;;  %v2115_v26 = vadd.f32 %v2068_v13, %v1986_v28  ;;  %2247 = vmatprep.subr.bf16.mxu0 %v5873_v22  ;;  %2288 = vmatprep.subr.bf16.mxu1 %v5874_v33 }
 0x5ea   :  { %v2070_v2 = vpop.f32.mrf.mxu0  ;;  %v2111_v29 = vpop.f32.mrf.mxu1 }
 0x5eb   :  { %3209 = vtanh.f32 %v2115_v26  ;;  %v2117_v29 = vadd.f32 %v2109_v42, %v2027_v44  ;;  %v6118_v2 = vld [vmem:[#allocation102_spill] sm:$0xff]  ;;  %v6121_v44 = vld [vmem:[#allocation105_spill] sm:$0xff] }
 0x5ec   :  { %v2071_v31 = vpop.f32.mrf.mxu0  ;;  %v2112_v10 = vpop.f32.mrf.mxu1  ;;  %2248 = vmatpush1.bf16.msra.mxu0 %v5875_v20  ;;  %2289 = vmatpush1.bf16.msra.mxu1 %v5876_v23  ;;  %3211 = vtanh.f32 %v2116_v48 }
 0x5ed   :  { %2249 = vmatprep.subr.bf16.mxu0 %v5877_v11  ;;  %2290 = vmatprep.subr.bf16.mxu1 %v5878_v47  ;;  %3213 = vtanh.f32 %v2117_v29  ;;  %v6119_v31 = vld [vmem:[#allocation103_spill] sm:$0xff]  ;;  %v6120_v10 = vld [vmem:[#allocation104_spill] sm:$0xff]  ;;  %v6122_v29 = vld [vmem:[#allocation106_spill] sm:$0xff] }
 0x5f0   :  { %2250 = vmatpush1.bf16.msra.mxu0 %v5881_v18  ;;  %2291 = vmatpush1.bf16.msra.mxu1 %v4253_v38 }
 0x5f1   :  { %2318 = vmatprep.subr.bf16.mxu0 %v5939_v35  ;;  %2359 = vmatprep.subr.bf16.mxu1 %v5940_v6 }
 0x5f3   :  { %2268 = vmatmul.mubr.bf16.vlgmr.msra.gmra.mxu0 %v2133_v8  ;;  %2309 = vmatmul.mubr.bf16.vlgmr.msra.gmra.mxu1 %v2133_v8 }
 0x5f4   :  { %2319 = vmatpush1.bf16.msra.mxu0 %v5998_v60  ;;  %2360 = vmatpush1.bf16.msra.mxu1 %v5943_v21 }
 0x5f5   :  { %2320 = vmatprep.subr.bf16.mxu0 %v5999_v4  ;;  %2361 = vmatprep.subr.bf16.mxu1 %v6000_v55 }
 0x5f6   :  { %v3208_v48 = vpop.eup %3207  ;;  %2350 = vmatprep.mubr.bf16.mxu0 %v5794_v62  ;;  %2391 = vmatprep.mubr.bf16.mxu1 %v5794_v62 }
 0x5f7   :  { %v2122_v63 = vadd.f32 1.0, %v3208_v48  ;;  %v6124_v48 = vld [vmem:[#allocation108_spill] sm:$0xff] }
 0x5f8   :  { %v3210_v39 = vpop.eup %3209  ;;  %2321 = vmatpush1.bf16.msra.mxu0 %v5946_v1  ;;  %2362 = vmatpush1.bf16.msra.mxu1 %v5947_v50 }
 0x5f9   :  { %v2123_v3 = vmul.f32 0.5, %v2122_v63  ;;  %v2124_v8 = vadd.f32 1.0, %v3210_v39  ;;  %2322 = vmatprep.subr.bf16.mxu0 %v5890_v34  ;;  %2363 = vmatprep.subr.bf16.mxu1 %v5891_v19  ;;  %v3212_v17 = vpop.eup %3211  ;;  %v6125_v63 = vld [vmem:[#allocation109_spill] sm:$0xff] }
 0x5fa   :  { %v3214_v39 = vpop.eup %3213 }
 0x5fb   :  { %v2125_v28 = vmul.f32 0.5, %v2124_v8  ;;  %v2129_v42 = vmul.f32 %v3212_v17, %v2123_v3  ;;  %v6126_v3 = vld [vmem:[#allocation110_spill] sm:$0xff]  ;;  %v6127_v8 = vld [vmem:[#allocation111_spill] sm:$0xff]  ;;  %v6128_v17 = vld [vmem:[#allocation112_spill] sm:$0xff] }
 0x5fc   :  { %2323 = vmatpush1.bf16.msra.mxu0 %v5948_v0  ;;  %2364 = vmatpush1.bf16.msra.mxu1 %v5893_v24 }
 0x5fd   :  { %v2128_v13 = vmul.f32 %v2125_v28, %v5024_v57  ;;  %2324 = vmatprep.subr.bf16.mxu0 %v5894_v56  ;;  %2365 = vmatprep.subr.bf16.mxu1 %v6116_v12  ;;  %v6123_v57 = vld [vmem:[#allocation107_spill] sm:$0xff]  ;;  %v2126_v28 = vadd.f32 1.0, %v3214_v39 }
 0x5ff   :  { %v5145_v26 = vadd.f32 %v2129_v42, %v2128_v13  ;;  %v6129_v13 = vld [vmem:[#allocation113_spill] sm:$0xff]  ;;  %v6130_v42 = vld [vmem:[#allocation114_spill] sm:$0xff] }
 0x600   :  { %2325 = vmatpush1.bf16.msra.mxu0 %v6118_v2  ;;  %2366 = vmatpush1.bf16.msra.mxu1 %v6119_v31  ;;  %v6134_v31 = vld [vmem:[#allocation118_spill] sm:$0xff] }
 0x601   :  { %6117 = vst [vmem:[#allocation82_spill] sm:$0xff] %v5145_v26  ;;  %3215 = vtanh.f32 %v5145_v26  ;;  %2326 = vmatprep.subr.bf16.mxu0 %v6120_v10  ;;  %2367 = vmatprep.subr.bf16.mxu1 %v6121_v44  ;;  %v6131_v44 = vld [vmem:[#allocation115_spill] sm:$0xff] }
 0x604   :  { %2327 = vmatpush1.bf16.msra.mxu0 %v6122_v29  ;;  %2368 = vmatpush1.bf16.msra.mxu1 %v6123_v57  ;;  %v2127_v29 = vmul.f32 0.5, %v2126_v28  ;;  %v6132_v57 = vld [vmem:[#allocation116_spill] sm:$0xff]  ;;  %v6139_v28 = vld [vmem:[#allocation5_spill] sm:$0xff] }
 0x605   :  { %2328 = vmatprep.subr.bf16.mxu0 %v6124_v48  ;;  %2369 = vmatprep.subr.bf16.mxu1 %v6125_v63  ;;  %v6133_v48 = vld [vmem:[#allocation117_spill] sm:$0xff] }
 0x608   :  { %2329 = vmatpush1.bf16.msra.mxu0 %v6126_v3  ;;  %2370 = vmatpush1.bf16.msra.mxu1 %v6127_v8  ;;  %v6135_v3 = vld [vmem:[#allocation119_spill] sm:$0xff]  ;;  %v6136_v8 = vld [vmem:[#allocation2_spill] sm:$0xff] }
 0x609   :  { %2330 = vmatprep.subr.bf16.mxu0 %v6128_v17  ;;  %2371 = vmatprep.subr.bf16.mxu1 %v6129_v13  ;;  %v6137_v17 = vld [vmem:[#allocation3_spill] sm:$0xff] }
 0x60c   :  { %2331 = vmatpush1.bf16.msra.mxu0 %v6130_v42  ;;  %2372 = vmatpush1.bf16.msra.mxu1 %v6131_v44  ;;  %v6138_v42 = vld [vmem:[#allocation4_spill] sm:$0xff] }
 0x60d   :  { %2332 = vmatprep.subr.bf16.mxu0 %v6132_v57  ;;  %2373 = vmatprep.subr.bf16.mxu1 %v6133_v48  ;;  %v6140_v57 = vld [vmem:[#allocation6_spill] sm:$0xff]  ;;  %v6141_v48 = vld [vmem:[#allocation7_spill] sm:$0xff] }
 0x60e   :  { %v3216_v63 = vpop.eup %3215 }
 0x60f   :  { %v2132_v10 = vmul.f32 %v3216_v63, %v2127_v29  ;;  %v6142_v29 = vld [vmem:[#allocation8_spill] sm:$0xff]  ;;  %v6144_v63 = vld [vmem:[#allocation10_spill] sm:$0xff] }
 0x610   :  { %2333 = vmatpush1.bf16.msra.mxu0 %v6134_v31  ;;  %2374 = vmatpush1.bf16.msra.mxu1 %v6135_v3  ;;  %v6152_v3 = vld [vmem:[#allocation18_spill] sm:$0xff]  ;;  %v6170_v31 = vld [vmem:[#allocation53_spill] sm:$0xff] }
 0x611   :  { %v2317_v39 = vpack.c.bf16 %v2132_v10, %v2132_v10  ;;  %2420 = vmatprep.subr.bf16.mxu0 %v6136_v8  ;;  %2461 = vmatprep.subr.bf16.mxu1 %v6137_v17  ;;  %v6143_v10 = vld [vmem:[#allocation9_spill] sm:$0xff]  ;;  %v6145_v8 = vld [vmem:[#allocation11_spill] sm:$0xff]  ;;  %v6146_v17 = vld [vmem:[#allocation12_spill] sm:$0xff] }
 0x613   :  { %2351 = vmatmul.mubr.bf16.vlgmr.msra.gmra.mxu0 %v2317_v39  ;;  %2392 = vmatmul.mubr.bf16.vlgmr.msra.gmra.mxu1 %v2317_v39  ;;  %v6148_v39 = vld [vmem:[#allocation14_spill] sm:$0xff] }
 0x614   :  { %2421 = vmatpush1.bf16.msra.mxu0 %v6138_v42  ;;  %2462 = vmatpush1.bf16.msra.mxu1 %v6139_v28  ;;  %v6147_v42 = vld [vmem:[#allocation13_spill] sm:$0xff] }
 0x615   :  { %2422 = vmatprep.subr.bf16.mxu0 %v6140_v57  ;;  %2463 = vmatprep.subr.bf16.mxu1 %v6141_v48  ;;  %v6149_v57 = vld [vmem:[#allocation15_spill] sm:$0xff]  ;;  %v6150_v48 = vld [vmem:[#allocation16_spill] sm:$0xff]  ;;  %v6151_v28 = vld [vmem:[#allocation17_spill] sm:$0xff] }
 0x616   :  { %2452 = vmatprep.mubr.bf16.mxu0 %v5794_v62  ;;  %2493 = vmatprep.mubr.bf16.mxu1 %v5794_v62 }
 0x618   :  { %2423 = vmatpush1.bf16.msra.mxu0 %v6142_v29  ;;  %2464 = vmatpush1.bf16.msra.mxu1 %v6143_v10  ;;  %v6153_v29 = vld [vmem:[#allocation19_spill] sm:$0xff]  ;;  %v6154_v10 = vld [vmem:[#allocation20_spill] sm:$0xff] }
 0x619   :  { %2424 = vmatprep.subr.bf16.mxu0 %v6144_v63  ;;  %2465 = vmatprep.subr.bf16.mxu1 %v6145_v8  ;;  %v6155_v63 = vld [vmem:[#allocation21_spill] sm:$0xff]  ;;  %v6156_v8 = vld [vmem:[#allocation22_spill] sm:$0xff] }
 0x61c   :  { %2425 = vmatpush1.bf16.msra.mxu0 %v6146_v17  ;;  %2466 = vmatpush1.bf16.msra.mxu1 %v6147_v42  ;;  %v6157_v17 = vld [vmem:[#allocation23_spill] sm:$0xff]  ;;  %v6158_v42 = vld [vmem:[#allocation24_spill] sm:$0xff] }
 0x61d   :  { %2426 = vmatprep.subr.bf16.mxu0 %v6148_v39  ;;  %2467 = vmatprep.subr.bf16.mxu1 %v6149_v57  ;;  %v6159_v39 = vld [vmem:[#allocation25_spill] sm:$0xff]  ;;  %v6160_v57 = vld [vmem:[#allocation26_spill] sm:$0xff] }
 0x620   :  { %2427 = vmatpush1.bf16.msra.mxu0 %v6150_v48  ;;  %2468 = vmatpush1.bf16.msra.mxu1 %v6151_v28  ;;  %v6161_v48 = vld [vmem:[#allocation27_spill] sm:$0xff]  ;;  %v6162_v28 = vld [vmem:[#allocation28_spill] sm:$0xff] }
 0x621   :  { %2428 = vmatprep.subr.bf16.mxu0 %v6152_v3  ;;  %2469 = vmatprep.subr.bf16.mxu1 %v6153_v29  ;;  %v6163_v3 = vld [vmem:[#allocation29_spill] sm:$0xff]  ;;  %v6164_v29 = vld [vmem:[#allocation30_spill] sm:$0xff] }
 0x624   :  { %2429 = vmatpush1.bf16.msra.mxu0 %v6154_v10  ;;  %2470 = vmatpush1.bf16.msra.mxu1 %v6155_v63  ;;  %v6165_v10 = vld [vmem:[#allocation31_spill] sm:$0xff]  ;;  %v6166_v63 = vld [vmem:[#allocation32_spill] sm:$0xff] }
 0x625   :  { %2430 = vmatprep.subr.bf16.mxu0 %v6156_v8  ;;  %2471 = vmatprep.subr.bf16.mxu1 %v6157_v17  ;;  %v6167_v8 = vld [vmem:[#allocation33_spill] sm:$0xff]  ;;  %v6168_v17 = vld [vmem:[#allocation34_spill] sm:$0xff] }
 0x628   :  { %2431 = vmatpush1.bf16.msra.mxu0 %v6158_v42  ;;  %2472 = vmatpush1.bf16.msra.mxu1 %v6159_v39  ;;  %v6169_v42 = vld [vmem:[#allocation35_spill] sm:$0xff] }
 0x629   :  { %2432 = vmatprep.subr.bf16.mxu0 %v6160_v57  ;;  %2473 = vmatprep.subr.bf16.mxu1 %v6161_v48 }
 0x62c   :  { %2433 = vmatpush1.bf16.msra.mxu0 %v6162_v28  ;;  %2474 = vmatpush1.bf16.msra.mxu1 %v6163_v3  ;;  %v6171_v3 = vld [vmem:[#allocation54_spill] sm:$0xff] }
 0x62d   :  { %2434 = vmatprep.subr.bf16.mxu0 %v6164_v29  ;;  %2475 = vmatprep.subr.bf16.mxu1 %v6165_v10  ;;  %v6172_v29 = vld [vmem:[#allocation55_spill] sm:$0xff] }
 0x630   :  { %2435 = vmatpush1.bf16.msra.mxu0 %v6166_v63  ;;  %2476 = vmatpush1.bf16.msra.mxu1 %v6167_v8 }
 0x631   :  { %2521 = vmatprep.subr.bf16.mxu0 %v6168_v17  ;;  %2562 = vmatprep.subr.bf16.mxu1 %v6169_v42  ;;  %v6173_v17 = vld [vmem:[#allocation56_spill] sm:$0xff] }
 0x693   :  { %v2168_v39 = vpop.f32.mrf.mxu0  ;;  %v2209_v57 = vpop.f32.mrf.mxu1 }
 0x694   :  { %v2216_v48 = vadd.f32 %v2168_v39, %v6170_v31  ;;  %v2218_v13 = vadd.f32 %v2209_v57, %v6171_v3 }
 0x695   :  { %v2170_v44 = vpop.f32.mrf.mxu0  ;;  %v2211_v28 = vpop.f32.mrf.mxu1 }
 0x696   :  { %3217 = vtanh.f32 %v2216_v48  ;;  %v2217_v2 = vadd.f32 %v2170_v44, %v6172_v29  ;;  %v2219_v56 = vadd.f32 %v2211_v28, %v6173_v17 }
 0x697   :  { %v2172_v10 = vpop.f32.mrf.mxu0  ;;  %v2213_v12 = vpop.f32.mrf.mxu1 }
 0x698   :  { %3219 = vtanh.f32 %v2217_v2 }
 0x699   :  { %v2173_v63 = vpop.f32.mrf.mxu0  ;;  %v2214_v8 = vpop.f32.mrf.mxu1  ;;  %3221 = vtanh.f32 %v2218_v13 }
 0x69a   :  { %3223 = vtanh.f32 %v2219_v56  ;;  %v6175_v8 = vld [vmem:[#allocation78_spill] sm:$0xff] }
 0x6a3   :  { %v3218_v42 = vpop.eup %3217 }
 0x6a4   :  { %v2224_v26 = vadd.f32 1.0, %v3218_v42 }
 0x6a5   :  { %v3220_v24 = vpop.eup %3219 }
 0x6a6   :  { %v2225_v0 = vmul.f32 0.5, %v2224_v26  ;;  %v2226_v31 = vadd.f32 1.0, %v3220_v24  ;;  %v3222_v39 = vpop.eup %3221 }
 0x6a7   :  { %v3224_v12 = vpop.eup %3223 }
 0x6a8   :  { %v2227_v48 = vmul.f32 0.5, %v2226_v31  ;;  %v2231_v19 = vmul.f32 %v3222_v39, %v2225_v0  ;;  %v2228_v42 = vadd.f32 1.0, %v3224_v12 }
 0x6aa   :  { %v2230_v57 = vmul.f32 %v2227_v48, %v5086_v25  ;;  %v2229_v29 = vmul.f32 0.5, %v2228_v42  ;;  %v6174_v25 = vld [vmem:[#allocation77_spill] sm:$0xff] }
 0x6ac   :  { %v5207_v44 = vadd.f32 %v2231_v19, %v2230_v57 }
 0x6ae   :  { %3225 = vtanh.f32 %v5207_v44 }
 0x6b3   :  { %v2269_v2 = vpop.f32.mrf.mxu0  ;;  %v2310_v13 = vpop.f32.mrf.mxu1 }
 0x6b4   :  { %v2270_v19 = vadd.f32 %v2269_v2, %v5933_v9  ;;  %v6197_v9 = vld [vmem:[#allocation116_spill] sm:$0xff] }
 0x6b5   :  { %v2271_v3 = vpop.f32.mrf.mxu0  ;;  %v5210_v17 = vpop.f32.mrf.mxu1 }
 0x6b6   :  { %v2272_v48 = vadd.f32 %v2271_v3, %v5936_v45 }
 0x6b7   :  { %v2273_v28 = vpop.f32.mrf.mxu0  ;;  %v2314_v26 = vpop.f32.mrf.mxu1 }
 0x6b8   :  { %v2311_v28 = vadd.f32 %v2310_v13, %v4623_v7  ;;  %v2313_v13 = vadd.f32 %v5210_v17, %v5941_v30  ;;  %v6195_v30 = vld [vmem:[#allocation114_spill] sm:$0xff]  ;;  %v6196_v7 = vld [vmem:[#allocation115_spill] sm:$0xff] }
 0x6b9   :  { %v2274_v24 = vpop.f32.mrf.mxu0  ;;  %v2315_v56 = vpop.f32.mrf.mxu1 }
 0x6bb   :  { %v3226_v10 = vpop.eup %3225 }
 0x6bc   :  { %v2234_v0 = vmul.f32 %v3226_v10, %v2229_v29 }
 0x6be   :  { %v2419_v63 = vpack.c.bf16 %v2234_v0, %v2234_v0 }
 0x6c0   :  { %2453 = vmatmul.mubr.bf16.vlgmr.msra.gmra.mxu0 %v2419_v63  ;;  %2494 = vmatmul.mubr.bf16.vlgmr.msra.gmra.mxu1 %v2419_v63 }
 0x6c1   :  { %2522 = vmatpush1.bf16.msra.mxu0 %v3995_v14  ;;  %2563 = vmatpush1.bf16.msra.mxu1 %v3997_v58 }
 0x6c2   :  { %2523 = vmatprep.subr.bf16.mxu0 %v5917_v15  ;;  %2564 = vmatprep.subr.bf16.mxu1 %v5981_v41 }
 0x6c3   :  { %2553 = vmatprep.mubr.bf16.mxu0 %v5794_v62  ;;  %2594 = vmatprep.mubr.bf16.mxu1 %v5794_v62 }
 0x6c5   :  { %2524 = vmatpush1.bf16.msra.mxu0 %v5982_v43  ;;  %2565 = vmatpush1.bf16.msra.mxu1 %v5983_v16 }
 0x6c6   :  { %2525 = vmatprep.subr.bf16.mxu0 %v6045_v36  ;;  %2566 = vmatprep.subr.bf16.mxu1 %v6046_v51 }
 0x6c9   :  { %2526 = vmatpush1.bf16.msra.mxu0 %v6047_v49  ;;  %2567 = vmatpush1.bf16.msra.mxu1 %v6048_v52 }
 0x6ca   :  { %2527 = vmatprep.subr.bf16.mxu0 %v6049_v40  ;;  %2568 = vmatprep.subr.bf16.mxu1 %v6109_v59 }
 0x6cd   :  { %2528 = vmatpush1.bf16.msra.mxu0 %v6110_v53  ;;  %2569 = vmatpush1.bf16.msra.mxu1 %v6111_v46 }
 0x6ce   :  { %2529 = vmatprep.subr.bf16.mxu0 %v5992_v61  ;;  %2570 = vmatprep.subr.bf16.mxu1 %v5993_v54 }
 0x6d1   :  { %2530 = vmatpush1.bf16.msra.mxu0 %v6112_v37  ;;  %2571 = vmatpush1.bf16.msra.mxu1 %v6113_v5 }
 0x6d2   :  { %2531 = vmatprep.subr.bf16.mxu0 %v6174_v25  ;;  %2572 = vmatprep.subr.bf16.mxu1 %v6175_v8 }
 0x6d3   :  { %v2352_v31 = vpop.f32.mrf.mxu0  ;;  %v2393_v39 = vpop.f32.mrf.mxu1 }
 0x6d4   :  { %v2400_v57 = vadd.f32 %v2352_v31, %v2270_v19  ;;  %v2402_v56 = vadd.f32 %v2393_v39, %v2311_v28  ;;  %v6176_v39 = vld [vmem:[#allocation97_spill] sm:$0xff]  ;;  %v6179_v28 = vld [vmem:[#allocation82_spill] sm:$0xff] }
 0x6d5   :  { %v2354_v12 = vpop.f32.mrf.mxu0  ;;  %v2395_v42 = vpop.f32.mrf.mxu1  ;;  %2532 = vmatpush1.bf16.msra.mxu0 %v5937_v27  ;;  %2573 = vmatpush1.bf16.msra.mxu1 %v5938_v32 }
 0x6d6   :  { %3227 = vtanh.f32 %v2400_v57  ;;  %v2401_v26 = vadd.f32 %v2354_v12, %v2272_v48  ;;  %2533 = vmatprep.subr.bf16.mxu0 %v5873_v22  ;;  %2574 = vmatprep.subr.bf16.mxu1 %v5874_v33  ;;  %v2403_v10 = vadd.f32 %v2395_v42, %v2313_v13  ;;  %v6177_v12 = vld [vmem:[#allocation98_spill] sm:$0xff]  ;;  %v6178_v42 = vld [vmem:[#allocation99_spill] sm:$0xff] }
 0x6d7   :  { %v2356_v2 = vpop.f32.mrf.mxu0  ;;  %v2397_v24 = vpop.f32.mrf.mxu1  ;;  %v6184_v13 = vld [vmem:[#allocation103_spill] sm:$0xff] }
 0x6d8   :  { %3229 = vtanh.f32 %v2401_v26  ;;  %v6180_v24 = vld [vmem:[#allocation100_spill] sm:$0xff] }
 0x6d9   :  { %v2357_v3 = vpop.f32.mrf.mxu0  ;;  %v2398_v29 = vpop.f32.mrf.mxu1  ;;  %2534 = vmatpush1.bf16.msra.mxu0 %v5875_v20  ;;  %2575 = vmatpush1.bf16.msra.mxu1 %v5876_v23  ;;  %3231 = vtanh.f32 %v2402_v56  ;;  %v6181_v56 = vld [vmem:[#allocation101_spill] sm:$0xff] }
 0x6da   :  { %2535 = vmatprep.subr.bf16.mxu0 %v5877_v11  ;;  %2576 = vmatprep.subr.bf16.mxu1 %v5878_v47  ;;  %3233 = vtanh.f32 %v2403_v10  ;;  %v6183_v29 = vld [vmem:[#allocation102_spill] sm:$0xff]  ;;  %v6185_v10 = vld [vmem:[#allocation104_spill] sm:$0xff] }
 0x6dd   :  { %2536 = vmatpush1.bf16.msra.mxu0 %v5881_v18  ;;  %2577 = vmatpush1.bf16.msra.mxu1 %v4253_v38 }
 0x6de   :  { %2604 = vmatprep.subr.bf16.mxu0 %v5939_v35  ;;  %2645 = vmatprep.subr.bf16.mxu1 %v5940_v6 }
 0x6e0   :  { %2554 = vmatmul.mubr.bf16.vlgmr.msra.gmra.mxu0 %v2419_v63  ;;  %2595 = vmatmul.mubr.bf16.vlgmr.msra.gmra.mxu1 %v2419_v63 }
 0x6e1   :  { %2605 = vmatpush1.bf16.msra.mxu0 %v5998_v60  ;;  %2646 = vmatpush1.bf16.msra.mxu1 %v5943_v21 }
 0x6e2   :  { %2606 = vmatprep.subr.bf16.mxu0 %v5999_v4  ;;  %2647 = vmatprep.subr.bf16.mxu1 %v6000_v55 }
 0x6e3   :  { %v3228_v0 = vpop.eup %3227  ;;  %2636 = vmatprep.mubr.bf16.mxu0 %v5794_v62  ;;  %2677 = vmatprep.mubr.bf16.mxu1 %v5794_v62 }
 0x6e4   :  { %v2408_v19 = vadd.f32 1.0, %v3228_v0  ;;  %v6186_v0 = vld [vmem:[#allocation105_spill] sm:$0xff] }
 0x6e5   :  { %v3230_v31 = vpop.eup %3229  ;;  %2607 = vmatpush1.bf16.msra.mxu0 %v5946_v1  ;;  %2648 = vmatpush1.bf16.msra.mxu1 %v5947_v50 }
 0x6e6   :  { %v2409_v17 = vmul.f32 0.5, %v2408_v19  ;;  %v2410_v63 = vadd.f32 1.0, %v3230_v31  ;;  %2608 = vmatprep.subr.bf16.mxu0 %v5890_v34  ;;  %2649 = vmatprep.subr.bf16.mxu1 %v6176_v39  ;;  %v3232_v57 = vpop.eup %3231  ;;  %v6187_v19 = vld [vmem:[#allocation106_spill] sm:$0xff]  ;;  %v6188_v31 = vld [vmem:[#allocation107_spill] sm:$0xff] }
 0x6e8   :  { %v2411_v48 = vmul.f32 0.5, %v2410_v63  ;;  %v2415_v2 = vmul.f32 %v3232_v57, %v2409_v17  ;;  %v6189_v17 = vld [vmem:[#allocation108_spill] sm:$0xff]  ;;  %v6190_v63 = vld [vmem:[#allocation109_spill] sm:$0xff]  ;;  %v6191_v57 = vld [vmem:[#allocation110_spill] sm:$0xff] }
 0x6e9   :  { %2609 = vmatpush1.bf16.msra.mxu0 %v6177_v12  ;;  %2650 = vmatpush1.bf16.msra.mxu1 %v6178_v42 }
 0x6ea   :  { %v2414_v26 = vmul.f32 %v2411_v48, %v6179_v28  ;;  %2610 = vmatprep.subr.bf16.mxu0 %v6180_v24  ;;  %2651 = vmatprep.subr.bf16.mxu1 %v6181_v56  ;;  %v3234_v48 = vpop.eup %3233  ;;  %v6192_v28 = vld [vmem:[#allocation111_spill] sm:$0xff] }
 0x6ec   :  { %v5266_v3 = vadd.f32 %v2415_v2, %v2414_v26  ;;  %v2412_v26 = vadd.f32 1.0, %v3234_v48  ;;  %v6193_v2 = vld [vmem:[#allocation112_spill] sm:$0xff] }
 0x6ed   :  { %2611 = vmatpush1.bf16.msra.mxu0 %v6183_v29  ;;  %2652 = vmatpush1.bf16.msra.mxu1 %v6184_v13 }
 0x6ee   :  { %6182 = vst [vmem:[#allocation83_spill] sm:$0xff] %v5266_v3  ;;  %3235 = vtanh.f32 %v5266_v3  ;;  %2612 = vmatprep.subr.bf16.mxu0 %v6185_v10  ;;  %2653 = vmatprep.subr.bf16.mxu1 %v6186_v0  ;;  %v6194_v3 = vld [vmem:[#allocation113_spill] sm:$0xff]  ;;  %v2413_v45 = vmul.f32 0.5, %v2412_v26 }
 0x6f1   :  { %2613 = vmatpush1.bf16.msra.mxu0 %v6187_v19  ;;  %2654 = vmatpush1.bf16.msra.mxu1 %v6188_v31  ;;  %v6199_v19 = vld [vmem:[#allocation118_spill] sm:$0xff] }
 0x6f2   :  { %2614 = vmatprep.subr.bf16.mxu0 %v6189_v17  ;;  %2655 = vmatprep.subr.bf16.mxu1 %v6190_v63  ;;  %v6198_v17 = vld [vmem:[#allocation117_spill] sm:$0xff] }
 0x6f5   :  { %2615 = vmatpush1.bf16.msra.mxu0 %v6191_v57  ;;  %2656 = vmatpush1.bf16.msra.mxu1 %v6192_v28  ;;  %v6200_v57 = vld [vmem:[#allocation119_spill] sm:$0xff]  ;;  %v6201_v28 = vld [vmem:[#allocation34_spill] sm:$0xff] }
 0x6f6   :  { %2616 = vmatprep.subr.bf16.mxu0 %v6193_v2  ;;  %2657 = vmatprep.subr.bf16.mxu1 %v6194_v3  ;;  %v6202_v2 = vld [vmem:[#allocation35_spill] sm:$0xff] }
 0x6f9   :  { %2617 = vmatpush1.bf16.msra.mxu0 %v6195_v30  ;;  %2658 = vmatpush1.bf16.msra.mxu1 %v6196_v7 }
 0x6fa   :  { %2618 = vmatprep.subr.bf16.mxu0 %v6197_v9  ;;  %2659 = vmatprep.subr.bf16.mxu1 %v6198_v17 }
 0x6fb   :  { %v3236_v63 = vpop.eup %3235 }
 0x6fc   :  { %v2418_v31 = vmul.f32 %v3236_v63, %v2413_v45 }
 0x6fd   :  { %2619 = vmatpush1.bf16.msra.mxu0 %v6199_v19  ;;  %2660 = vmatpush1.bf16.msra.mxu1 %v6200_v57 }
 0x6fe   :  { %v2603_v48 = vpack.c.bf16 %v2418_v31, %v2418_v31  ;;  %2706 = vmatprep.subr.bf16.mxu0 %v6201_v28  ;;  %2747 = vmatprep.subr.bf16.mxu1 %v6202_v2 }
 0x700   :  { %2637 = vmatmul.mubr.bf16.vlgmr.msra.gmra.mxu0 %v2603_v48  ;;  %2678 = vmatmul.mubr.bf16.vlgmr.msra.gmra.mxu1 %v2603_v48 }
 0x701   :  { %2707 = vmatpush1.bf16.msra.mxu0 %v3995_v14  ;;  %2748 = vmatpush1.bf16.msra.mxu1 %v3997_v58 }
 0x702   :  { %2708 = vmatprep.subr.bf16.mxu0 %v5917_v15  ;;  %2749 = vmatprep.subr.bf16.mxu1 %v5981_v41 }
 0x703   :  { %2738 = vmatprep.mubr.bf16.mxu0 %v5794_v62  ;;  %2779 = vmatprep.mubr.bf16.mxu1 %v5794_v62 }
 0x705   :  { %2709 = vmatpush1.bf16.msra.mxu0 %v5982_v43  ;;  %2750 = vmatpush1.bf16.msra.mxu1 %v5983_v16 }
 0x706   :  { %2710 = vmatprep.subr.bf16.mxu0 %v6045_v36  ;;  %2751 = vmatprep.subr.bf16.mxu1 %v6046_v51 }
 0x709   :  { %2711 = vmatpush1.bf16.msra.mxu0 %v6047_v49  ;;  %2752 = vmatpush1.bf16.msra.mxu1 %v6048_v52 }
 0x70a   :  { %2712 = vmatprep.subr.bf16.mxu0 %v6049_v40  ;;  %2753 = vmatprep.subr.bf16.mxu1 %v6109_v59 }
 0x70d   :  { %2713 = vmatpush1.bf16.msra.mxu0 %v6110_v53  ;;  %2754 = vmatpush1.bf16.msra.mxu1 %v6111_v46 }
 0x70e   :  { %2714 = vmatprep.subr.bf16.mxu0 %v5992_v61  ;;  %2755 = vmatprep.subr.bf16.mxu1 %v5993_v54 }
 0x711   :  { %2715 = vmatpush1.bf16.msra.mxu0 %v6112_v37  ;;  %2756 = vmatpush1.bf16.msra.mxu1 %v6113_v5 }
 0x712   :  { %2716 = vmatprep.subr.bf16.mxu0 %v6174_v25  ;;  %2757 = vmatprep.subr.bf16.mxu1 %v6175_v8 }
 0x715   :  { %2717 = vmatpush1.bf16.msra.mxu0 %v5937_v27  ;;  %2758 = vmatpush1.bf16.msra.mxu1 %v5938_v32 }
 0x716   :  { %2718 = vmatprep.subr.bf16.mxu0 %v5873_v22  ;;  %2759 = vmatprep.subr.bf16.mxu1 %v5874_v33  ;;  %v6203_v22 = vld [vmem:[#allocation57_spill] sm:$0xff] }
 0x719   :  { %2719 = vmatpush1.bf16.msra.mxu0 %v5875_v20  ;;  %2760 = vmatpush1.bf16.msra.mxu1 %v5876_v23  ;;  %v6204_v23 = vld [vmem:[#allocation58_spill] sm:$0xff] }
 0x71a   :  { %2720 = vmatprep.subr.bf16.mxu0 %v5877_v11  ;;  %2761 = vmatprep.subr.bf16.mxu1 %v5878_v47  ;;  %v6205_v11 = vld [vmem:[#allocation59_spill] sm:$0xff] }
 0x71d   :  { %2721 = vmatpush1.bf16.msra.mxu0 %v5881_v18  ;;  %2762 = vmatpush1.bf16.msra.mxu1 %v4253_v38 }
 0x71e   :  { %2789 = vmatprep.subr.bf16.mxu0 %v5939_v35  ;;  %2830 = vmatprep.subr.bf16.mxu1 %v5940_v6  ;;  %v6206_v35 = vld [vmem:[#allocation60_spill] sm:$0xff] }
 0x780   :  { %v2454_v14 = vpop.f32.mrf.mxu0  ;;  %v2495_v58 = vpop.f32.mrf.mxu1 }
 0x781   :  { %v2502_v33 = vadd.f32 %v2454_v14, %v6203_v22  ;;  %v2504_v45 = vadd.f32 %v2495_v58, %v6204_v23  ;;  %v6216_v58 = vld [vmem:[#allocation112_spill] sm:$0xff] }
 0x782   :  { %v2456_v15 = vpop.f32.mrf.mxu0  ;;  %v2497_v20 = vpop.f32.mrf.mxu1 }
 0x783   :  { %3237 = vtanh.f32 %v2502_v33  ;;  %v2503_v27 = vadd.f32 %v2456_v15, %v6205_v11  ;;  %v2505_v41 = vadd.f32 %v2497_v20, %v6206_v35  ;;  %v6218_v35 = vld [vmem:[#allocation83_spill] sm:$0xff] }
 0x784   :  { %v2458_v47 = vpop.f32.mrf.mxu0  ;;  %v2499_v32 = vpop.f32.mrf.mxu1 }
 0x785   :  { %3239 = vtanh.f32 %v2503_v27 }
 0x786   :  { %v2459_v18 = vpop.f32.mrf.mxu0  ;;  %v2500_v38 = vpop.f32.mrf.mxu1  ;;  %3241 = vtanh.f32 %v2504_v45 }
 0x787   :  { %3243 = vtanh.f32 %v2505_v41 }
 0x790   :  { %v3238_v6 = vpop.eup %3237 }
 0x791   :  { %v2510_v43 = vadd.f32 1.0, %v3238_v6 }
 0x792   :  { %v3240_v16 = vpop.eup %3239 }
 0x793   :  { %v2511_v61 = vmul.f32 0.5, %v2510_v43  ;;  %v2512_v54 = vadd.f32 1.0, %v3240_v16  ;;  %v3242_v36 = vpop.eup %3241 }
 0x794   :  { %v3244_v59 = vpop.eup %3243 }
 0x795   :  { %v2513_v51 = vmul.f32 0.5, %v2512_v54  ;;  %v2517_v49 = vmul.f32 %v3242_v36, %v2511_v61  ;;  %v2514_v25 = vadd.f32 1.0, %v3244_v59  ;;  %v2904_v54 = vld [vmem:[%s5506_s2 + $0x70] sm:$0xff]  ;;  %v2905_v36 = vld [vmem:[%s5506_s2 + $0x78] sm:$0xff] }
 0x797   :  { %v2516_v52 = vmul.f32 %v2513_v51, %v5207_v44  ;;  %v2515_v26 = vmul.f32 0.5, %v2514_v25  ;;  %v6212_v44 = vld [vmem:[#allocation120_spill] sm:$0xff]  ;;  %v2913_v51 = vpack.c.bf16 %v2905_v36, %v2904_v54  ;;  %v2899_v25 = vld [vmem:[%s5506_s2 + $0x48] sm:$0xff] }
 0x799   :  { %v2518_v40 = vadd.f32 %v2517_v49, %v2516_v52  ;;  %v3268_v49 = vmov 0.0   ;;  %v2902_v52 = vld [vmem:[%s5506_s2 + $0x60] sm:$0xff] }
 0x79b   :  { %3245 = vtanh.f32 %v2518_v40  ;;  %v2903_v40 = vld [vmem:[%s5506_s2 + $0x68] sm:$0xff] }
 0x79c   :  { %v2912_v59 = vpack.c.bf16 %v2903_v40, %v2902_v52 }
 0x7a0   :  { %v2555_v53 = vpop.f32.mrf.mxu0  ;;  %v2596_v46 = vpop.f32.mrf.mxu1 }
 0x7a2   :  { %v2557_v37 = vpop.f32.mrf.mxu0  ;;  %v2598_v5 = vpop.f32.mrf.mxu1 }
 0x7a4   :  { %v2559_v8 = vpop.f32.mrf.mxu0  ;;  %v2600_v31 = vpop.f32.mrf.mxu1 }
 0x7a5   :  { %v2896_v31 = vld [vmem:[%s5506_s2 + $0x30] sm:$0xff] }
 0x7a6   :  { %v2560_v63 = vpop.f32.mrf.mxu0  ;;  %v2601_v28 = vpop.f32.mrf.mxu1 }
 0x7a7   :  { %v2897_v63 = vld [vmem:[%s5506_s2 + $0x38] sm:$0xff] }
 0x7a8   :  { %v3246_v2 = vpop.eup %3245  ;;  %v2909_v28 = vpack.c.bf16 %v2897_v63, %v2896_v31 }
 0x7a9   :  { %v5328_v48 = vmul.f32 %v3246_v2, %v2515_v26  ;;  %v2894_v26 = vld [vmem:[%s5506_s2 + $0x20] sm:$0xff]  ;;  %v2895_v2 = vld [vmem:[%s5506_s2 + $0x28] sm:$0xff] }
 0x7ab   :  { %v2705_v14 = vpack.c.bf16 %v5328_v48, %v5328_v48 }
 0x7ad   :  { %2739 = vmatmul.mubr.bf16.vlgmr.msra.gmra.mxu0 %v2705_v14  ;;  %2780 = vmatmul.mubr.bf16.vlgmr.msra.gmra.mxu1 %v2705_v14  ;;  %v2908_v14 = vpack.c.bf16 %v2895_v2, %v2894_v26 }
 0x7ae   :  { %2790 = vmatpush1.bf16.msra.mxu0 %v5998_v60  ;;  %2831 = vmatpush1.bf16.msra.mxu1 %v5943_v21  ;;  %v6209_v21 = vld [vmem:[#allocation36_spill] sm:$0xff]  ;;  %v6211_v60 = vld [vmem:[#allocation109_spill] sm:$0xff] }
 0x7af   :  { %2791 = vmatprep.subr.bf16.mxu0 %v5999_v4  ;;  %2832 = vmatprep.subr.bf16.mxu1 %v6000_v55 }
 0x7b0   :  { %2821 = vmatprep.mubr.bf16.mxu0 %v5794_v62  ;;  %2862 = vmatprep.mubr.bf16.mxu1 %v5794_v62  ;;  %v6207_v62 = vld [vmem:[#allocation106_spill] sm:$0xff] }
 0x7b2   :  { %2792 = vmatpush1.bf16.msra.mxu0 %v5946_v1  ;;  %2833 = vmatpush1.bf16.msra.mxu1 %v5947_v50  ;;  %v2556_v1 = vadd.f32 %v2555_v53, %v6209_v21  ;;  %v6210_v50 = vld [vmem:[#allocation108_spill] sm:$0xff] }
 0x7b3   :  { %2793 = vmatprep.subr.bf16.mxu0 %v5890_v34  ;;  %2834 = vmatprep.subr.bf16.mxu1 %v6176_v39  ;;  %v6208_v34 = vld [vmem:[#allocation107_spill] sm:$0xff]  ;;  %v2558_v39 = vadd.f32 %v2557_v37, %v6212_v44  ;;  %v2900_v53 = vld [vmem:[%s5506_s2 + $0x50] sm:$0xff] }
 0x7b6   :  { %2794 = vmatpush1.bf16.msra.mxu0 %v6177_v12  ;;  %2835 = vmatpush1.bf16.msra.mxu1 %v6178_v42 }
 0x7b7   :  { %2795 = vmatprep.subr.bf16.mxu0 %v6180_v24  ;;  %2836 = vmatprep.subr.bf16.mxu1 %v6181_v56  ;;  %v6213_v56 = vld [vmem:[#allocation110_spill] sm:$0xff] }
 0x7ba   :  { %2796 = vmatpush1.bf16.msra.mxu0 %v6183_v29  ;;  %2837 = vmatpush1.bf16.msra.mxu1 %v6184_v13  ;;  %v6214_v29 = vld [vmem:[#allocation111_spill] sm:$0xff]  ;;  %v6215_v13 = vld [vmem:[#allocation121_spill] sm:$0xff] }
 0x7bb   :  { %2797 = vmatprep.subr.bf16.mxu0 %v6185_v10  ;;  %2838 = vmatprep.subr.bf16.mxu1 %v6186_v0  ;;  %v2597_v10 = vadd.f32 %v2596_v46, %v6215_v13  ;;  %v2901_v46 = vld [vmem:[%s5506_s2 + $0x58] sm:$0xff] }
 0x7bc   :  { %v2911_v37 = vpack.c.bf16 %v2901_v46, %v2900_v53 }
 0x7be   :  { %2798 = vmatpush1.bf16.msra.mxu0 %v6207_v62  ;;  %2839 = vmatpush1.bf16.msra.mxu1 %v6208_v34  ;;  %v2892_v62 = vld [vmem:[%s5506_s2 + $0x10] sm:$0xff]  ;;  %v2893_v34 = vld [vmem:[%s5506_s2 + $0x18] sm:$0xff] }
 0x7bf   :  { %2799 = vmatprep.subr.bf16.mxu0 %v6210_v50  ;;  %2840 = vmatprep.subr.bf16.mxu1 %v6211_v60  ;;  %v2890_v50 = vld [vmem:[%s5506_s2] sm:$0xff]  ;;  %v2891_v60 = vld [vmem:[%s5506_s2 + $0x8] sm:$0xff] }
 0x7c0   :  { %v2638_v4 = vpop.f32.mrf.mxu0  ;;  %v2679_v55 = vpop.f32.mrf.mxu1 }
 0x7c1   :  { %v2686_v12 = vadd.f32 %v2638_v4, %v2556_v1  ;;  %v2688_v15 = vadd.f32 %v2679_v55, %v2597_v10  ;;  %v2907_v1 = vpack.c.bf16 %v2893_v34, %v2892_v62  ;;  %v2906_v4 = vpack.c.bf16 %v2891_v60, %v2890_v50  ;;  %v2929_v55 = vld [vmem:[%s5506_s2 + $0xf8] sm:$0xff]  ;;  %v2926_v10 = vld [vmem:[%s5506_s2 + $0xe0] sm:$0xff] }
 0x7c2   :  { %v2640_v42 = vpop.f32.mrf.mxu0  ;;  %v2681_v24 = vpop.f32.mrf.mxu1  ;;  %2800 = vmatpush1.bf16.msra.mxu0 %v6213_v56  ;;  %2841 = vmatpush1.bf16.msra.mxu1 %v6214_v29  ;;  %v2925_v29 = vld [vmem:[%s5506_s2 + $0xd8] sm:$0xff] }
 0x7c3   :  { %3247 = vtanh.f32 %v2686_v12  ;;  %v2687_v0 = vadd.f32 %v2640_v42, %v2558_v39  ;;  %2801 = vmatprep.subr.bf16.mxu0 %v6216_v58  ;;  %2842 = vmatprep.subr.bf16.mxu1 %v6194_v3  ;;  %v6217_v3 = vld [vmem:[#allocation81_spill] sm:$0xff]  ;;  %v2930_v39 = vld [vmem:[%s5506_s2 + $0x100] sm:$0xff]  ;;  %v2927_v12 = vld [vmem:[%s5506_s2 + $0xe8] sm:$0xff] }
 0x7c4   :  { %v2642_v22 = vpop.f32.mrf.mxu0  ;;  %v2683_v33 = vpop.f32.mrf.mxu1  ;;  %v2599_v45 = vadd.f32 %v2598_v5, %v6217_v3  ;;  %v2898_v5 = vld [vmem:[%s5506_s2 + $0x40] sm:$0xff]  ;;  %v2938_v42 = vpack.c.bf16 %v2930_v39, %v2929_v55  ;;  %v2923_v58 = vld [vmem:[%s5506_s2 + $0xc8] sm:$0xff]  ;;  %v2917_v60 = vld [vmem:[%s5506_s2 + $0x98] sm:$0xff] }
 0x7c5   :  { %3249 = vtanh.f32 %v2687_v0  ;;  %v2910_v8 = vpack.c.bf16 %v2899_v25, %v2898_v5  ;;  %v2936_v0 = vpack.c.bf16 %v2926_v10, %v2925_v29  ;;  %v2924_v22 = vld [vmem:[%s5506_s2 + $0xd0] sm:$0xff]  ;;  %v2915_v55 = vld [vmem:[%s5506_s2 + $0x88] sm:$0xff] }
 0x7c6   :  { %v2643_v20 = vpop.f32.mrf.mxu0  ;;  %v2684_v23 = vpop.f32.mrf.mxu1  ;;  %2802 = vmatpush1.bf16.msra.mxu0 %v6195_v30  ;;  %2843 = vmatpush1.bf16.msra.mxu1 %v6196_v7  ;;  %3251 = vtanh.f32 %v2688_v15  ;;  %v2689_v11 = vadd.f32 %v2681_v24, %v2599_v45  ;;  %v2928_v24 = vld [vmem:[%s5506_s2 + $0xf0] sm:$0xff]  ;;  %v2935_v33 = vpack.c.bf16 %v2924_v22, %v2923_v58  ;;  %v2921_v15 = vld [vmem:[%s5506_s2 + $0xb8] sm:$0xff] }
 0x7c7   :  { %2803 = vmatprep.subr.bf16.mxu0 %v6197_v9  ;;  %2844 = vmatprep.subr.bf16.mxu1 %v6198_v17  ;;  %v2937_v56 = vpack.c.bf16 %v2928_v24, %v2927_v12  ;;  %v2922_v20 = vld [vmem:[%s5506_s2 + $0xc0] sm:$0xff]  ;;  %v2916_v39 = vld [vmem:[%s5506_s2 + $0x90] sm:$0xff] }
 0x7c8   :  { %3253 = vtanh.f32 %v2689_v11  ;;  %v2934_v23 = vpack.c.bf16 %v2922_v20, %v2921_v15  ;;  %v2931_v12 = vpack.c.bf16 %v2916_v39, %v2915_v55  ;;  %v3045_v15 = vld [vmem:[%s5506_s2 + $0x108] ss:$0 sm:$0xff] }
 0x7ca   :  { %2804 = vmatpush1.bf16.msra.mxu0 %v6199_v19  ;;  %2845 = vmatpush1.bf16.msra.mxu1 %v6200_v57 }
 0x7cb   :  { %3064 = vmatprep.subr.bf16.mxu0 %v3268_v49  ;;  %3084 = vmatprep.subr.bf16.mxu1 %v3268_v49 }
 0x7d0   :  { %v3248_v27 = vpop.eup %3247 }
 0x7d1   :  { %v2694_v47 = vadd.f32 1.0, %v3248_v27 }
 0x7d2   :  { %v3250_v32 = vpop.eup %3249 }
 0x7d3   :  { %v2695_v18 = vmul.f32 0.5, %v2694_v47  ;;  %v2696_v38 = vadd.f32 1.0, %v3250_v32  ;;  %v3252_v7 = vpop.eup %3251 }
 0x7d5   :  { %v2697_v30 = vmul.f32 0.5, %v2696_v38  ;;  %v2701_v41 = vmul.f32 %v3252_v7, %v2695_v18  ;;  %v3254_v19 = vpop.eup %3253 }
 0x7d6   :  { %v2698_v57 = vadd.f32 1.0, %v3254_v19 }
 0x7d7   :  { %v2700_v9 = vmul.f32 %v2697_v30, %v6218_v35 }
 0x7d8   :  { %v2699_v6 = vmul.f32 0.5, %v2698_v57 }
 0x7d9   :  { %v5369_v17 = vadd.f32 %v2701_v41, %v2700_v9 }
 0x7db   :  { %3255 = vtanh.f32 %v5369_v17 }
 0x7e8   :  { %v3256_v43 = vpop.eup %3255 }
 0x7e9   :  { %v2704_v16 = vmul.f32 %v3256_v43, %v2699_v6 }
 0x7eb   :  { %v2788_v61 = vpack.c.bf16 %v2704_v16, %v2704_v16 }
 0x7ed   :  { %2822 = vmatmul.mubr.bf16.vlgmr.msra.gmra.mxu0 %v2788_v61  ;;  %2863 = vmatmul.mubr.bf16.vlgmr.msra.gmra.mxu1 %v2788_v61 }
 0x7ee   :  { %3065 = vmatpush3.bf16.msra.mxu0 %v2913_v51  ;;  %3080 = vmatprep.mubr.msk.bf16.mxu0 %vm3269_vm0, %v3268_v49 }
 0x7ef   :  { %3066 = vmatprep.subr.bf16.mxu0 %v3268_v49  ;;  %3100 = vmatprep.mubr.msk.bf16.mxu1 %vm3269_vm0, %v3268_v49 }
 0x7f0   :  { %3085 = vmatpush3.bf16.msra.mxu1 %v2938_v42  ;;  %v3044_v42 = vld [vmem:[%s5506_s2 + $0x80] ss:$0 sm:$0xff] }
 0x7f1   :  { %3086 = vmatprep.subr.bf16.mxu1 %v3268_v49 }
 0x7f2   :  { %3067 = vmatpush3.bf16.msra.mxu0 %v2912_v59 }
 0x7f3   :  { %3068 = vmatprep.subr.bf16.mxu0 %v3268_v49 }
 0x7f4   :  { %3087 = vmatpush3.bf16.msra.mxu1 %v2937_v56 }
 0x7f5   :  { %3088 = vmatprep.subr.bf16.mxu1 %v3268_v49 }
 0x7f6   :  { %3069 = vmatpush3.bf16.msra.mxu0 %v2911_v37 }
 0x7f7   :  { %3070 = vmatprep.subr.bf16.mxu0 %v3268_v49 }
 0x7f8   :  { %3089 = vmatpush3.bf16.msra.mxu1 %v2936_v0 }
 0x7f9   :  { %3090 = vmatprep.subr.bf16.mxu1 %v3268_v49 }
 0x7fa   :  { %3071 = vmatpush3.bf16.msra.mxu0 %v2910_v8 }
 0x7fb   :  { %3072 = vmatprep.subr.bf16.mxu0 %v3268_v49 }
 0x7fc   :  { %3091 = vmatpush3.bf16.msra.mxu1 %v2935_v33 }
 0x7fd   :  { %3092 = vmatprep.subr.bf16.mxu1 %v3268_v49 }
 0x7fe   :  { %3073 = vmatpush3.bf16.msra.mxu0 %v2909_v28 }
 0x7ff   :  { %3074 = vmatprep.subr.bf16.mxu0 %v3268_v49 }
 0x800   :  { %3093 = vmatpush3.bf16.msra.mxu1 %v2934_v23 }
 0x801   :  { %3094 = vmatprep.subr.bf16.mxu1 %v3268_v49 }
 0x802   :  { %3075 = vmatpush3.bf16.msra.mxu0 %v2908_v14 }
 0x803   :  { %3076 = vmatprep.subr.bf16.mxu0 %v3268_v49 }
 0x806   :  { %3077 = vmatpush3.bf16.msra.mxu0 %v2907_v1  ;;  %v2919_v1 = vld [vmem:[%s5506_s2 + $0xa8] sm:$0xff] }
 0x807   :  { %3078 = vmatprep.subr.bf16.mxu0 %v3268_v49 }
 0x80a   :  { %3079 = vmatpush3.bf16.msra.mxu0 %v2906_v4 }
 0x86d   :  { %v2740_v45 = vpop.f32.mrf.mxu0  ;;  %v2781_v11 = vpop.f32.mrf.mxu1 }
 0x86e   :  { %v2741_v7 = vadd.f32 %v2740_v45, %v6209_v21  ;;  %v2782_v41 = vadd.f32 %v2781_v11, %v6215_v13 }
 0x86f   :  { %v2742_v27 = vpop.f32.mrf.mxu0  ;;  %v2783_v47 = vpop.f32.mrf.mxu1 }
 0x870   :  { %v2743_v19 = vadd.f32 %v2742_v27, %v6212_v44  ;;  %v2784_v21 = vadd.f32 %v2783_v47, %v6217_v3  ;;  %v2940_v3 = vmax.f32 %v5328_v48, 0.0  ;;  %v2918_v48 = vld [vmem:[%s5506_s2 + $0xa0] sm:$0xff] }
 0x871   :  { %v2744_v32 = vpop.f32.mrf.mxu0  ;;  %v2785_v18 = vpop.f32.mrf.mxu1  ;;  %v2932_v4 = vpack.c.bf16 %v2918_v48, %v2917_v60 }
 0x873   :  { %v2745_v38 = vpop.f32.mrf.mxu0  ;;  %v2786_v30 = vpop.f32.mrf.mxu1 }
 0x8ad   :  { %v2823_v35 = vpop.f32.mrf.mxu0  ;;  %v2864_v9 = vpop.f32.mrf.mxu1 }
 0x8ae   :  { %v2871_v57 = vadd.f32 %v2823_v35, %v2741_v7  ;;  %v2873_v16 = vadd.f32 %v2864_v9, %v2782_v41 }
 0x8af   :  { %v2825_v6 = vpop.f32.mrf.mxu0  ;;  %v2866_v43 = vpop.f32.mrf.mxu1 }
 0x8b0   :  { %3257 = vtanh.f32 %v2871_v57  ;;  %v2872_v61 = vadd.f32 %v2825_v6, %v2743_v19  ;;  %v2874_v40 = vadd.f32 %v2866_v43, %v2784_v21 }
 0x8b1   :  { %v2827_v54 = vpop.f32.mrf.mxu0  ;;  %v2868_v36 = vpop.f32.mrf.mxu1 }
 0x8b2   :  { %3259 = vtanh.f32 %v2872_v61 }
 0x8b3   :  { %v2828_v51 = vpop.f32.mrf.mxu0  ;;  %v2869_v52 = vpop.f32.mrf.mxu1  ;;  %3261 = vtanh.f32 %v2873_v16 }
 0x8b4   :  { %3263 = vtanh.f32 %v2874_v40 }
 0x8bd   :  { %v3258_v59 = vpop.eup %3257 }
 0x8be   :  { %v2879_v53 = vadd.f32 1.0, %v3258_v59 }
 0x8bf   :  { %v3260_v13 = vpop.eup %3259 }
 0x8c0   :  { %v2880_v46 = vmul.f32 0.5, %v2879_v53  ;;  %v2881_v44 = vadd.f32 1.0, %v3260_v13  ;;  %v3262_v37 = vpop.eup %3261 }
 0x8c1   :  { %v3264_v63 = vpop.eup %3263 }
 0x8c2   :  { %v2882_v5 = vmul.f32 0.5, %v2881_v44  ;;  %v2886_v25 = vmul.f32 %v3262_v37, %v2880_v46  ;;  %v2883_v28 = vadd.f32 1.0, %v3264_v63 }
 0x8c4   :  { %v2885_v8 = vmul.f32 %v2882_v5, %v5369_v17  ;;  %v2884_v26 = vmul.f32 0.5, %v2883_v28  ;;  %v2920_v17 = vld [vmem:[%s5506_s2 + $0xb0] sm:$0xff] }
 0x8c5   :  { %v2933_v50 = vpack.c.bf16 %v2920_v17, %v2919_v1 }
 0x8c6   :  { %v2887_v31 = vadd.f32 %v2886_v25, %v2885_v8 }
 0x8c7   :  { %3095 = vmatpush3.bf16.msra.mxu1 %v2933_v50 }
 0x8c8   :  { %3265 = vtanh.f32 %v2887_v31  ;;  %3096 = vmatprep.subr.bf16.mxu1 %v3268_v49 }
 0x8cb   :  { %3097 = vmatpush3.bf16.msra.mxu1 %v2932_v4 }
 0x8cc   :  { %3098 = vmatprep.subr.bf16.mxu1 %v3268_v49 }
 0x8cf   :  { %3099 = vmatpush3.bf16.msra.mxu1 %v2931_v12 }
 0x8d5   :  { %v3266_v2 = vpop.eup %3265 }
 0x8d6   :  { %v2889_v14 = vmul.f32 %v3266_v2, %v2884_v26 }
 0x8d8   :  { %v2941_v62 = vmax.f32 %v2889_v14, 0.0 }
 0x8da   :  { %v2942_v34 = vpack.c.bf16 %v2941_v62, %v2940_v3 }
 0x8dc   :  { %3081 = vmatmul.mubr.bf16.vlgmr.msra.gmra.mxu0 %v2942_v34 }
 0x99c   :  { %v2981_v24 = vpop.f32.mrf.mxu0 }
 0x99d   :  { %v2982_v29 = vadd.f32 %v3044_v42, %v2981_v24 }
 0x99e   :  { %v3082_v56 = vpop.f32.mrf.mxu0 }
 0x99f   :  { %v2988_v58 = vmax.f32 %v2982_v29, 0.0 }
 0x9a0   :  { %v2984_v10 = vpop.f32.mrf.mxu0 }
 0x9a1   :  { %v2985_v0 = vadd.f32 %v3044_v42, %v2984_v10 }
 0x9a2   :  { %v3083_v49 = vpop.f32.mrf.mxu0 }
 0x9a3   :  { %v2989_v22 = vmax.f32 %v2985_v0, 0.0 }
 0x9a5   :  { %v2990_v33 = vpack.c.bf16 %v2989_v22, %v2988_v58 }
 0x9a7   :  { %3101 = vmatmul.mubr.bf16.vlgmr.msra.gmra.mxu1 %v2990_v33 }
 0xa67   :  { %v3029_v20 = vpop.f32.mrf.mxu1 }
 0xa68   :  { %v3030_v23 = vadd.f32 %v3045_v15, %v3029_v20 }
 0xa69   :  { %v3102_v45 = vpop.f32.mrf.mxu1 }
 0xa6a   :  { %3036 = vst [vmem:[%s5507_s3] sm:$0xff] %v3030_v23 }
 0xa6b   :  { %v3032_v11 = vpop.f32.mrf.mxu1 }
 0xa6c   :  { %v3033_v27 = vadd.f32 %v3045_v15, %v3032_v11 }
 0xa6d   :  { %v3103_v47 = vpop.f32.mrf.mxu1 }
 0xa6e   :  { %3037 = vst [vmem:[%s5507_s3 + $0x8] sm:$0xff] %v3033_v27 }

</bundles_post_ra>
